<compile_context>
chip_gen: v5e
topology: v5e:2x2
jax: 0.10.0
libtpu: 0.0.40
codegen_flags: <defaults>
</compile_context>

<pallas_src>
import functools
import math

import jax
import jax.numpy as jnp
from jax import lax
from jax.experimental import pallas as pl
from jax.experimental.pallas import tpu as pltpu


# --------------------------------------------------------------------------- #
# Device heuristics
# --------------------------------------------------------------------------- #
def _device_kind():
    try:
        return jax.devices()[0].device_kind.lower()
    except Exception:
        return ""


def _num_tensorcores():
    # Parts with 2 TensorCores behind one JAX device (megacore / dual-TC).
    kind = _device_kind()
    return 2 if any(t in kind for t in ("v4", "v5p", "v7", "7x")) else 1


def _elementwise_dtype():
    # bf16 VPU/EUP exists on v6e and newer; keep element-wise math in f32 on
    # v5e and older (bf16 there would unpack/repack and get slower).
    kind = _device_kind()
    old = any(t in kind for t in ("v2", "v3", "v4", "v5"))
    return jnp.float32 if old else jnp.bfloat16


def _pick_tb(batch, n_cores):
    # Prefer large batch tiles (256 rows fills the v6e/v7x MXU M-dim, 128+ fills
    # v5e's); keep grid >= n_cores on dual-TC parts so batch shards across cores.
    # On single-TC parts a batch <= 256 runs as a single grid step (grid=1).
    cap = 256
    if n_cores > 1:
        cap = min(cap, max(8, batch // n_cores))
    for cand in (256, 128, 64, 32, 16, 8):
        if cand <= cap and batch % cand == 0:
            return cand
    return batch


# --------------------------------------------------------------------------- #
# Kernel
# --------------------------------------------------------------------------- #
def vae_forward_kernel(
    x_ref, eps_ref,
    w_in_ref, b_in_ref,            # Encoder.FC_input
    w_in2_ref, b_in2_ref,          # Encoder.FC_input2
    w_stats_ref, b_stats_ref,      # fused Encoder.FC_mean || Encoder.FC_var
    w_d1s_ref, b_d1_ref,           # Decoder.FC_hidden, row-stacked [W_d1; W_d1]
    w_d2_ref, b_d2_ref,            # Decoder.FC_hidden2
    w_out_ref, b_out_ref,          # Decoder.FC_output
    xhat_ref, stats_ref,           # outputs: x_hat, [mean || log_var]
    *, latent_dim, act_dtype,
):
    def linear(a, w_ref, b_ref):
        w = w_ref[...]
        # Cast is a no-op when activations already match the weight dtype (bf16).
        return jnp.dot(a.astype(w.dtype), w,
                       preferred_element_type=jnp.float32) + b_ref[...]

    def leaky_relu(t):
        t = t.astype(act_dtype)          # bf16 on v6e/v7x, f32 on v5e
        return jnp.where(t > 0, t, 0.2 * t)

    # ---- Encoder ----
    h = leaky_relu(linear(x_ref[...], w_in_ref, b_in_ref))
    h = leaky_relu(linear(h, w_in2_ref, b_in2_ref))

    # Fused mean/var head -> one lane-dense (TB, 2*latent) slab [mean || log_var].
    stats = linear(h, w_stats_ref, b_stats_ref)
    stats_ref[...] = stats

    # ---- Reparameterization, folded into a lane-dense slab ----
    # t[:, :L] = mean, t[:, L:] = exp(log_var) * eps   (eps_ref carries eps in its
    # upper L lanes).  Then  t @ [W_d1; W_d1] == (mean + exp(log_var)*eps) @ W_d1,
    # so z is never materialized, there is no intra-vreg split of `stats`, and the
    # decoder-1 contraction runs at K = 2*latent instead of latent.
    s = stats.astype(act_dtype)
    lane = lax.broadcasted_iota(jnp.int32, s.shape, 1)
    t = jnp.where(lane < latent_dim, s, jnp.exp(s) * eps_ref[...].astype(act_dtype))

    # ---- Decoder ----
    d = leaky_relu(linear(t, w_d1s_ref, b_d1_ref))
    d = leaky_relu(linear(d, w_d2_ref, b_d2_ref))
    logits = linear(d, w_out_ref, b_out_ref).astype(act_dtype)
    xhat_ref[...] = jax.nn.sigmoid(logits).astype(xhat_ref.dtype)


# --------------------------------------------------------------------------- #
# Wrapper
# --------------------------------------------------------------------------- #
_PARAM_ORDER = ("w_in", "b_in", "w_in2", "b_in2", "w_stats", "b_stats",
                "w_d1s", "b_d1", "w_d2", "b_d2", "w_out", "b_out")


def vae_forward(x, params, eps, *, tb=None, act_dtype=None):
    """VAE forward pass as a single Pallas kernel.

    params dict: weights stored (in_features, out_features) [e.g. bf16], biases
    (1, out) f32.  "w_stats"/"b_stats" = FC_mean and FC_var fused along the output
    axis; "w_d1s" = Decoder.FC_hidden weight row-stacked twice ([W_d1; W_d1]).
    Returns (x_hat, mean, log_var), all float32.
    """
    B, input_dim = x.shape
    latent_dim = eps.shape[1]
    stats_dim = params["w_stats"].shape[1]
    output_dim = params["w_out"].shape[1]
    assert stats_dim == 2 * latent_dim
    assert params["w_d1s"].shape[0] == stats_dim

    if act_dtype is None:
        act_dtype = _elementwise_dtype()
    in_dtype = params["w_in"].dtype      # feed activations at the MXU input precision

    if tb is None:
        tb = _pick_tb(B, _num_tensorcores())
    assert B % tb == 0, f"batch {B} must be divisible by batch tile {tb}"
    grid = (B // tb,)

    # x / eps shipped in the weight dtype (bf16) -> halves their HBM traffic; the
    # MXU needs them in that dtype anyway.  eps goes in as a lane-dense (B, 2L)
    # slab whose upper L lanes hold eps (lower lanes are unused / masked away).
    x_in = x.astype(in_dtype)
    eps_slab = jnp.concatenate([jnp.zeros_like(eps), eps], axis=1).astype(in_dtype)

    param_list = [params[k] for k in _PARAM_ORDER]

    def act_spec(feat):
        return pl.BlockSpec((tb, feat), lambda i: (i, 0))

    def build(single_buffer_weights):
        if single_buffer_weights:
            def weight_spec(shape):
                # Constant block index -> weight stays VMEM-resident across grid
                # steps; one buffer halves its VMEM footprint (matters at real VAE
                # dims and under v7x's 64 MiB VMEM).
                return pl.BlockSpec(shape, lambda i: (0, 0),
                                    pipeline_mode=pl.Buffered(1))
        else:
            def weight_spec(shape):
                return pl.BlockSpec(shape, lambda i: (0, 0))

        in_specs = [act_spec(input_dim), act_spec(stats_dim)]
        in_specs += [weight_spec(p.shape) for p in param_list]
        out_specs = (act_spec(output_dim), act_spec(stats_dim))

        flops = 2 * B * sum(int(params[k].shape[0]) * int(params[k].shape[1])
                            for k in _PARAM_ORDER if k.startswith("w"))
        transcendentals = B * (stats_dim + output_dim)     # exp slab + sigmoid
        bytes_accessed = (
            B * (input_dim + stats_dim) * jnp.dtype(in_dtype).itemsize   # x, eps
            + B * (output_dim + stats_dim) * 4                           # x_hat, stats
            + sum(math.prod(p.shape) * jnp.dtype(p.dtype).itemsize
                  for p in param_list))

        return pl.pallas_call(
            functools.partial(vae_forward_kernel,
                              latent_dim=latent_dim, act_dtype=act_dtype),
            out_shape=(
                jax.ShapeDtypeStruct((B, output_dim), jnp.float32),
                jax.ShapeDtypeStruct((B, stats_dim), jnp.float32),
            ),
            grid=grid,
            in_specs=in_specs,
            out_specs=out_specs,
            compiler_params=pltpu.CompilerParams(
                dimension_semantics=("parallel",),
                vmem_limit_bytes=32 * 1024 * 1024,
            ),
            cost_estimate=pl.CostEstimate(
                flops=flops,
                transcendentals=transcendentals,
                bytes_accessed=bytes_accessed),
        )

    args = (x_in, eps_slab, *param_list)
    try:
        x_hat, stats = build(True)(*args)
    except Exception:
        # Fallback for jax builds where single-buffered constant blocks
        # (pl.Buffered(1)) are not supported by the outer pipeline.
        x_hat, stats = build(False)(*args)

    mean = stats[:, :latent_dim]
    log_var = stats[:, latent_dim:]
    return x_hat, mean, log_var


# --------------------------------------------------------------------------- #
# Pure-JAX reference (natural / unfolded form, mirrors the kernel's precision)
# --------------------------------------------------------------------------- #
def vae_forward_ref(x, params, eps, latent_dim, act_dtype):
    in_dtype = params["w_in"].dtype

    def lin(a, w, b):
        return jnp.dot(a.astype(w.dtype), w, preferred_element_type=jnp.float32) + b

    def lrelu(t):
        t = t.astype(act_dtype)
        return jnp.where(t > 0, t, 0.2 * t)

    x = x.astype(in_dtype)
    eps = eps.astype(in_dtype).astype(act_dtype)

    h = lrelu(lin(x, params["w_in"], params["b_in"]))
    h = lrelu(lin(h, params["w_in2"], params["b_in2"]))
    stats = lin(h, params["w_stats"], params["b_stats"])
    mean, log_var = stats[:, :latent_dim], stats[:, latent_dim:]

    # z = mean + exp(log_var) * eps  (matches the PyTorch reference: var, not std)
    z = mean.astype(act_dtype) + jnp.exp(log_var.astype(act_dtype)) * eps

    d = lrelu(lin(z, params["w_d1"], params["b_d1"]))
    d = lrelu(lin(d, params["w_d2"], params["b_d2"]))
    x_hat = jax.nn.sigmoid(lin(d, params["w_out"], params["b_out"]).astype(act_dtype))
    return x_hat.astype(jnp.float32), mean, log_var


def _init_linear(key, fan_in, fan_out, w_dtype=jnp.bfloat16):
    # Mimics PyTorch's default U(-1/sqrt(fan_in), 1/sqrt(fan_in)) init.
    kw, kb = jax.random.split(key)
    bound = 1.0 / math.sqrt(fan_in)
    w = jax.random.uniform(kw, (fan_in, fan_out), jnp.float32, -bound, bound).astype(w_dtype)
    b = jax.random.uniform(kb, (1, fan_out), jnp.float32, -bound, bound)
    return w, b


if __name__ == "__main__":
    # Small shapes consistent with the module (scaled down from input/600/300),
    # feature dims kept lane-friendly.
    batch = 128
    input_dim = 256        # flattened-image features (Encoder input / Decoder output)
    hidden_dim = 128
    latent_dim = 64        # fused mean||var head and eps slab -> 128 lanes (dense)
    output_dim = input_dim

    key = jax.random.PRNGKey(0)
    keys = jax.random.split(key, 9)

    params = {}
    params["w_in"],  params["b_in"]  = _init_linear(keys[0], input_dim, hidden_dim)
    params["w_in2"], params["b_in2"] = _init_linear(keys[1], hidden_dim, hidden_dim)
    w_mean, b_mean = _init_linear(keys[2], hidden_dim, latent_dim)
    w_var,  b_var  = _init_linear(keys[3], hidden_dim, latent_dim)
    # Fused mean/var head: one 2*latent-lane-dense matmul.
    params["w_stats"] = jnp.concatenate([w_mean, w_var], axis=1)
    params["b_stats"] = jnp.concatenate([b_mean, b_var], axis=1)
    params["w_d1"], params["b_d1"] = _init_linear(keys[4], latent_dim, hidden_dim)
    # Row-stacked decoder-1 weight so the reparameterization slab feeds it directly.
    params["w_d1s"] = jnp.concatenate([params["w_d1"], params["w_d1"]], axis=0)
    params["w_d2"],  params["b_d2"]  = _init_linear(keys[5], hidden_dim, hidden_dim)
    params["w_out"], params["b_out"] = _init_linear(keys[6], hidden_dim, output_dim)

    x = jax.random.normal(keys[7], (batch, input_dim), jnp.float32)
    # epsilon corresponds to torch.randn_like(var); generated deterministically here.
    # TODO(synk): could be drawn in-kernel with pltpu.prng_seed + stateful_normal.
    eps = jax.random.normal(keys[8], (batch, latent_dim), jnp.float32)

    act_dtype = _elementwise_dtype()

    # Main run: auto batch tile (<=256 rows, grid >= #TensorCores on dual-TC parts).
    x_hat, mean, log_var = jax.block_until_ready(
        vae_forward(x, params, eps, act_dtype=act_dtype))

    assert x_hat.shape == (batch, output_dim)
    assert mean.shape == (batch, latent_dim)
    assert log_var.shape == (batch, latent_dim)
    assert bool(jnp.all(jnp.isfinite(x_hat)))
    assert bool(jnp.all((x_hat >= 0.0) & (x_hat <= 1.0)))

    # Cross-check against a pure-JAX reference written in the natural (unfolded)
    # form of the PyTorch module (validates the folded reparameterization trick).
    x_hat_r, mean_r, log_var_r = vae_forward_ref(x, params, eps, latent_dim, act_dtype)
    assert bool(jnp.allclose(mean, mean_r, atol=1e-2, rtol=1e-2))
    assert bool(jnp.allclose(log_var, log_var_r, atol=1e-2, rtol=1e-2))
    assert bool(jnp.allclose(x_hat, x_hat_r, atol=1e-2, rtol=1e-2))

    # Also exercise the multi-step (grid > 1) pipeline path and check consistency.
    x_hat2, mean2, log_var2 = jax.block_until_ready(
        vae_forward(x, params, eps, tb=32, act_dtype=act_dtype))
    assert bool(jnp.allclose(x_hat2, x_hat, atol=1e-5, rtol=1e-5))
    assert bool(jnp.allclose(mean2, mean, atol=1e-5, rtol=1e-5))
    assert bool(jnp.allclose(log_var2, log_var, atol=1e-5, rtol=1e-5))

    print("KERNEL_OK")
</pallas_src>

<mosaic_0001>
module attributes {stable_mosaic.version = 11 : i64} {
  func.func @vae_forward_kernel(%arg0: i32, %arg1: memref<128x256xbf16, #tpu.memory_space<vmem>>, %arg2: memref<128x128xbf16, #tpu.memory_space<vmem>>, %arg3: memref<256x128xbf16, #tpu.memory_space<vmem>>, %arg4: memref<1x128xf32, #tpu.memory_space<vmem>>, %arg5: memref<128x128xbf16, #tpu.memory_space<vmem>>, %arg6: memref<1x128xf32, #tpu.memory_space<vmem>>, %arg7: memref<128x128xbf16, #tpu.memory_space<vmem>>, %arg8: memref<1x128xf32, #tpu.memory_space<vmem>>, %arg9: memref<128x128xbf16, #tpu.memory_space<vmem>>, %arg10: memref<1x128xf32, #tpu.memory_space<vmem>>, %arg11: memref<128x128xbf16, #tpu.memory_space<vmem>>, %arg12: memref<1x128xf32, #tpu.memory_space<vmem>>, %arg13: memref<128x256xbf16, #tpu.memory_space<vmem>>, %arg14: memref<1x256xf32, #tpu.memory_space<vmem>>, %arg15: memref<128x256xf32, #tpu.memory_space<vmem>>, %arg16: memref<128x128xf32, #tpu.memory_space<vmem>>) attributes {dimension_semantics = [#tpu.dimension_semantics<parallel>], iteration_bounds = array<i64: 1>, scalar_prefetch = 0 : i64, scratch_operands = 0 : i64, tpu.core_type = #tpu.core_type<tc>, window_params = [{transform_indices = @transform_0, window_bounds = array<i64: 128, 256>}, {transform_indices = @transform_1, window_bounds = array<i64: 128, 128>}, {pipeline_mode = #tpu.pipeline_mode<synchronous>, transform_indices = @transform_2, window_bounds = array<i64: 256, 128>}, {pipeline_mode = #tpu.pipeline_mode<synchronous>, transform_indices = @transform_3, window_bounds = array<i64: 1, 128>}, {pipeline_mode = #tpu.pipeline_mode<synchronous>, transform_indices = @transform_4, window_bounds = array<i64: 128, 128>}, {pipeline_mode = #tpu.pipeline_mode<synchronous>, transform_indices = @transform_5, window_bounds = array<i64: 1, 128>}, {pipeline_mode = #tpu.pipeline_mode<synchronous>, transform_indices = @transform_6, window_bounds = array<i64: 128, 128>}, {pipeline_mode = #tpu.pipeline_mode<synchronous>, transform_indices = @transform_7, window_bounds = array<i64: 1, 128>}, {pipeline_mode = #tpu.pipeline_mode<synchronous>, transform_indices = @transform_8, window_bounds = array<i64: 128, 128>}, {pipeline_mode = #tpu.pipeline_mode<synchronous>, transform_indices = @transform_9, window_bounds = array<i64: 1, 128>}, {pipeline_mode = #tpu.pipeline_mode<synchronous>, transform_indices = @transform_10, window_bounds = array<i64: 128, 128>}, {pipeline_mode = #tpu.pipeline_mode<synchronous>, transform_indices = @transform_11, window_bounds = array<i64: 1, 128>}, {pipeline_mode = #tpu.pipeline_mode<synchronous>, transform_indices = @transform_12, window_bounds = array<i64: 128, 256>}, {pipeline_mode = #tpu.pipeline_mode<synchronous>, transform_indices = @transform_13, window_bounds = array<i64: 1, 256>}, {transform_indices = @transform_14, window_bounds = array<i64: 128, 256>}, {transform_indices = @transform_15, window_bounds = array<i64: 128, 128>}]} {
    %c0 = arith.constant 0 : index
    %c0_0 = arith.constant 0 : index
    %0 = vector.load %arg1[%c0, %c0_0] : memref<128x256xbf16, #tpu.memory_space<vmem>>, vector<128x256xbf16>
    %c0_1 = arith.constant 0 : index
    %c0_2 = arith.constant 0 : index
    %1 = vector.load %arg3[%c0_1, %c0_2] : memref<256x128xbf16, #tpu.memory_space<vmem>>, vector<256x128xbf16>
    %cst = arith.constant dense<0.000000e+00> : vector<128x128xf32>
    %2 = tpu.matmul %0, %1, %cst {dimension_numbers = #tpu.dot_dimension_numbers<[1], [0], [0], [1], [0, 0, 1, 1], [], []>} : vector<128x256xbf16>, vector<256x128xbf16>, vector<128x128xf32> -> vector<128x128xf32>
    %c0_3 = arith.constant 0 : index
    %c0_4 = arith.constant 0 : index
    %3 = vector.load %arg4[%c0_3, %c0_4] : memref<1x128xf32, #tpu.memory_space<vmem>>, vector<1x128xf32>
    %4 = vector.broadcast %3 : vector<1x128xf32> to vector<128x128xf32>
    %5 = arith.addf %2, %4 : vector<128x128xf32>
    %6 = arith.truncf %5 : vector<128x128xf32> to vector<128x128xbf16>
    %cst_5 = arith.constant 0.000000e+00 : bf16
    %7 = vector.broadcast %cst_5 : bf16 to vector<128x128xbf16>
    %8 = arith.cmpf ogt, %6, %7 : vector<128x128xbf16>
    %cst_6 = arith.constant 2.001950e-01 : bf16
    %9 = vector.broadcast %cst_6 : bf16 to vector<128x128xbf16>
    %10 = arith.mulf %9, %6 : vector<128x128xbf16>
    %11 = arith.select %8, %6, %10 : vector<128x128xi1>, vector<128x128xbf16>
    %c0_7 = arith.constant 0 : index
    %c0_8 = arith.constant 0 : index
    %12 = vector.load %arg5[%c0_7, %c0_8] : memref<128x128xbf16, #tpu.memory_space<vmem>>, vector<128x128xbf16>
    %cst_9 = arith.constant dense<0.000000e+00> : vector<128x128xf32>
    %13 = tpu.matmul %11, %12, %cst_9 {dimension_numbers = #tpu.dot_dimension_numbers<[1], [0], [0], [1], [0, 0, 1, 1], [], []>} : vector<128x128xbf16>, vector<128x128xbf16>, vector<128x128xf32> -> vector<128x128xf32>
    %c0_10 = arith.constant 0 : index
    %c0_11 = arith.constant 0 : index
    %14 = vector.load %arg6[%c0_10, %c0_11] : memref<1x128xf32, #tpu.memory_space<vmem>>, vector<1x128xf32>
    %15 = vector.broadcast %14 : vector<1x128xf32> to vector<128x128xf32>
    %16 = arith.addf %13, %15 : vector<128x128xf32>
    %17 = arith.truncf %16 : vector<128x128xf32> to vector<128x128xbf16>
    %cst_12 = arith.constant 0.000000e+00 : bf16
    %18 = vector.broadcast %cst_12 : bf16 to vector<128x128xbf16>
    %19 = arith.cmpf ogt, %17, %18 : vector<128x128xbf16>
    %cst_13 = arith.constant 2.001950e-01 : bf16
    %20 = vector.broadcast %cst_13 : bf16 to vector<128x128xbf16>
    %21 = arith.mulf %20, %17 : vector<128x128xbf16>
    %22 = arith.select %19, %17, %21 : vector<128x128xi1>, vector<128x128xbf16>
    %c0_14 = arith.constant 0 : index
    %c0_15 = arith.constant 0 : index
    %23 = vector.load %arg7[%c0_14, %c0_15] : memref<128x128xbf16, #tpu.memory_space<vmem>>, vector<128x128xbf16>
    %cst_16 = arith.constant dense<0.000000e+00> : vector<128x128xf32>
    %24 = tpu.matmul %22, %23, %cst_16 {dimension_numbers = #tpu.dot_dimension_numbers<[1], [0], [0], [1], [0, 0, 1, 1], [], []>} : vector<128x128xbf16>, vector<128x128xbf16>, vector<128x128xf32> -> vector<128x128xf32>
    %c0_17 = arith.constant 0 : index
    %c0_18 = arith.constant 0 : index
    %25 = vector.load %arg8[%c0_17, %c0_18] : memref<1x128xf32, #tpu.memory_space<vmem>>, vector<1x128xf32>
    %26 = vector.broadcast %25 : vector<1x128xf32> to vector<128x128xf32>
    %27 = arith.addf %24, %26 : vector<128x128xf32>
    %c0_19 = arith.constant 0 : index
    %c0_20 = arith.constant 0 : index
    %28 = vector.load %arg16[%c0_19, %c0_20] : memref<128x128xf32, #tpu.memory_space<vmem>>, vector<128x128xf32>
    tpu.vector_store %arg16[%c0_19, %c0_20], %27 {strides = array<i32>} : memref<128x128xf32, #tpu.memory_space<vmem>>, vector<128x128xf32>,
    %29 = arith.truncf %27 : vector<128x128xf32> to vector<128x128xbf16>
    %30 = tpu.iota {dimensions = array<i32: 1>} : vector<128x128xi32>
    %c64_i32 = arith.constant 64 : i32
    %31 = vector.broadcast %c64_i32 : i32 to vector<128x128xi32>
    %32 = arith.cmpi slt, %30, %31 : vector<128x128xi32>
    %33 = math.exp %29 : vector<128x128xbf16>
    %c0_21 = arith.constant 0 : index
    %c0_22 = arith.constant 0 : index
    %34 = vector.load %arg2[%c0_21, %c0_22] : memref<128x128xbf16, #tpu.memory_space<vmem>>, vector<128x128xbf16>
    %35 = arith.mulf %33, %34 : vector<128x128xbf16>
    %36 = arith.select %32, %29, %35 : vector<128x128xi1>, vector<128x128xbf16>
    %c0_23 = arith.constant 0 : index
    %c0_24 = arith.constant 0 : index
    %37 = vector.load %arg9[%c0_23, %c0_24] : memref<128x128xbf16, #tpu.memory_space<vmem>>, vector<128x128xbf16>
    %cst_25 = arith.constant dense<0.000000e+00> : vector<128x128xf32>
    %38 = tpu.matmul %36, %37, %cst_25 {dimension_numbers = #tpu.dot_dimension_numbers<[1], [0], [0], [1], [0, 0, 1, 1], [], []>} : vector<128x128xbf16>, vector<128x128xbf16>, vector<128x128xf32> -> vector<128x128xf32>
    %c0_26 = arith.constant 0 : index
    %c0_27 = arith.constant 0 : index
    %39 = vector.load %arg10[%c0_26, %c0_27] : memref<1x128xf32, #tpu.memory_space<vmem>>, vector<1x128xf32>
    %40 = vector.broadcast %39 : vector<1x128xf32> to vector<128x128xf32>
    %41 = arith.addf %38, %40 : vector<128x128xf32>
    %42 = arith.truncf %41 : vector<128x128xf32> to vector<128x128xbf16>
    %cst_28 = arith.constant 0.000000e+00 : bf16
    %43 = vector.broadcast %cst_28 : bf16 to vector<128x128xbf16>
    %44 = arith.cmpf ogt, %42, %43 : vector<128x128xbf16>
    %cst_29 = arith.constant 2.001950e-01 : bf16
    %45 = vector.broadcast %cst_29 : bf16 to vector<128x128xbf16>
    %46 = arith.mulf %45, %42 : vector<128x128xbf16>
    %47 = arith.select %44, %42, %46 : vector<128x128xi1>, vector<128x128xbf16>
    %c0_30 = arith.constant 0 : index
    %c0_31 = arith.constant 0 : index
    %48 = vector.load %arg11[%c0_30, %c0_31] : memref<128x128xbf16, #tpu.memory_space<vmem>>, vector<128x128xbf16>
    %cst_32 = arith.constant dense<0.000000e+00> : vector<128x128xf32>
    %49 = tpu.matmul %47, %48, %cst_32 {dimension_numbers = #tpu.dot_dimension_numbers<[1], [0], [0], [1], [0, 0, 1, 1], [], []>} : vector<128x128xbf16>, vector<128x128xbf16>, vector<128x128xf32> -> vector<128x128xf32>
    %c0_33 = arith.constant 0 : index
    %c0_34 = arith.constant 0 : index
    %50 = vector.load %arg12[%c0_33, %c0_34] : memref<1x128xf32, #tpu.memory_space<vmem>>, vector<1x128xf32>
    %51 = vector.broadcast %50 : vector<1x128xf32> to vector<128x128xf32>
    %52 = arith.addf %49, %51 : vector<128x128xf32>
    %53 = arith.truncf %52 : vector<128x128xf32> to vector<128x128xbf16>
    %cst_35 = arith.constant 0.000000e+00 : bf16
    %54 = vector.broadcast %cst_35 : bf16 to vector<128x128xbf16>
    %55 = arith.cmpf ogt, %53, %54 : vector<128x128xbf16>
    %cst_36 = arith.constant 2.001950e-01 : bf16
    %56 = vector.broadcast %cst_36 : bf16 to vector<128x128xbf16>
    %57 = arith.mulf %56, %53 : vector<128x128xbf16>
    %58 = arith.select %55, %53, %57 : vector<128x128xi1>, vector<128x128xbf16>
    %c0_37 = arith.constant 0 : index
    %c0_38 = arith.constant 0 : index
    %59 = vector.load %arg13[%c0_37, %c0_38] : memref<128x256xbf16, #tpu.memory_space<vmem>>, vector<128x256xbf16>
    %cst_39 = arith.constant dense<0.000000e+00> : vector<128x256xf32>
    %60 = tpu.matmul %58, %59, %cst_39 {dimension_numbers = #tpu.dot_dimension_numbers<[1], [0], [0], [1], [0, 0, 1, 1], [], []>} : vector<128x128xbf16>, vector<128x256xbf16>, vector<128x256xf32> -> vector<128x256xf32>
    %c0_40 = arith.constant 0 : index
    %c0_41 = arith.constant 0 : index
    %61 = vector.load %arg14[%c0_40, %c0_41] : memref<1x256xf32, #tpu.memory_space<vmem>>, vector<1x256xf32>
    %62 = vector.broadcast %61 : vector<1x256xf32> to vector<128x256xf32>
    %63 = arith.addf %60, %62 : vector<128x256xf32>
    %64 = arith.truncf %63 : vector<128x256xf32> to vector<128x256xbf16>
    %65 = arith.negf %64 : vector<128x256xbf16>
    %66 = math.exp %65 : vector<128x256xbf16>
    %cst_42 = arith.constant 1.000000e+00 : bf16
    %67 = vector.broadcast %cst_42 : bf16 to vector<128x256xbf16>
    %68 = arith.addf %67, %66 : vector<128x256xbf16>
    %69 = arith.divf %67, %68 : vector<128x256xbf16>
    %70 = arith.extf %69 : vector<128x256xbf16> to vector<128x256xf32>
    %c0_43 = arith.constant 0 : index
    %c0_44 = arith.constant 0 : index
    %71 = vector.load %arg15[%c0_43, %c0_44] : memref<128x256xf32, #tpu.memory_space<vmem>>, vector<128x256xf32>
    tpu.vector_store %arg15[%c0_43, %c0_44], %70 {strides = array<i32>} : memref<128x256xf32, #tpu.memory_space<vmem>>, vector<128x256xf32>,
    return
  }
  func.func @transform_0(%arg0: i32) -> (i32, i32) {
    %c0_i32 = arith.constant 0 : i32
    %c0_i32_0 = arith.constant 0 : i32
    return %arg0, %c0_i32 : i32, i32
  }
  func.func @transform_1(%arg0: i32) -> (i32, i32) {
    %c0_i32 = arith.constant 0 : i32
    %c0_i32_0 = arith.constant 0 : i32
    return %arg0, %c0_i32 : i32, i32
  }
  func.func @transform_2(%arg0: i32) -> (i32, i32) {
    %c0_i32 = arith.constant 0 : i32
    %c0_i32_0 = arith.constant 0 : i32
    %c0_i32_1 = arith.constant 0 : i32
    return %c0_i32, %c0_i32_0 : i32, i32
  }
  func.func @transform_3(%arg0: i32) -> (i32, i32) {
    %c0_i32 = arith.constant 0 : i32
    %c0_i32_0 = arith.constant 0 : i32
    %c0_i32_1 = arith.constant 0 : i32
    return %c0_i32, %c0_i32_0 : i32, i32
  }
  func.func @transform_4(%arg0: i32) -> (i32, i32) {
    %c0_i32 = arith.constant 0 : i32
    %c0_i32_0 = arith.constant 0 : i32
    %c0_i32_1 = arith.constant 0 : i32
    return %c0_i32, %c0_i32_0 : i32, i32
  }
  func.func @transform_5(%arg0: i32) -> (i32, i32) {
    %c0_i32 = arith.constant 0 : i32
    %c0_i32_0 = arith.constant 0 : i32
    %c0_i32_1 = arith.constant 0 : i32
    return %c0_i32, %c0_i32_0 : i32, i32
  }
  func.func @transform_6(%arg0: i32) -> (i32, i32) {
    %c0_i32 = arith.constant 0 : i32
    %c0_i32_0 = arith.constant 0 : i32
    %c0_i32_1 = arith.constant 0 : i32
    return %c0_i32, %c0_i32_0 : i32, i32
  }
  func.func @transform_7(%arg0: i32) -> (i32, i32) {
    %c0_i32 = arith.constant 0 : i32
    %c0_i32_0 = arith.constant 0 : i32
    %c0_i32_1 = arith.constant 0 : i32
    return %c0_i32, %c0_i32_0 : i32, i32
  }
  func.func @transform_8(%arg0: i32) -> (i32, i32) {
    %c0_i32 = arith.constant 0 : i32
    %c0_i32_0 = arith.constant 0 : i32
    %c0_i32_1 = arith.constant 0 : i32
    return %c0_i32, %c0_i32_0 : i32, i32
  }
  func.func @transform_9(%arg0: i32) -> (i32, i32) {
    %c0_i32 = arith.constant 0 : i32
    %c0_i32_0 = arith.constant 0 : i32
    %c0_i32_1 = arith.constant 0 : i32
    return %c0_i32, %c0_i32_0 : i32, i32
  }
  func.func @transform_10(%arg0: i32) -> (i32, i32) {
    %c0_i32 = arith.constant 0 : i32
    %c0_i32_0 = arith.constant 0 : i32
    %c0_i32_1 = arith.constant 0 : i32
    return %c0_i32, %c0_i32_0 : i32, i32
  }
  func.func @transform_11(%arg0: i32) -> (i32, i32) {
    %c0_i32 = arith.constant 0 : i32
    %c0_i32_0 = arith.constant 0 : i32
    %c0_i32_1 = arith.constant 0 : i32
    return %c0_i32, %c0_i32_0 : i32, i32
  }
  func.func @transform_12(%arg0: i32) -> (i32, i32) {
    %c0_i32 = arith.constant 0 : i32
    %c0_i32_0 = arith.constant 0 : i32
    %c0_i32_1 = arith.constant 0 : i32
    return %c0_i32, %c0_i32_0 : i32, i32
  }
  func.func @transform_13(%arg0: i32) -> (i32, i32) {
    %c0_i32 = arith.constant 0 : i32
    %c0_i32_0 = arith.constant 0 : i32
    %c0_i32_1 = arith.constant 0 : i32
    return %c0_i32, %c0_i32_0 : i32, i32
  }
  func.func @transform_14(%arg0: i32) -> (i32, i32) {
    %c0_i32 = arith.constant 0 : i32
    %c0_i32_0 = arith.constant 0 : i32
    return %arg0, %c0_i32 : i32, i32
  }
  func.func @transform_15(%arg0: i32) -> (i32, i32) {
    %c0_i32 = arith.constant 0 : i32
    %c0_i32_0 = arith.constant 0 : i32
    return %arg0, %c0_i32 : i32, i32
  }
}

module attributes {stable_mosaic.version = 11 : i64} {
  func.func @vae_forward_kernel(%arg0: i32, %arg1: memref<128x256xbf16, #tpu.memory_space<vmem>>, %arg2: memref<128x128xbf16, #tpu.memory_space<vmem>>, %arg3: memref<256x128xbf16, #tpu.memory_space<vmem>>, %arg4: memref<1x128xf32, #tpu.memory_space<vmem>>, %arg5: memref<128x128xbf16, #tpu.memory_space<vmem>>, %arg6: memref<1x128xf32, #tpu.memory_space<vmem>>, %arg7: memref<128x128xbf16, #tpu.memory_space<vmem>>, %arg8: memref<1x128xf32, #tpu.memory_space<vmem>>, %arg9: memref<128x128xbf16, #tpu.memory_space<vmem>>, %arg10: memref<1x128xf32, #tpu.memory_space<vmem>>, %arg11: memref<128x128xbf16, #tpu.memory_space<vmem>>, %arg12: memref<1x128xf32, #tpu.memory_space<vmem>>, %arg13: memref<128x256xbf16, #tpu.memory_space<vmem>>, %arg14: memref<1x256xf32, #tpu.memory_space<vmem>>, %arg15: memref<128x256xf32, #tpu.memory_space<vmem>>, %arg16: memref<128x128xf32, #tpu.memory_space<vmem>>) attributes {dimension_semantics = [#tpu.dimension_semantics<parallel>], iteration_bounds = array<i64: 1>, scalar_prefetch = 0 : i64, scratch_operands = 0 : i64, tpu.core_type = #tpu.core_type<tc>, window_params = [{transform_indices = @transform_0, window_bounds = array<i64: 128, 256>}, {transform_indices = @transform_1, window_bounds = array<i64: 128, 128>}, {pipeline_mode = #tpu.pipeline_mode<synchronous>, transform_indices = @transform_2, window_bounds = array<i64: 256, 128>}, {pipeline_mode = #tpu.pipeline_mode<synchronous>, transform_indices = @transform_3, window_bounds = array<i64: 1, 128>}, {pipeline_mode = #tpu.pipeline_mode<synchronous>, transform_indices = @transform_4, window_bounds = array<i64: 128, 128>}, {pipeline_mode = #tpu.pipeline_mode<synchronous>, transform_indices = @transform_5, window_bounds = array<i64: 1, 128>}, {pipeline_mode = #tpu.pipeline_mode<synchronous>, transform_indices = @transform_6, window_bounds = array<i64: 128, 128>}, {pipeline_mode = #tpu.pipeline_mode<synchronous>, transform_indices = @transform_7, window_bounds = array<i64: 1, 128>}, {pipeline_mode = #tpu.pipeline_mode<synchronous>, transform_indices = @transform_8, window_bounds = array<i64: 128, 128>}, {pipeline_mode = #tpu.pipeline_mode<synchronous>, transform_indices = @transform_9, window_bounds = array<i64: 1, 128>}, {pipeline_mode = #tpu.pipeline_mode<synchronous>, transform_indices = @transform_10, window_bounds = array<i64: 128, 128>}, {pipeline_mode = #tpu.pipeline_mode<synchronous>, transform_indices = @transform_11, window_bounds = array<i64: 1, 128>}, {pipeline_mode = #tpu.pipeline_mode<synchronous>, transform_indices = @transform_12, window_bounds = array<i64: 128, 256>}, {pipeline_mode = #tpu.pipeline_mode<synchronous>, transform_indices = @transform_13, window_bounds = array<i64: 1, 256>}, {transform_indices = @transform_14, window_bounds = array<i64: 128, 256>}, {transform_indices = @transform_15, window_bounds = array<i64: 128, 128>}]} {
    %c0 = arith.constant 0 : index
    %c0_0 = arith.constant 0 : index
    %0 = vector.load %arg1[%c0, %c0_0] : memref<128x256xbf16, #tpu.memory_space<vmem>>, vector<128x256xbf16>
    %c0_1 = arith.constant 0 : index
    %c0_2 = arith.constant 0 : index
    %1 = vector.load %arg3[%c0_1, %c0_2] : memref<256x128xbf16, #tpu.memory_space<vmem>>, vector<256x128xbf16>
    %cst = arith.constant dense<0.000000e+00> : vector<128x128xf32>
    %2 = tpu.matmul %0, %1, %cst {dimension_numbers = #tpu.dot_dimension_numbers<[1], [0], [0], [1], [0, 0, 1, 1], [], []>} : vector<128x256xbf16>, vector<256x128xbf16>, vector<128x128xf32> -> vector<128x128xf32>
    %c0_3 = arith.constant 0 : index
    %c0_4 = arith.constant 0 : index
    %3 = vector.load %arg4[%c0_3, %c0_4] : memref<1x128xf32, #tpu.memory_space<vmem>>, vector<1x128xf32>
    %4 = vector.broadcast %3 : vector<1x128xf32> to vector<128x128xf32>
    %5 = arith.addf %2, %4 : vector<128x128xf32>
    %6 = arith.truncf %5 : vector<128x128xf32> to vector<128x128xbf16>
    %cst_5 = arith.constant 0.000000e+00 : bf16
    %7 = vector.broadcast %cst_5 : bf16 to vector<128x128xbf16>
    %8 = arith.cmpf ogt, %6, %7 : vector<128x128xbf16>
    %cst_6 = arith.constant 2.001950e-01 : bf16
    %9 = vector.broadcast %cst_6 : bf16 to vector<128x128xbf16>
    %10 = arith.mulf %9, %6 : vector<128x128xbf16>
    %11 = arith.select %8, %6, %10 : vector<128x128xi1>, vector<128x128xbf16>
    %c0_7 = arith.constant 0 : index
    %c0_8 = arith.constant 0 : index
    %12 = vector.load %arg5[%c0_7, %c0_8] : memref<128x128xbf16, #tpu.memory_space<vmem>>, vector<128x128xbf16>
    %cst_9 = arith.constant dense<0.000000e+00> : vector<128x128xf32>
    %13 = tpu.matmul %11, %12, %cst_9 {dimension_numbers = #tpu.dot_dimension_numbers<[1], [0], [0], [1], [0, 0, 1, 1], [], []>} : vector<128x128xbf16>, vector<128x128xbf16>, vector<128x128xf32> -> vector<128x128xf32>
    %c0_10 = arith.constant 0 : index
    %c0_11 = arith.constant 0 : index
    %14 = vector.load %arg6[%c0_10, %c0_11] : memref<1x128xf32, #tpu.memory_space<vmem>>, vector<1x128xf32>
    %15 = vector.broadcast %14 : vector<1x128xf32> to vector<128x128xf32>
    %16 = arith.addf %13, %15 : vector<128x128xf32>
    %17 = arith.truncf %16 : vector<128x128xf32> to vector<128x128xbf16>
    %cst_12 = arith.constant 0.000000e+00 : bf16
    %18 = vector.broadcast %cst_12 : bf16 to vector<128x128xbf16>
    %19 = arith.cmpf ogt, %17, %18 : vector<128x128xbf16>
    %cst_13 = arith.constant 2.001950e-01 : bf16
    %20 = vector.broadcast %cst_13 : bf16 to vector<128x128xbf16>
    %21 = arith.mulf %20, %17 : vector<128x128xbf16>
    %22 = arith.select %19, %17, %21 : vector<128x128xi1>, vector<128x128xbf16>
    %c0_14 = arith.constant 0 : index
    %c0_15 = arith.constant 0 : index
    %23 = vector.load %arg7[%c0_14, %c0_15] : memref<128x128xbf16, #tpu.memory_space<vmem>>, vector<128x128xbf16>
    %cst_16 = arith.constant dense<0.000000e+00> : vector<128x128xf32>
    %24 = tpu.matmul %22, %23, %cst_16 {dimension_numbers = #tpu.dot_dimension_numbers<[1], [0], [0], [1], [0, 0, 1, 1], [], []>} : vector<128x128xbf16>, vector<128x128xbf16>, vector<128x128xf32> -> vector<128x128xf32>
    %c0_17 = arith.constant 0 : index
    %c0_18 = arith.constant 0 : index
    %25 = vector.load %arg8[%c0_17, %c0_18] : memref<1x128xf32, #tpu.memory_space<vmem>>, vector<1x128xf32>
    %26 = vector.broadcast %25 : vector<1x128xf32> to vector<128x128xf32>
    %27 = arith.addf %24, %26 : vector<128x128xf32>
    %c0_19 = arith.constant 0 : index
    %c0_20 = arith.constant 0 : index
    %28 = vector.load %arg16[%c0_19, %c0_20] : memref<128x128xf32, #tpu.memory_space<vmem>>, vector<128x128xf32>
    tpu.vector_store %arg16[%c0_19, %c0_20], %27 {strides = array<i32>} : memref<128x128xf32, #tpu.memory_space<vmem>>, vector<128x128xf32>,
    %29 = arith.truncf %27 : vector<128x128xf32> to vector<128x128xbf16>
    %30 = tpu.iota {dimensions = array<i32: 1>} : vector<128x128xi32>
    %c64_i32 = arith.constant 64 : i32
    %31 = vector.broadcast %c64_i32 : i32 to vector<128x128xi32>
    %32 = arith.cmpi slt, %30, %31 : vector<128x128xi32>
    %33 = math.exp %29 : vector<128x128xbf16>
    %c0_21 = arith.constant 0 : index
    %c0_22 = arith.constant 0 : index
    %34 = vector.load %arg2[%c0_21, %c0_22] : memref<128x128xbf16, #tpu.memory_space<vmem>>, vector<128x128xbf16>
    %35 = arith.mulf %33, %34 : vector<128x128xbf16>
    %36 = arith.select %32, %29, %35 : vector<128x128xi1>, vector<128x128xbf16>
    %c0_23 = arith.constant 0 : index
    %c0_24 = arith.constant 0 : index
    %37 = vector.load %arg9[%c0_23, %c0_24] : memref<128x128xbf16, #tpu.memory_space<vmem>>, vector<128x128xbf16>
    %cst_25 = arith.constant dense<0.000000e+00> : vector<128x128xf32>
    %38 = tpu.matmul %36, %37, %cst_25 {dimension_numbers = #tpu.dot_dimension_numbers<[1], [0], [0], [1], [0, 0, 1, 1], [], []>} : vector<128x128xbf16>, vector<128x128xbf16>, vector<128x128xf32> -> vector<128x128xf32>
    %c0_26 = arith.constant 0 : index
    %c0_27 = arith.constant 0 : index
    %39 = vector.load %arg10[%c0_26, %c0_27] : memref<1x128xf32, #tpu.memory_space<vmem>>, vector<1x128xf32>
    %40 = vector.broadcast %39 : vector<1x128xf32> to vector<128x128xf32>
    %41 = arith.addf %38, %40 : vector<128x128xf32>
    %42 = arith.truncf %41 : vector<128x128xf32> to vector<128x128xbf16>
    %cst_28 = arith.constant 0.000000e+00 : bf16
    %43 = vector.broadcast %cst_28 : bf16 to vector<128x128xbf16>
    %44 = arith.cmpf ogt, %42, %43 : vector<128x128xbf16>
    %cst_29 = arith.constant 2.001950e-01 : bf16
    %45 = vector.broadcast %cst_29 : bf16 to vector<128x128xbf16>
    %46 = arith.mulf %45, %42 : vector<128x128xbf16>
    %47 = arith.select %44, %42, %46 : vector<128x128xi1>, vector<128x128xbf16>
    %c0_30 = arith.constant 0 : index
    %c0_31 = arith.constant 0 : index
    %48 = vector.load %arg11[%c0_30, %c0_31] : memref<128x128xbf16, #tpu.memory_space<vmem>>, vector<128x128xbf16>
    %cst_32 = arith.constant dense<0.000000e+00> : vector<128x128xf32>
    %49 = tpu.matmul %47, %48, %cst_32 {dimension_numbers = #tpu.dot_dimension_numbers<[1], [0], [0], [1], [0, 0, 1, 1], [], []>} : vector<128x128xbf16>, vector<128x128xbf16>, vector<128x128xf32> -> vector<128x128xf32>
    %c0_33 = arith.constant 0 : index
    %c0_34 = arith.constant 0 : index
    %50 = vector.load %arg12[%c0_33, %c0_34] : memref<1x128xf32, #tpu.memory_space<vmem>>, vector<1x128xf32>
    %51 = vector.broadcast %50 : vector<1x128xf32> to vector<128x128xf32>
    %52 = arith.addf %49, %51 : vector<128x128xf32>
    %53 = arith.truncf %52 : vector<128x128xf32> to vector<128x128xbf16>
    %cst_35 = arith.constant 0.000000e+00 : bf16
    %54 = vector.broadcast %cst_35 : bf16 to vector<128x128xbf16>
    %55 = arith.cmpf ogt, %53, %54 : vector<128x128xbf16>
    %cst_36 = arith.constant 2.001950e-01 : bf16
    %56 = vector.broadcast %cst_36 : bf16 to vector<128x128xbf16>
    %57 = arith.mulf %56, %53 : vector<128x128xbf16>
    %58 = arith.select %55, %53, %57 : vector<128x128xi1>, vector<128x128xbf16>
    %c0_37 = arith.constant 0 : index
    %c0_38 = arith.constant 0 : index
    %59 = vector.load %arg13[%c0_37, %c0_38] : memref<128x256xbf16, #tpu.memory_space<vmem>>, vector<128x256xbf16>
    %cst_39 = arith.constant dense<0.000000e+00> : vector<128x256xf32>
    %60 = tpu.matmul %58, %59, %cst_39 {dimension_numbers = #tpu.dot_dimension_numbers<[1], [0], [0], [1], [0, 0, 1, 1], [], []>} : vector<128x128xbf16>, vector<128x256xbf16>, vector<128x256xf32> -> vector<128x256xf32>
    %c0_40 = arith.constant 0 : index
    %c0_41 = arith.constant 0 : index
    %61 = vector.load %arg14[%c0_40, %c0_41] : memref<1x256xf32, #tpu.memory_space<vmem>>, vector<1x256xf32>
    %62 = vector.broadcast %61 : vector<1x256xf32> to vector<128x256xf32>
    %63 = arith.addf %60, %62 : vector<128x256xf32>
    %64 = arith.truncf %63 : vector<128x256xf32> to vector<128x256xbf16>
    %65 = arith.negf %64 : vector<128x256xbf16>
    %66 = math.exp %65 : vector<128x256xbf16>
    %cst_42 = arith.constant 1.000000e+00 : bf16
    %67 = vector.broadcast %cst_42 : bf16 to vector<128x256xbf16>
    %68 = arith.addf %67, %66 : vector<128x256xbf16>
    %69 = arith.divf %67, %68 : vector<128x256xbf16>
    %70 = arith.extf %69 : vector<128x256xbf16> to vector<128x256xf32>
    %c0_43 = arith.constant 0 : index
    %c0_44 = arith.constant 0 : index
    %71 = vector.load %arg15[%c0_43, %c0_44] : memref<128x256xf32, #tpu.memory_space<vmem>>, vector<128x256xf32>
    tpu.vector_store %arg15[%c0_43, %c0_44], %70 {strides = array<i32>} : memref<128x256xf32, #tpu.memory_space<vmem>>, vector<128x256xf32>,
    return
  }
  func.func @transform_0(%arg0: i32) -> (i32, i32) {
    %c0_i32 = arith.constant 0 : i32
    %c0_i32_0 = arith.constant 0 : i32
    return %arg0, %c0_i32 : i32, i32
  }
  func.func @transform_1(%arg0: i32) -> (i32, i32) {
    %c0_i32 = arith.constant 0 : i32
    %c0_i32_0 = arith.constant 0 : i32
    return %arg0, %c0_i32 : i32, i32
  }
  func.func @transform_2(%arg0: i32) -> (i32, i32) {
    %c0_i32 = arith.constant 0 : i32
    %c0_i32_0 = arith.constant 0 : i32
    %c0_i32_1 = arith.constant 0 : i32
    return %c0_i32, %c0_i32_0 : i32, i32
  }
  func.func @transform_3(%arg0: i32) -> (i32, i32) {
    %c0_i32 = arith.constant 0 : i32
    %c0_i32_0 = arith.constant 0 : i32
    %c0_i32_1 = arith.constant 0 : i32
    return %c0_i32, %c0_i32_0 : i32, i32
  }
  func.func @transform_4(%arg0: i32) -> (i32, i32) {
    %c0_i32 = arith.constant 0 : i32
    %c0_i32_0 = arith.constant 0 : i32
    %c0_i32_1 = arith.constant 0 : i32
    return %c0_i32, %c0_i32_0 : i32, i32
  }
  func.func @transform_5(%arg0: i32) -> (i32, i32) {
    %c0_i32 = arith.constant 0 : i32
    %c0_i32_0 = arith.constant 0 : i32
    %c0_i32_1 = arith.constant 0 : i32
    return %c0_i32, %c0_i32_0 : i32, i32
  }
  func.func @transform_6(%arg0: i32) -> (i32, i32) {
    %c0_i32 = arith.constant 0 : i32
    %c0_i32_0 = arith.constant 0 : i32
    %c0_i32_1 = arith.constant 0 : i32
    return %c0_i32, %c0_i32_0 : i32, i32
  }
  func.func @transform_7(%arg0: i32) -> (i32, i32) {
    %c0_i32 = arith.constant 0 : i32
    %c0_i32_0 = arith.constant 0 : i32
    %c0_i32_1 = arith.constant 0 : i32
    return %c0_i32, %c0_i32_0 : i32, i32
  }
  func.func @transform_8(%arg0: i32) -> (i32, i32) {
    %c0_i32 = arith.constant 0 : i32
    %c0_i32_0 = arith.constant 0 : i32
    %c0_i32_1 = arith.constant 0 : i32
    return %c0_i32, %c0_i32_0 : i32, i32
  }
  func.func @transform_9(%arg0: i32) -> (i32, i32) {
    %c0_i32 = arith.constant 0 : i32
    %c0_i32_0 = arith.constant 0 : i32
    %c0_i32_1 = arith.constant 0 : i32
    return %c0_i32, %c0_i32_0 : i32, i32
  }
  func.func @transform_10(%arg0: i32) -> (i32, i32) {
    %c0_i32 = arith.constant 0 : i32
    %c0_i32_0 = arith.constant 0 : i32
    %c0_i32_1 = arith.constant 0 : i32
    return %c0_i32, %c0_i32_0 : i32, i32
  }
  func.func @transform_11(%arg0: i32) -> (i32, i32) {
    %c0_i32 = arith.constant 0 : i32
    %c0_i32_0 = arith.constant 0 : i32
    %c0_i32_1 = arith.constant 0 : i32
    return %c0_i32, %c0_i32_0 : i32, i32
  }
  func.func @transform_12(%arg0: i32) -> (i32, i32) {
    %c0_i32 = arith.constant 0 : i32
    %c0_i32_0 = arith.constant 0 : i32
    %c0_i32_1 = arith.constant 0 : i32
    return %c0_i32, %c0_i32_0 : i32, i32
  }
  func.func @transform_13(%arg0: i32) -> (i32, i32) {
    %c0_i32 = arith.constant 0 : i32
    %c0_i32_0 = arith.constant 0 : i32
    %c0_i32_1 = arith.constant 0 : i32
    return %c0_i32, %c0_i32_0 : i32, i32
  }
  func.func @transform_14(%arg0: i32) -> (i32, i32) {
    %c0_i32 = arith.constant 0 : i32
    %c0_i32_0 = arith.constant 0 : i32
    return %arg0, %c0_i32 : i32, i32
  }
  func.func @transform_15(%arg0: i32) -> (i32, i32) {
    %c0_i32 = arith.constant 0 : i32
    %c0_i32_0 = arith.constant 0 : i32
    return %arg0, %c0_i32 : i32, i32
  }
}

</mosaic_0001>

<bundles_post_ra>
// kernel: tpu_custom_call.1
= control target key start
LH: loop header
LB: loop body
LE: loop exit
PB: predicated region body
PF: predicated region fallthrough
CT: control target
= control target key end

     0   :  { %21 = vsyncpa [#allocation3], 0  ;;  %s3743_s0 = inlined_call_operand.hbm [shape: bf16[128,256], index: 0, kind: input, shape index: {}]   ;;  %s3744_s1 = inlined_call_operand.hbm [shape: bf16[128,128], index: 1, kind: input, shape index: {}]   ;;  %s3745_s2 = inlined_call_operand.hbm [shape: bf16[256,128], index: 2, kind: input, shape index: {}]   ;;  %s3746_s3 = inlined_call_operand.vmem [shape: f32[1,128], index: 3, kind: input, shape index: {}]   ;;  %s3747_s4 = inlined_call_operand.hbm [shape: bf16[128,128], index: 4, kind: input, shape index: {}]   ;;  %s3748_s5 = inlined_call_operand.vmem [shape: f32[1,128], index: 5, kind: input, shape index: {}]   ;;  %s3749_s6 = inlined_call_operand.hbm [shape: bf16[128,128], index: 6, kind: input, shape index: {}]   ;;  %s3750_s7 = inlined_call_operand.vmem [shape: f32[1,128], index: 7, kind: input, shape index: {}]   ;;  %s3751_s8 = inlined_call_operand.hbm [shape: bf16[128,128], index: 8, kind: input, shape index: {}]   ;;  %s3752_s9 = inlined_call_operand.vmem [shape: f32[1,128], index: 9, kind: input, shape index: {}]   ;;  %s3753_s10 = inlined_call_operand.hbm [shape: bf16[128,128], index: 10, kind: input, shape index: {}]   ;;  %s3754_s11 = inlined_call_operand.vmem [shape: f32[1,128], index: 11, kind: input, shape index: {}]   ;;  %s3755_s12 = inlined_call_operand.hbm [shape: bf16[128,256], index: 12, kind: input, shape index: {}]   ;;  %s3756_s13 = inlined_call_operand.vmem [shape: f32[1,256], index: 13, kind: input, shape index: {}]   ;;  %s3757_s14 = inlined_call_operand.hbm [shape: f32[128,256], index: 14, kind: output, shape index: {0}]   ;;  %s3758_s15 = inlined_call_operand.hbm [shape: f32[128,128], index: 15, kind: output, shape index: {1}]  }
   0x1   :  { %22 = vsyncpa [#allocation6], 0 }
   0x2   :  { %23 = vsyncpa [#allocation9], 0 }
   0x3   :  { %24 = vsyncpa [#allocation12], 0 }
   0x4   :  { %25 = vsyncpa [#allocation15], 0 }
   0x5   :  { %26 = vsyncpa [#allocation4], 0  ;;  %s45_s20 = sshll.u32 %s3744_s1, 4  ;;  %s46_s20 = int_to_ptr.hbm [resolvable:$true] %s45_s20 }
   0x6   :  { %27 = vsyncpa [#allocation18], 0  ;;  %s3373_s21 = smov [#allocation5]   ;;  %s73_s25 = sshll.u32 %s3747_s4, 4  ;;  %s74_s25 = int_to_ptr.hbm [resolvable:$true] %s73_s25 }
   0x7   :  { %s47_s22 = sshll.u32 %s3373_s21, 4  ;;  %s3374_s26 = smov 64   ;;  %s48_s22 = int_to_ptr.vmem [resolvable:$true] %s47_s22 }
   0x8   :  { %s3375_s27 = smov 4   ;;  %s3376_s28 = smov [#allocation8]  }
   0x9   :  { %53 = dma.hbm_to_vmem [thread:$0]  %s46_s20, 1024, %s48_s22, [#allocation6], %s3374_s26, %s3374_s26, %s3375_s27  }
   0xa   :  { %s75_s29 = sshll.u32 %s3376_s28, 4  ;;  %s103_s16 = sshll.u32 %s3751_s8, 4  ;;  %s76_s29 = int_to_ptr.vmem [resolvable:$true] %s75_s29  ;;  %s104_s16 = int_to_ptr.hbm [resolvable:$true] %s103_s16 }
   0xb   :  { %81 = dma.hbm_to_vmem [thread:$0]  %s74_s25, 1024, %s76_s29, [#allocation9], %s3374_s26, %s3374_s26, %s3375_s27  }
   0xc   :  { %s32_s18 = sshll.u32 %s3743_s0, 4  ;;  %s3377_s19 = smov [#allocation11]   ;;  %s33_s18 = int_to_ptr.hbm [resolvable:$true] %s32_s18 }
   0xd   :  { %s105_s21 = sshll.u32 %s3377_s19, 4  ;;  %s3378_s20 = smov [#allocation2]   ;;  %s106_s21 = int_to_ptr.vmem [resolvable:$true] %s105_s21 }
   0xe   :  { %111 = dma.hbm_to_vmem [thread:$0]  %s104_s16, 1024, %s106_s21, [#allocation12], %s3374_s26, %s3374_s26, %s3375_s27  }
   0xf   :  { %s34_s8 = sshll.u32 %s3378_s20, 4  ;;  %s3379_s22 = smov 128   ;;  %s35_s8 = int_to_ptr.vmem [resolvable:$true] %s34_s8 }
  0x10   :  { %s3380_s23 = smov 8   ;;  %s58_s0 = sshll.u32 %s3745_s2, 4  ;;  %s59_s0 = int_to_ptr.hbm [resolvable:$true] %s58_s0 }
  0x11   :  { %40 = dma.hbm_to_vmem [thread:$0]  %s33_s18, 2048, %s35_s8, [#allocation3], %s3379_s22, %s3379_s22, %s3380_s23  }
  0x12   :  { %s3381_s28 = smov [#allocation7]   ;;  %s88_s16 = sshll.u32 %s3749_s6, 4  ;;  %s89_s16 = int_to_ptr.hbm [resolvable:$true] %s88_s16 }
  0x13   :  { %s60_s29 = sshll.u32 %s3381_s28, 4  ;;  %s3382_s4 = smov [#allocation10]   ;;  %s61_s29 = int_to_ptr.vmem [resolvable:$true] %s60_s29 }
  0x14   :  { %66 = dma.hbm_to_vmem [thread:$0]  %s59_s0, 2048, %s61_s29, [#allocation6], %s3374_s26, %s3374_s26, %s3375_s27  }
  0x15   :  { %s90_s17 = sshll.u32 %s3382_s4, 4  ;;  %s118_s21 = sshll.u32 %s3753_s10, 4  ;;  %s91_s17 = int_to_ptr.vmem [resolvable:$true] %s90_s17  ;;  %s119_s21 = int_to_ptr.hbm [resolvable:$true] %s118_s21 }
  0x16   :  { %96 = dma.hbm_to_vmem [thread:$0]  %s89_s16, 1024, %s91_s17, [#allocation9], %s3374_s26, %s3374_s26, %s3375_s27  }
  0x17   :  { %s133_s6 = sshll.u32 %s3755_s12, 4  ;;  %s3383_s8 = smov [#allocation13]   ;;  %s134_s6 = int_to_ptr.hbm [resolvable:$true] %s133_s6 }
  0x18   :  { %s120_s24 = sshll.u32 %s3383_s8, 4  ;;  %s3384_s25 = smov [#allocation14]   ;;  %s121_s24 = int_to_ptr.vmem [resolvable:$true] %s120_s24 }
  0x19   :  { %126 = dma.hbm_to_vmem [thread:$0]  %s119_s21, 1024, %s121_s24, [#allocation12], %s3374_s26, %s3374_s26, %s3375_s27  }
  0x1a   :  { %s135_s10 = sshll.u32 %s3384_s25, 4  ;;  %s136_s10 = int_to_ptr.vmem [resolvable:$true] %s135_s10 }
  0x1b   :  { %141 = dma.hbm_to_vmem [thread:$0]  %s134_s6, 2048, %s136_s10, [#allocation15], %s3379_s22, %s3379_s22, %s3380_s23  }
  0x1c   :  { %3359 = dma.done.wait [#allocation3], 2048  }
  0x1d   :  { %3360 = vsyncadd [#allocation3], 4294965248 }
  0x1e   :  { %3361 = dma.done.wait [#allocation6], 3072  }
  0x1f   :  { %3362 = vsyncadd [#allocation6], 4294964224 }
  0x20   :  { %3363 = dma.done.wait [#allocation9], 2048  }
  0x21   :  { %3364 = vsyncadd [#allocation9], 4294965248 }
  0x22   :  { %3365 = dma.done.wait [#allocation12], 2048  }
  0x23   :  { %3366 = vsyncadd [#allocation12], 4294965248 }
  0x24   :  { %3367 = dma.done.wait [#allocation15], 2048  }
  0x25   :  { %3368 = vsyncadd [#allocation15], 4294965248  ;;  %v2841_v0 = vld [vmem:[#allocation7 + $0x38] sm:$0xff]  ;;  %v2840_v2 = vld [vmem:[#allocation7 + $0x30] sm:$0xff]  ;;  %s2476_s17 = sshll.u32 %s3758_s15, 4  ;;  %s3387_s15 = smov [#allocation16]   ;;  %s2477_s17 = int_to_ptr.hbm [resolvable:$true] %s2476_s17 }
  0x26   :  { %v2849_v1 = vld [vmem:[#allocation7 + $0x78] sm:$0xff]  ;;  %405 = vmatpush.bf16.msra.mxu0 %v2841_v0  ;;  %v2848_v3 = vld [vmem:[#allocation7 + $0x70] sm:$0xff]  ;;  %v2839_v4 = vld [vmem:[#allocation7 + $0x28] sm:$0xff]  ;;  %s2463_s19 = sshll.u32 %s3757_s14, 4  ;;  %s3388_s21 = smov 256   ;;  %s2464_s19 = int_to_ptr.hbm [resolvable:$true] %s2463_s19 }
  0x27   :  { %454 = vmatpush.bf16.msra.mxu1 %v2849_v1  ;;  %v2847_v5 = vld [vmem:[#allocation7 + $0x68] sm:$0xff]  ;;  %v2838_v6 = vld [vmem:[#allocation7 + $0x20] sm:$0xff]  ;;  %v2837_v8 = vld [vmem:[#allocation7 + $0x18] sm:$0xff]  ;;  %s3389_s2 = smov 16  }
  0x28   :  { %v2846_v7 = vld [vmem:[#allocation7 + $0x60] sm:$0xff]  ;;  %v2845_v9 = vld [vmem:[#allocation7 + $0x58] sm:$0xff]  ;;  %v2836_v10 = vld [vmem:[#allocation7 + $0x10] sm:$0xff] }
  0x29   :  { %v2844_v11 = vld [vmem:[#allocation7 + $0x50] sm:$0xff]  ;;  %v2835_v12 = vld [vmem:[#allocation7 + $0x8] sm:$0xff]  ;;  %v2834_v14 = vld [vmem:[#allocation7] sm:$0xff] }
  0x2a   :  { %406 = vmatpush.bf16.msra.mxu0 %v2840_v2  ;;  %v2843_v13 = vld [vmem:[#allocation7 + $0x48] sm:$0xff]  ;;  %v2842_v15 = vld [vmem:[#allocation7 + $0x40] sm:$0xff]  ;;  %v2508_v22 = vld [vmem:[#allocation2 + $0x10] sm:$0xf] }
  0x2b   :  { %455 = vmatpush.bf16.msra.mxu1 %v2848_v3  ;;  %v2500_v16 = vld [vmem:[#allocation2] sm:$0xf]  ;;  %v2819_v17 = vld [vmem:[#allocation2 + $0x4] sm:$0xf0]  ;;  %v2818_v18 = vld [vmem:[#allocation2 + $0x4] sm:$0xf] }
  0x2c   :  { %v2502_v19 = vld [vmem:[#allocation2 + $0x8] sm:$0xf0]  ;;  %v2501_v20 = vor.u32 %v2819_v17, %v2500_v16  ;;  %v2821_v23 = vld [vmem:[#allocation2 + $0x14] sm:$0xf0]  ;;  %v2820_v24 = vld [vmem:[#allocation2 + $0x14] sm:$0xf] }
  0x2d   :  { %v2505_v21 = vor.u32 %v2818_v18, %v2502_v19  ;;  %v2510_v25 = vld [vmem:[#allocation2 + $0x18] sm:$0xf0]  ;;  %v2509_v26 = vor.u32 %v2821_v23, %v2508_v22  ;;  %v2516_v28 = vld [vmem:[#allocation2 + $0x20] sm:$0xf]  ;;  %v2823_v29 = vld [vmem:[#allocation2 + $0x24] sm:$0xf0] }
  0x2e   :  { %407 = vmatpush.bf16.msra.mxu0 %v2839_v4  ;;  %v2513_v27 = vor.u32 %v2820_v24, %v2510_v25  ;;  %v2822_v30 = vld [vmem:[#allocation2 + $0x24] sm:$0xf]  ;;  %v2518_v31 = vld [vmem:[#allocation2 + $0x28] sm:$0xf0]  ;;  %v2517_v32 = vor.u32 %v2823_v29, %v2516_v28  ;;  %v2524_v34 = vld [vmem:[#allocation2 + $0x30] sm:$0xf] }
  0x2f   :  { %456 = vmatpush.bf16.msra.mxu1 %v2847_v5  ;;  %v2521_v33 = vor.u32 %v2822_v30, %v2518_v31  ;;  %v2825_v35 = vld [vmem:[#allocation2 + $0x34] sm:$0xf0]  ;;  %v2824_v36 = vld [vmem:[#allocation2 + $0x34] sm:$0xf]  ;;  %v2526_v37 = vld [vmem:[#allocation2 + $0x38] sm:$0xf0] }
  0x30   :  { %v2525_v38 = vor.u32 %v2825_v35, %v2524_v34  ;;  %v2529_v39 = vor.u32 %v2824_v36, %v2526_v37  ;;  %v2532_v40 = vld [vmem:[#allocation2 + $0x40] sm:$0xf]  ;;  %v2827_v41 = vld [vmem:[#allocation2 + $0x44] sm:$0xf0]  ;;  %v2826_v42 = vld [vmem:[#allocation2 + $0x44] sm:$0xf] }
  0x31   :  { %v2534_v43 = vld [vmem:[#allocation2 + $0x48] sm:$0xf0]  ;;  %v2533_v44 = vor.u32 %v2827_v41, %v2532_v40  ;;  %v2540_v46 = vld [vmem:[#allocation2 + $0x50] sm:$0xf]  ;;  %v2829_v47 = vld [vmem:[#allocation2 + $0x54] sm:$0xf0] }
  0x32   :  { %408 = vmatpush.bf16.msra.mxu0 %v2838_v6  ;;  %v2537_v45 = vor.u32 %v2826_v42, %v2534_v43  ;;  %v2828_v48 = vld [vmem:[#allocation2 + $0x54] sm:$0xf]  ;;  %v2542_v49 = vld [vmem:[#allocation2 + $0x58] sm:$0xf0]  ;;  %v2541_v50 = vor.u32 %v2829_v47, %v2540_v46  ;;  %v2548_v54 = vld [vmem:[#allocation2 + $0x60] sm:$0xf] }
  0x33   :  { %457 = vmatpush.bf16.msra.mxu1 %v2846_v7  ;;  %v2545_v51 = vor.u32 %v2828_v48, %v2542_v49  ;;  %v2857_v52 = vld [vmem:[#allocation8 + $0x38] sm:$0xff]  ;;  %v2856_v53 = vld [vmem:[#allocation8 + $0x30] sm:$0xff]  ;;  %v2831_v55 = vld [vmem:[#allocation2 + $0x64] sm:$0xf0] }
  0x34   :  { %731 = vmatpush.bf16.msra.mxu2 %v2857_v52  ;;  %v2830_v56 = vld [vmem:[#allocation2 + $0x64] sm:$0xf]  ;;  %v2550_v57 = vld [vmem:[#allocation2 + $0x68] sm:$0xf0]  ;;  %v2549_v58 = vor.u32 %v2831_v55, %v2548_v54  ;;  %v2853_v62 = vld [vmem:[#allocation8 + $0x18] sm:$0xff] }
  0x35   :  { %v2553_v59 = vor.u32 %v2830_v56, %v2550_v57  ;;  %v2855_v60 = vld [vmem:[#allocation8 + $0x28] sm:$0xff]  ;;  %v2854_v61 = vld [vmem:[#allocation8 + $0x20] sm:$0xff]  ;;  %v2556_v63 = vld [vmem:[#allocation2 + $0x70] sm:$0xf] }
  0x36   :  { %409 = vmatpush.bf16.msra.mxu0 %v2837_v8  ;;  %v2833_v0 = vld [vmem:[#allocation2 + $0x74] sm:$0xf0]  ;;  %v2832_v1 = vld [vmem:[#allocation2 + $0x74] sm:$0xf]  ;;  %v2558_v2 = vld [vmem:[#allocation2 + $0x78] sm:$0xf0] }
  0x37   :  { %458 = vmatpush.bf16.msra.mxu1 %v2845_v9  ;;  %v2852_v3 = vld [vmem:[#allocation8 + $0x10] sm:$0xff]  ;;  %v2557_v4 = vor.u32 %v2833_v0, %v2556_v63  ;;  %v2561_v5 = vor.u32 %v2832_v1, %v2558_v2  ;;  %v2851_v6 = vld [vmem:[#allocation8 + $0x8] sm:$0xff]  ;;  %v2850_v7 = vld [vmem:[#allocation8] sm:$0xff] }
  0x38   :  { %732 = vmatpush.bf16.msra.mxu2 %v2856_v53  ;;  %v3521_v8 = vld [vmem:[%s3746_s3] ss:$0 sm:$0xff] }
  0x3a   :  { %410 = vmatpush.bf16.msra.mxu0 %v2836_v10 }
  0x3b   :  { %459 = vmatpush.bf16.msra.mxu1 %v2844_v11 }
  0x3c   :  { %733 = vmatpush.bf16.msra.mxu2 %v2855_v60 }
  0x3e   :  { %411 = vmatpush.bf16.msra.mxu0 %v2835_v12 }
  0x3f   :  { %460 = vmatpush.bf16.msra.mxu1 %v2843_v13 }
  0x40   :  { %734 = vmatpush.bf16.msra.mxu2 %v2854_v61 }
  0x42   :  { %412 = vmatpush.bf16.msra.mxu0 %v2834_v14 }
  0x43   :  { %461 = vmatpush.bf16.msra.mxu1 %v2842_v15 }
  0x44   :  { %735 = vmatpush.bf16.msra.mxu2 %v2853_v62 }
  0x45   :  { %413 = vmatmul.bf16.vlgmr.msra.gmra.mxu0 %v2501_v20 }
  0x46   :  { %462 = vmatmul.bf16.vlgmr.msra.gmra.mxu1 %v2505_v21 }
  0x48   :  { %736 = vmatpush.bf16.msra.mxu2 %v2852_v3 }
  0x4c   :  { %737 = vmatpush.bf16.msra.mxu2 %v2851_v6 }
  0x50   :  { %738 = vmatpush.bf16.msra.mxu2 %v2850_v7 }
  0x55   :  { %418 = vmatmul.bf16.gmra.mxu0 %v2509_v26 }
  0x56   :  { %467 = vmatmul.bf16.gmra.mxu1 %v2513_v27 }
  0x65   :  { %423 = vmatmul.bf16.gmra.mxu0 %v2517_v32 }
  0x66   :  { %472 = vmatmul.bf16.gmra.mxu1 %v2521_v33 }
  0x75   :  { %428 = vmatmul.bf16.gmra.mxu0 %v2525_v38 }
  0x76   :  { %477 = vmatmul.bf16.gmra.mxu1 %v2529_v39 }
  0x85   :  { %433 = vmatmul.bf16.gmra.mxu0 %v2533_v44 }
  0x86   :  { %482 = vmatmul.bf16.gmra.mxu1 %v2537_v45 }
  0x95   :  { %438 = vmatmul.bf16.gmra.mxu0 %v2541_v50 }
  0x96   :  { %487 = vmatmul.bf16.gmra.mxu1 %v2545_v51 }
  0xa5   :  { %443 = vmatmul.bf16.gmra.mxu0 %v2549_v58 }
  0xa6   :  { %492 = vmatmul.bf16.gmra.mxu1 %v2553_v59 }
  0xb5   :  { %448 = vmatmul.bf16.gmra.mxu0 %v2557_v4 }
  0xb6   :  { %497 = vmatmul.bf16.gmra.mxu1 %v2561_v5 }
  0xc2   :  { %v414_v9 = vpop.f32.mrf.mxu0 }
  0xc3   :  { %v463_v10 = vpop.f32.mrf.mxu1  ;;  %v415_v11 = vadd.f32 %v3521_v8, %v414_v9 }
  0xc5   :  { %v464_v12 = vadd.f32 %v463_v10, %v415_v11 }
  0xc7   :  { %v503_v13 = vpack.c.bf16 %v464_v12, %v464_v12 }
  0xc9   :  { %v519_v14 = vunpack.c.l.bf16 %v503_v13 }
  0xca   :  { %v416_v15 = vpop.f32.mrf.mxu0 }
  0xcb   :  { %v465_v16 = vpop.f32.mrf.mxu1  ;;  %v417_v17 = vadd.f32 %v3521_v8, %v416_v15  ;;  %v551_v18 = vmul.f32 0.20019531, %v519_v14  ;;  %vm535_vm0 = vcmp.gt.f32.partialorder %v519_v14, 0.0 }
  0xcc   :  { %vm583_vm2 = vmpackc.low %vm535_vm0, %vm535_vm0 }
  0xcd   :  { %v466_v19 = vadd.f32 %v465_v16, %v417_v17  ;;  %v567_v21 = vpack.c.bf16 %v551_v18, %v551_v18 }
  0xcf   :  { %v504_v20 = vpack.c.bf16 %v466_v19, %v466_v19  ;;  %v599_v29 = vsel %vm583_vm2, %v503_v13, %v567_v21 }
  0xd0   :  { %v651_v32 = vunpack.c.l.b16 %v599_v29 }
  0xd1   :  { %v520_v22 = vunpack.c.l.bf16 %v504_v20 }
  0xd2   :  { %v419_v23 = vpop.f32.mrf.mxu0 }
  0xd3   :  { %v468_v24 = vpop.f32.mrf.mxu1  ;;  %v552_v25 = vmul.f32 0.20019531, %v520_v22  ;;  %v420_v26 = vadd.f32 %v3521_v8, %v419_v23  ;;  %vm536_vm1 = vcmp.gt.f32.partialorder %v520_v22, 0.0 }
  0xd4   :  { %vm584_vm3 = vmpackc.low %vm536_vm1, %vm536_vm1 }
  0xd5   :  { %v568_v27 = vpack.c.bf16 %v552_v25, %v552_v25  ;;  %v469_v28 = vadd.f32 %v468_v24, %v420_v26 }
  0xd7   :  { %v505_v30 = vpack.c.bf16 %v469_v28, %v469_v28  ;;  %v600_v31 = vsel %vm584_vm3, %v504_v20, %v568_v27 }
  0xd8   :  { %v652_v33 = vunpack.c.l.b16 %v600_v31 }
  0xd9   :  { %v521_v34 = vunpack.c.l.bf16 %v505_v30 }
  0xda   :  { %v421_v35 = vpop.f32.mrf.mxu0  ;;  %v667_v37 = vpack.c.b16 %v652_v33, %v651_v32 }
  0xdb   :  { %v470_v36 = vpop.f32.mrf.mxu1  ;;  %v422_v38 = vadd.f32 %v3521_v8, %v421_v35  ;;  %v553_v39 = vmul.f32 0.20019531, %v521_v34  ;;  %vm537_vm4 = vcmp.gt.f32.partialorder %v521_v34, 0.0 }
  0xdc   :  { %739 = vmatmul.bf16.vlgmr.msra.gmra.mxu2 %v667_v37  ;;  %vm585_vm6 = vmpackc.low %vm537_vm4, %vm537_vm4 }
  0xdd   :  { %v471_v40 = vadd.f32 %v470_v36, %v422_v38  ;;  %v569_v42 = vpack.c.bf16 %v553_v39, %v553_v39 }
  0xdf   :  { %v506_v41 = vpack.c.bf16 %v471_v40, %v471_v40  ;;  %v601_v50 = vsel %vm585_vm6, %v505_v30, %v569_v42 }
  0xe0   :  { %v653_v53 = vunpack.c.l.b16 %v601_v50 }
  0xe1   :  { %v522_v43 = vunpack.c.l.bf16 %v506_v41 }
  0xe2   :  { %v424_v44 = vpop.f32.mrf.mxu0 }
  0xe3   :  { %v473_v45 = vpop.f32.mrf.mxu1  ;;  %v554_v46 = vmul.f32 0.20019531, %v522_v43  ;;  %v425_v47 = vadd.f32 %v3521_v8, %v424_v44  ;;  %vm538_vm5 = vcmp.gt.f32.partialorder %v522_v43, 0.0 }
  0xe4   :  { %vm586_vm7 = vmpackc.low %vm538_vm5, %vm538_vm5 }
  0xe5   :  { %v570_v48 = vpack.c.bf16 %v554_v46, %v554_v46  ;;  %v474_v49 = vadd.f32 %v473_v45, %v425_v47 }
  0xe7   :  { %v507_v51 = vpack.c.bf16 %v474_v49, %v474_v49  ;;  %v602_v52 = vsel %vm586_vm7, %v506_v41, %v570_v48 }
  0xe8   :  { %v654_v54 = vunpack.c.l.b16 %v602_v52 }
  0xe9   :  { %v523_v55 = vunpack.c.l.bf16 %v507_v51 }
  0xea   :  { %v426_v56 = vpop.f32.mrf.mxu0  ;;  %v668_v58 = vpack.c.b16 %v654_v54, %v653_v53 }
  0xeb   :  { %v475_v57 = vpop.f32.mrf.mxu1  ;;  %v427_v59 = vadd.f32 %v3521_v8, %v426_v56  ;;  %v555_v60 = vmul.f32 0.20019531, %v523_v55  ;;  %vm539_vm8 = vcmp.gt.f32.partialorder %v523_v55, 0.0 }
  0xec   :  { %744 = vmatmul.bf16.gmra.mxu2 %v668_v58  ;;  %vm587_vm10 = vmpackc.low %vm539_vm8, %vm539_vm8 }
  0xed   :  { %v476_v61 = vadd.f32 %v475_v57, %v427_v59  ;;  %v571_v63 = vpack.c.bf16 %v555_v60, %v555_v60 }
  0xef   :  { %v508_v62 = vpack.c.bf16 %v476_v61, %v476_v61  ;;  %v603_v7 = vsel %vm587_vm10, %v507_v51, %v571_v63 }
  0xf0   :  { %v655_v11 = vunpack.c.l.b16 %v603_v7 }
  0xf1   :  { %v524_v0 = vunpack.c.l.bf16 %v508_v62 }
  0xf2   :  { %v429_v1 = vpop.f32.mrf.mxu0 }
  0xf3   :  { %v478_v2 = vpop.f32.mrf.mxu1  ;;  %v556_v3 = vmul.f32 0.20019531, %v524_v0  ;;  %v430_v4 = vadd.f32 %v3521_v8, %v429_v1  ;;  %vm540_vm9 = vcmp.gt.f32.partialorder %v524_v0, 0.0 }
  0xf4   :  { %vm588_vm11 = vmpackc.low %vm540_vm9, %vm540_vm9 }
  0xf5   :  { %v572_v5 = vpack.c.bf16 %v556_v3, %v556_v3  ;;  %v479_v6 = vadd.f32 %v478_v2, %v430_v4 }
  0xf7   :  { %v509_v9 = vpack.c.bf16 %v479_v6, %v479_v6  ;;  %v604_v10 = vsel %vm588_vm11, %v508_v62, %v572_v5 }
  0xf8   :  { %v656_v12 = vunpack.c.l.b16 %v604_v10 }
  0xf9   :  { %v525_v13 = vunpack.c.l.bf16 %v509_v9 }
  0xfa   :  { %v431_v14 = vpop.f32.mrf.mxu0  ;;  %v669_v16 = vpack.c.b16 %v656_v12, %v655_v11 }
  0xfb   :  { %v480_v15 = vpop.f32.mrf.mxu1  ;;  %v432_v17 = vadd.f32 %v3521_v8, %v431_v14  ;;  %v557_v18 = vmul.f32 0.20019531, %v525_v13  ;;  %vm541_vm12 = vcmp.gt.f32.partialorder %v525_v13, 0.0 }
  0xfc   :  { %749 = vmatmul.bf16.gmra.mxu2 %v669_v16  ;;  %vm589_vm14 = vmpackc.low %vm541_vm12, %vm541_vm12 }
  0xfd   :  { %v481_v19 = vadd.f32 %v480_v15, %v432_v17  ;;  %v573_v21 = vpack.c.bf16 %v557_v18, %v557_v18  ;;  %v2865_v18 = vld [vmem:[#allocation10 + $0x38] sm:$0xff] }
  0xfe   :  { %1008 = vmatpush.bf16.msra.mxu3 %v2865_v18 }
  0xff   :  { %v510_v20 = vpack.c.bf16 %v481_v19, %v481_v19  ;;  %v605_v29 = vsel %vm589_vm14, %v509_v9, %v573_v21  ;;  %v2864_v21 = vld [vmem:[#allocation10 + $0x30] sm:$0xff] }
 0x100   :  { %v657_v32 = vunpack.c.l.b16 %v605_v29 }
 0x101   :  { %v526_v22 = vunpack.c.l.bf16 %v510_v20 }
 0x102   :  { %v434_v23 = vpop.f32.mrf.mxu0  ;;  %1009 = vmatpush.bf16.msra.mxu3 %v2864_v21 }
 0x103   :  { %v483_v24 = vpop.f32.mrf.mxu1  ;;  %v558_v25 = vmul.f32 0.20019531, %v526_v22  ;;  %v435_v26 = vadd.f32 %v3521_v8, %v434_v23  ;;  %vm542_vm13 = vcmp.gt.f32.partialorder %v526_v22, 0.0 }
 0x104   :  { %vm590_vm15 = vmpackc.low %vm542_vm13, %vm542_vm13 }
 0x105   :  { %v574_v27 = vpack.c.bf16 %v558_v25, %v558_v25  ;;  %v484_v28 = vadd.f32 %v483_v24, %v435_v26 }
 0x107   :  { %v511_v30 = vpack.c.bf16 %v484_v28, %v484_v28  ;;  %v606_v31 = vsel %vm590_vm15, %v510_v20, %v574_v27 }
 0x108   :  { %v658_v33 = vunpack.c.l.b16 %v606_v31 }
 0x109   :  { %v527_v34 = vunpack.c.l.bf16 %v511_v30 }
 0x10a   :  { %v436_v35 = vpop.f32.mrf.mxu0  ;;  %v670_v37 = vpack.c.b16 %v658_v33, %v657_v32 }
 0x10b   :  { %v485_v36 = vpop.f32.mrf.mxu1  ;;  %v437_v38 = vadd.f32 %v3521_v8, %v436_v35  ;;  %v559_v39 = vmul.f32 0.20019531, %v527_v34  ;;  %vm543_vm0 = vcmp.gt.f32.partialorder %v527_v34, 0.0 }
 0x10c   :  { %754 = vmatmul.bf16.gmra.mxu2 %v670_v37  ;;  %vm591_vm2 = vmpackc.low %vm543_vm0, %vm543_vm0 }
 0x10d   :  { %v486_v40 = vadd.f32 %v485_v36, %v437_v38  ;;  %v575_v42 = vpack.c.bf16 %v559_v39, %v559_v39 }
 0x10f   :  { %v512_v41 = vpack.c.bf16 %v486_v40, %v486_v40  ;;  %v607_v50 = vsel %vm591_vm2, %v511_v30, %v575_v42 }
 0x110   :  { %v659_v53 = vunpack.c.l.b16 %v607_v50 }
 0x111   :  { %v528_v43 = vunpack.c.l.bf16 %v512_v41 }
 0x112   :  { %v439_v44 = vpop.f32.mrf.mxu0 }
 0x113   :  { %v488_v45 = vpop.f32.mrf.mxu1  ;;  %vm544_vm1 = vcmp.gt.f32.partialorder %v528_v43, 0.0  ;;  %v560_v46 = vmul.f32 0.20019531, %v528_v43  ;;  %v440_v47 = vadd.f32 %v3521_v8, %v439_v44  ;;  %v2863_v43 = vld [vmem:[#allocation10 + $0x28] sm:$0xff] }
 0x114   :  { %vm592_vm3 = vmpackc.low %vm544_vm1, %vm544_vm1  ;;  %1010 = vmatpush.bf16.msra.mxu3 %v2863_v43 }
 0x115   :  { %v576_v48 = vpack.c.bf16 %v560_v46, %v560_v46  ;;  %v489_v49 = vadd.f32 %v488_v45, %v440_v47  ;;  %v2862_v47 = vld [vmem:[#allocation10 + $0x20] sm:$0xff] }
 0x117   :  { %v513_v51 = vpack.c.bf16 %v489_v49, %v489_v49  ;;  %v608_v52 = vsel %vm592_vm3, %v512_v41, %v576_v48 }
 0x118   :  { %v660_v54 = vunpack.c.l.b16 %v608_v52  ;;  %1011 = vmatpush.bf16.msra.mxu3 %v2862_v47 }
 0x119   :  { %v529_v55 = vunpack.c.l.bf16 %v513_v51 }
 0x11a   :  { %v441_v56 = vpop.f32.mrf.mxu0  ;;  %v671_v58 = vpack.c.b16 %v660_v54, %v659_v53 }
 0x11b   :  { %v490_v57 = vpop.f32.mrf.mxu1  ;;  %v442_v59 = vadd.f32 %v3521_v8, %v441_v56  ;;  %v561_v60 = vmul.f32 0.20019531, %v529_v55  ;;  %vm545_vm4 = vcmp.gt.f32.partialorder %v529_v55, 0.0  ;;  %v2860_v55 = vld [vmem:[#allocation10 + $0x10] sm:$0xff]  ;;  %v2859_v56 = vld [vmem:[#allocation10 + $0x8] sm:$0xff] }
 0x11c   :  { %759 = vmatmul.bf16.gmra.mxu2 %v671_v58  ;;  %vm593_vm6 = vmpackc.low %vm545_vm4, %vm545_vm4  ;;  %v3542_v58 = vld [vmem:[%s3748_s5] ss:$0 sm:$0xff] }
 0x11d   :  { %v491_v61 = vadd.f32 %v490_v57, %v442_v59  ;;  %v577_v63 = vpack.c.bf16 %v561_v60, %v561_v60  ;;  %v2858_v57 = vld [vmem:[#allocation10] sm:$0xff] }
 0x11f   :  { %v514_v62 = vpack.c.bf16 %v491_v61, %v491_v61  ;;  %v609_v7 = vsel %vm593_vm6, %v513_v51, %v577_v63  ;;  %v2861_v51 = vld [vmem:[#allocation10 + $0x18] sm:$0xff] }
 0x120   :  { %v661_v11 = vunpack.c.l.b16 %v609_v7  ;;  %1012 = vmatpush.bf16.msra.mxu3 %v2861_v51 }
 0x121   :  { %v530_v0 = vunpack.c.l.bf16 %v514_v62 }
 0x122   :  { %v444_v1 = vpop.f32.mrf.mxu0 }
 0x123   :  { %v493_v2 = vpop.f32.mrf.mxu1  ;;  %vm546_vm5 = vcmp.gt.f32.partialorder %v530_v0, 0.0  ;;  %v562_v3 = vmul.f32 0.20019531, %v530_v0  ;;  %v445_v4 = vadd.f32 %v3521_v8, %v444_v1 }
 0x124   :  { %vm594_vm7 = vmpackc.low %vm546_vm5, %vm546_vm5  ;;  %1013 = vmatpush.bf16.msra.mxu3 %v2860_v55 }
 0x125   :  { %v578_v5 = vpack.c.bf16 %v562_v3, %v562_v3  ;;  %v494_v6 = vadd.f32 %v493_v2, %v445_v4 }
 0x127   :  { %v515_v9 = vpack.c.bf16 %v494_v6, %v494_v6  ;;  %v610_v10 = vsel %vm594_vm7, %v514_v62, %v578_v5 }
 0x128   :  { %v662_v12 = vunpack.c.l.b16 %v610_v10  ;;  %1014 = vmatpush.bf16.msra.mxu3 %v2859_v56 }
 0x129   :  { %v531_v13 = vunpack.c.l.bf16 %v515_v9 }
 0x12a   :  { %v446_v14 = vpop.f32.mrf.mxu0  ;;  %v672_v16 = vpack.c.b16 %v662_v12, %v661_v11 }
 0x12b   :  { %v495_v15 = vpop.f32.mrf.mxu1  ;;  %v447_v17 = vadd.f32 %v3521_v8, %v446_v14  ;;  %v563_v19 = vmul.f32 0.20019531, %v531_v13  ;;  %vm547_vm8 = vcmp.gt.f32.partialorder %v531_v13, 0.0 }
 0x12c   :  { %764 = vmatmul.bf16.gmra.mxu2 %v672_v16  ;;  %vm595_vm10 = vmpackc.low %vm547_vm8, %vm547_vm8  ;;  %1015 = vmatpush.bf16.msra.mxu3 %v2858_v57 }
 0x12d   :  { %v496_v20 = vadd.f32 %v495_v15, %v447_v17  ;;  %v579_v23 = vpack.c.bf16 %v563_v19, %v563_v19 }
 0x12f   :  { %v516_v22 = vpack.c.bf16 %v496_v20, %v496_v20  ;;  %v611_v31 = vsel %vm595_vm10, %v515_v9, %v579_v23 }
 0x130   :  { %v663_v34 = vunpack.c.l.b16 %v611_v31 }
 0x131   :  { %v532_v24 = vunpack.c.l.bf16 %v516_v22 }
 0x132   :  { %v449_v25 = vpop.f32.mrf.mxu0 }
 0x133   :  { %v498_v26 = vpop.f32.mrf.mxu1  ;;  %vm548_vm9 = vcmp.gt.f32.partialorder %v532_v24, 0.0  ;;  %v564_v27 = vmul.f32 0.20019531, %v532_v24  ;;  %v450_v28 = vadd.f32 %v3521_v8, %v449_v25 }
 0x134   :  { %vm596_vm11 = vmpackc.low %vm548_vm9, %vm548_vm9 }
 0x135   :  { %v580_v29 = vpack.c.bf16 %v564_v27, %v564_v27  ;;  %v499_v30 = vadd.f32 %v498_v26, %v450_v28 }
 0x137   :  { %v517_v32 = vpack.c.bf16 %v499_v30, %v499_v30  ;;  %v612_v33 = vsel %vm596_vm11, %v516_v22, %v580_v29 }
 0x138   :  { %v664_v35 = vunpack.c.l.b16 %v612_v33 }
 0x139   :  { %v533_v36 = vunpack.c.l.bf16 %v517_v32 }
 0x13a   :  { %v451_v37 = vpop.f32.mrf.mxu0  ;;  %v673_v38 = vpack.c.b16 %v664_v35, %v663_v34 }
 0x13b   :  { %v452_v39 = vadd.f32 %v3521_v8, %v451_v37  ;;  %v500_v40 = vpop.f32.mrf.mxu1  ;;  %v565_v41 = vmul.f32 0.20019531, %v533_v36  ;;  %vm549_vm12 = vcmp.gt.f32.partialorder %v533_v36, 0.0  ;;  %v2873_v37 = vld [vmem:[#allocation11 + $0x38] sm:$0xff] }
 0x13c   :  { %769 = vmatmul.bf16.gmra.mxu2 %v673_v38  ;;  %vm597_vm14 = vmpackc.low %vm549_vm12, %vm549_vm12  ;;  %1369 = vmatpush.bf16.msrb.mxu0 %v2873_v37  ;;  %v2869_v37 = vld [vmem:[#allocation11 + $0x18] sm:$0xff] }
 0x13d   :  { %v501_v42 = vadd.f32 %v500_v40, %v452_v39  ;;  %v581_v45 = vpack.c.bf16 %v565_v41, %v565_v41 }
 0x13f   :  { %v518_v44 = vpack.c.bf16 %v501_v42, %v501_v42  ;;  %v613_v50 = vsel %vm597_vm14, %v517_v32, %v581_v45 }
 0x140   :  { %v665_v52 = vunpack.c.l.b16 %v613_v50 }
 0x141   :  { %v534_v46 = vunpack.c.l.bf16 %v518_v44 }
 0x143   :  { %vm550_vm13 = vcmp.gt.f32.partialorder %v534_v46, 0.0  ;;  %v566_v48 = vmul.f32 0.20019531, %v534_v46 }
 0x144   :  { %vm598_vm15 = vmpackc.low %vm550_vm13, %vm550_vm13 }
 0x145   :  { %v582_v49 = vpack.c.bf16 %v566_v48, %v566_v48 }
 0x147   :  { %v614_v8 = vsel %vm598_vm15, %v518_v44, %v582_v49 }
 0x148   :  { %v666_v53 = vunpack.c.l.b16 %v614_v8 }
 0x14a   :  { %v674_v54 = vpack.c.b16 %v666_v53, %v665_v52 }
 0x14c   :  { %774 = vmatmul.bf16.gmra.mxu2 %v674_v54  ;;  %v2872_v54 = vld [vmem:[#allocation11 + $0x30] sm:$0xff] }
 0x14d   :  { %1370 = vmatpush.bf16.msrb.mxu0 %v2872_v54 }
 0x15f   :  { %v740_v59 = vpop.f32.mrf.mxu2 }
 0x160   :  { %v741_v60 = vadd.f32 %v3542_v58, %v740_v59 }
 0x162   :  { %v780_v61 = vpack.c.bf16 %v741_v60, %v741_v60 }
 0x164   :  { %v796_v62 = vunpack.c.l.bf16 %v780_v61 }
 0x166   :  { %v828_v0 = vmul.f32 0.20019531, %v796_v62  ;;  %vm812_vm0 = vcmp.gt.f32.partialorder %v796_v62, 0.0 }
 0x167   :  { %v742_v63 = vpop.f32.mrf.mxu2  ;;  %vm860_vm2 = vmpackc.low %vm812_vm0, %vm812_vm0 }
 0x168   :  { %v743_v1 = vadd.f32 %v3542_v58, %v742_v63  ;;  %v844_v3 = vpack.c.bf16 %v828_v0, %v828_v0 }
 0x16a   :  { %v781_v2 = vpack.c.bf16 %v743_v1, %v743_v1  ;;  %v876_v10 = vsel %vm860_vm2, %v780_v61, %v844_v3 }
 0x16b   :  { %v928_v13 = vunpack.c.l.b16 %v876_v10  ;;  %v2871_v10 = vld [vmem:[#allocation11 + $0x28] sm:$0xff] }
 0x16c   :  { %v797_v4 = vunpack.c.l.bf16 %v781_v2  ;;  %1371 = vmatpush.bf16.msrb.mxu0 %v2871_v10 }
 0x16e   :  { %v829_v5 = vmul.f32 0.20019531, %v797_v4  ;;  %vm813_vm1 = vcmp.gt.f32.partialorder %v797_v4, 0.0 }
 0x16f   :  { %v745_v6 = vpop.f32.mrf.mxu2  ;;  %vm861_vm3 = vmpackc.low %vm813_vm1, %vm813_vm1 }
 0x170   :  { %v845_v7 = vpack.c.bf16 %v829_v5, %v829_v5  ;;  %v746_v9 = vadd.f32 %v3542_v58, %v745_v6 }
 0x172   :  { %v782_v11 = vpack.c.bf16 %v746_v9, %v746_v9  ;;  %v877_v12 = vsel %vm861_vm3, %v781_v2, %v845_v7 }
 0x173   :  { %v929_v14 = vunpack.c.l.b16 %v877_v12 }
 0x174   :  { %v798_v15 = vunpack.c.l.bf16 %v782_v11 }
 0x175   :  { %v944_v16 = vpack.c.b16 %v929_v14, %v928_v13 }
 0x176   :  { %v830_v18 = vmul.f32 0.20019531, %v798_v15  ;;  %vm814_vm4 = vcmp.gt.f32.partialorder %v798_v15, 0.0 }
 0x177   :  { %v747_v17 = vpop.f32.mrf.mxu2  ;;  %1016 = vmatmul.bf16.vlgmr.msra.gmra.mxu3 %v944_v16  ;;  %vm862_vm6 = vmpackc.low %vm814_vm4, %vm814_vm4 }
 0x178   :  { %v748_v19 = vadd.f32 %v3542_v58, %v747_v17  ;;  %v846_v21 = vpack.c.bf16 %v830_v18, %v830_v18 }
 0x17a   :  { %v783_v20 = vpack.c.bf16 %v748_v19, %v748_v19  ;;  %v878_v27 = vsel %vm862_vm6, %v782_v11, %v846_v21 }
 0x17b   :  { %v930_v30 = vunpack.c.l.b16 %v878_v27 }
 0x17c   :  { %v799_v22 = vunpack.c.l.bf16 %v783_v20 }
 0x17e   :  { %v831_v23 = vmul.f32 0.20019531, %v799_v22  ;;  %vm815_vm5 = vcmp.gt.f32.partialorder %v799_v22, 0.0 }
 0x17f   :  { %v750_v24 = vpop.f32.mrf.mxu2  ;;  %vm863_vm7 = vmpackc.low %vm815_vm5, %vm815_vm5 }
 0x180   :  { %v847_v25 = vpack.c.bf16 %v831_v23, %v831_v23  ;;  %v751_v26 = vadd.f32 %v3542_v58, %v750_v24 }
 0x182   :  { %v784_v28 = vpack.c.bf16 %v751_v26, %v751_v26  ;;  %v879_v29 = vsel %vm863_vm7, %v783_v20, %v847_v25 }
 0x183   :  { %v931_v31 = vunpack.c.l.b16 %v879_v29 }
 0x184   :  { %v800_v32 = vunpack.c.l.bf16 %v784_v28 }
 0x185   :  { %v945_v33 = vpack.c.b16 %v931_v31, %v930_v30 }
 0x186   :  { %v832_v35 = vmul.f32 0.20019531, %v800_v32  ;;  %vm816_vm8 = vcmp.gt.f32.partialorder %v800_v32, 0.0 }
 0x187   :  { %v752_v34 = vpop.f32.mrf.mxu2  ;;  %1021 = vmatmul.bf16.gmra.mxu3 %v945_v33  ;;  %vm864_vm10 = vmpackc.low %vm816_vm8, %vm816_vm8 }
 0x188   :  { %v753_v36 = vadd.f32 %v3542_v58, %v752_v34  ;;  %v848_v39 = vpack.c.bf16 %v832_v35, %v832_v35 }
 0x18a   :  { %v785_v38 = vpack.c.bf16 %v753_v36, %v753_v36  ;;  %v880_v45 = vsel %vm864_vm10, %v784_v28, %v848_v39  ;;  %v2870_v28 = vld [vmem:[#allocation11 + $0x20] sm:$0xff] }
 0x18b   :  { %v932_v48 = vunpack.c.l.b16 %v880_v45  ;;  %1372 = vmatpush.bf16.msrb.mxu0 %v2870_v28  ;;  %v2868_v45 = vld [vmem:[#allocation11 + $0x10] sm:$0xff]  ;;  %v1089_v28 = vlaneseq }
 0x18c   :  { %v801_v40 = vunpack.c.l.bf16 %v785_v38 }
 0x18e   :  { %v833_v41 = vmul.f32 0.20019531, %v801_v40  ;;  %vm817_vm9 = vcmp.gt.f32.partialorder %v801_v40, 0.0 }
 0x18f   :  { %v755_v42 = vpop.f32.mrf.mxu2  ;;  %vm865_vm11 = vmpackc.low %vm817_vm9, %vm817_vm9  ;;  %1373 = vmatpush.bf16.msrb.mxu0 %v2869_v37 }
 0x190   :  { %v849_v43 = vpack.c.bf16 %v833_v41, %v833_v41  ;;  %v756_v44 = vadd.f32 %v3542_v58, %v755_v42 }
 0x192   :  { %v786_v46 = vpack.c.bf16 %v756_v44, %v756_v44  ;;  %v881_v47 = vsel %vm865_vm11, %v785_v38, %v849_v43 }
 0x193   :  { %v933_v49 = vunpack.c.l.b16 %v881_v47  ;;  %1374 = vmatpush.bf16.msrb.mxu0 %v2868_v45 }
 0x194   :  { %v802_v50 = vunpack.c.l.bf16 %v786_v46 }
 0x195   :  { %v946_v51 = vpack.c.b16 %v933_v49, %v932_v48 }
 0x196   :  { %v834_v52 = vmul.f32 0.20019531, %v802_v50  ;;  %vm818_vm12 = vcmp.gt.f32.partialorder %v802_v50, 0.0 }
 0x197   :  { %v757_v8 = vpop.f32.mrf.mxu2  ;;  %1026 = vmatmul.bf16.gmra.mxu3 %v946_v51  ;;  %vm866_vm14 = vmpackc.low %vm818_vm12, %vm818_vm12 }
 0x198   :  { %v758_v53 = vadd.f32 %v3542_v58, %v757_v8  ;;  %v850_v56 = vpack.c.bf16 %v834_v52, %v834_v52 }
 0x19a   :  { %v787_v55 = vpack.c.bf16 %v758_v53, %v758_v53  ;;  %v882_v63 = vsel %vm866_vm14, %v786_v46, %v850_v56 }
 0x19b   :  { %v934_v2 = vunpack.c.l.b16 %v882_v63 }
 0x19c   :  { %v803_v57 = vunpack.c.l.bf16 %v787_v55 }
 0x19e   :  { %v835_v59 = vmul.f32 0.20019531, %v803_v57  ;;  %vm819_vm13 = vcmp.gt.f32.partialorder %v803_v57, 0.0 }
 0x19f   :  { %v760_v60 = vpop.f32.mrf.mxu2  ;;  %vm867_vm15 = vmpackc.low %vm819_vm13, %vm819_vm13 }
 0x1a0   :  { %v851_v61 = vpack.c.bf16 %v835_v59, %v835_v59  ;;  %v761_v62 = vadd.f32 %v3542_v58, %v760_v60 }
 0x1a2   :  { %v788_v0 = vpack.c.bf16 %v761_v62, %v761_v62  ;;  %v883_v1 = vsel %vm867_vm15, %v787_v55, %v851_v61 }
 0x1a3   :  { %v935_v3 = vunpack.c.l.b16 %v883_v1 }
 0x1a4   :  { %v804_v4 = vunpack.c.l.bf16 %v788_v0 }
 0x1a5   :  { %v947_v5 = vpack.c.b16 %v935_v3, %v934_v2 }
 0x1a6   :  { %v836_v7 = vmul.f32 0.20019531, %v804_v4  ;;  %vm820_vm0 = vcmp.gt.f32.partialorder %v804_v4, 0.0 }
 0x1a7   :  { %v762_v6 = vpop.f32.mrf.mxu2  ;;  %1031 = vmatmul.bf16.gmra.mxu3 %v947_v5  ;;  %vm868_vm2 = vmpackc.low %vm820_vm0, %vm820_vm0 }
 0x1a8   :  { %v763_v9 = vadd.f32 %v3542_v58, %v762_v6  ;;  %v852_v12 = vpack.c.bf16 %v836_v7, %v836_v7 }
 0x1aa   :  { %v789_v11 = vpack.c.bf16 %v763_v9, %v763_v9  ;;  %v884_v18 = vsel %vm868_vm2, %v788_v0, %v852_v12  ;;  %v2867_v12 = vld [vmem:[#allocation11 + $0x8] sm:$0xff] }
 0x1ab   :  { %v936_v21 = vunpack.c.l.b16 %v884_v18  ;;  %1375 = vmatpush.bf16.msrb.mxu0 %v2867_v12 }
 0x1ac   :  { %v805_v13 = vunpack.c.l.bf16 %v789_v11 }
 0x1ae   :  { %vm821_vm1 = vcmp.gt.f32.partialorder %v805_v13, 0.0  ;;  %v837_v14 = vmul.f32 0.20019531, %v805_v13 }
 0x1af   :  { %v765_v15 = vpop.f32.mrf.mxu2  ;;  %vm869_vm3 = vmpackc.low %vm821_vm1, %vm821_vm1 }
 0x1b0   :  { %v853_v16 = vpack.c.bf16 %v837_v14, %v837_v14  ;;  %v766_v17 = vadd.f32 %v3542_v58, %v765_v15  ;;  %v2866_v14 = vld [vmem:[#allocation11] sm:$0xff] }
 0x1b1   :  { %1376 = vmatpush.bf16.msrb.mxu0 %v2866_v14 }
 0x1b2   :  { %v790_v19 = vpack.c.bf16 %v766_v17, %v766_v17  ;;  %v885_v20 = vsel %vm869_vm3, %v789_v11, %v853_v16 }
 0x1b3   :  { %v937_v22 = vunpack.c.l.b16 %v885_v20 }
 0x1b4   :  { %v806_v23 = vunpack.c.l.bf16 %v790_v19 }
 0x1b5   :  { %v948_v24 = vpack.c.b16 %v937_v22, %v936_v21 }
 0x1b6   :  { %v838_v26 = vmul.f32 0.20019531, %v806_v23  ;;  %vm822_vm4 = vcmp.gt.f32.partialorder %v806_v23, 0.0 }
 0x1b7   :  { %v767_v25 = vpop.f32.mrf.mxu2  ;;  %1036 = vmatmul.bf16.gmra.mxu3 %v948_v24  ;;  %vm870_vm6 = vmpackc.low %vm822_vm4, %vm822_vm4  ;;  %v2899_v24 = vld [vmem:[#allocation5] sm:$0xff]  }
 0x1b8   :  { %v768_v27 = vadd.f32 %v3542_v58, %v767_v25  ;;  %v854_v30 = vpack.c.bf16 %v838_v26, %v838_v26 }
 0x1ba   :  { %v791_v29 = vpack.c.bf16 %v768_v27, %v768_v27  ;;  %v886_v36 = vsel %vm870_vm6, %v790_v19, %v854_v30  ;;  %v2900_v30 = vunpack.c.l.bf16 %v2899_v24 }
 0x1bb   :  { %v938_v40 = vunpack.c.l.b16 %v886_v36 }
 0x1bc   :  { %v807_v31 = vunpack.c.l.bf16 %v791_v29 }
 0x1be   :  { %vm823_vm5 = vcmp.gt.f32.partialorder %v807_v31, 0.0  ;;  %v839_v32 = vmul.f32 0.20019531, %v807_v31 }
 0x1bf   :  { %v770_v33 = vpop.f32.mrf.mxu2  ;;  %vm871_vm7 = vmpackc.low %vm823_vm5, %vm823_vm5 }
 0x1c0   :  { %v855_v34 = vpack.c.bf16 %v839_v32, %v839_v32  ;;  %v771_v35 = vadd.f32 %v3542_v58, %v770_v33  ;;  %v1090_v33 = vand.u32 127, %v1089_v28 }
 0x1c2   :  { %v792_v38 = vpack.c.bf16 %v771_v35, %v771_v35  ;;  %v887_v39 = vsel %vm871_vm7, %v791_v29, %v855_v34  ;;  %vm1091_vm0 = vcmp.lt.s32.totalorder %v1090_v33, 64 }
 0x1c3   :  { %v939_v41 = vunpack.c.l.b16 %v887_v39  ;;  %v2901_v39 = vunpack.c.h.bf16 %v2899_v24  ;;  %vm3569_vm1 = vmpackc.low %vm1091_vm0, %vm1091_vm0 }
 0x1c4   :  { %v808_v42 = vunpack.c.l.bf16 %v792_v38 }
 0x1c5   :  { %v949_v43 = vpack.c.b16 %v939_v41, %v938_v40 }
 0x1c6   :  { %v840_v46 = vmul.f32 0.20019531, %v808_v42  ;;  %vm824_vm8 = vcmp.gt.f32.partialorder %v808_v42, 0.0 }
 0x1c7   :  { %v772_v44 = vpop.f32.mrf.mxu2  ;;  %1041 = vmatmul.bf16.gmra.mxu3 %v949_v43  ;;  %vm872_vm10 = vmpackc.low %vm824_vm8, %vm824_vm8 }
 0x1c8   :  { %v773_v47 = vadd.f32 %v3542_v58, %v772_v44  ;;  %v856_v49 = vpack.c.bf16 %v840_v46, %v840_v46 }
 0x1ca   :  { %v793_v48 = vpack.c.bf16 %v773_v47, %v773_v47  ;;  %v888_v54 = vsel %vm872_vm10, %v792_v38, %v856_v49 }
 0x1cb   :  { %v940_v57 = vunpack.c.l.b16 %v888_v54 }
 0x1cc   :  { %v809_v50 = vunpack.c.l.bf16 %v793_v48 }
 0x1ce   :  { %vm825_vm9 = vcmp.gt.f32.partialorder %v809_v50, 0.0  ;;  %v841_v51 = vmul.f32 0.20019531, %v809_v50 }
 0x1cf   :  { %v775_v8 = vpop.f32.mrf.mxu2  ;;  %vm873_vm11 = vmpackc.low %vm825_vm9, %vm825_vm9 }
 0x1d0   :  { %v857_v52 = vpack.c.bf16 %v841_v51, %v841_v51  ;;  %v776_v53 = vadd.f32 %v3542_v58, %v775_v8  ;;  %v2930_v8 = vld [vmem:[#allocation5 + $0x8] sm:$0xff]  }
 0x1d2   :  { %v794_v55 = vpack.c.bf16 %v776_v53, %v776_v53  ;;  %v889_v56 = vsel %vm873_vm11, %v793_v48, %v857_v52 }
 0x1d3   :  { %v941_v59 = vunpack.c.l.b16 %v889_v56 }
 0x1d4   :  { %v810_v60 = vunpack.c.l.bf16 %v794_v55 }
 0x1d5   :  { %v950_v61 = vpack.c.b16 %v941_v59, %v940_v57 }
 0x1d6   :  { %v842_v63 = vmul.f32 0.20019531, %v810_v60  ;;  %vm826_vm12 = vcmp.gt.f32.partialorder %v810_v60, 0.0  ;;  %v2904_v60 = vunpack.c.l.bf16 %v2930_v8 }
 0x1d7   :  { %v777_v62 = vpop.f32.mrf.mxu2  ;;  %1046 = vmatmul.bf16.gmra.mxu3 %v950_v61  ;;  %vm874_vm14 = vmpackc.low %vm826_vm12, %vm826_vm12 }
 0x1d8   :  { %v778_v0 = vadd.f32 %v3542_v58, %v777_v62  ;;  %v858_v2 = vpack.c.bf16 %v842_v63, %v842_v63  ;;  %v3563_v58 = vld [vmem:[%s3750_s7] ss:$0 sm:$0xff] }
 0x1da   :  { %v795_v1 = vpack.c.bf16 %v778_v0, %v778_v0  ;;  %v890_v6 = vsel %vm874_vm14, %v794_v55, %v858_v2 }
 0x1db   :  { %v942_v9 = vunpack.c.l.b16 %v890_v6 }
 0x1dc   :  { %v811_v3 = vunpack.c.l.bf16 %v795_v1 }
 0x1de   :  { %vm827_vm13 = vcmp.gt.f32.partialorder %v811_v3, 0.0  ;;  %v843_v4 = vmul.f32 0.20019531, %v811_v3 }
 0x1df   :  { %vm875_vm15 = vmpackc.low %vm827_vm13, %vm827_vm13 }
 0x1e0   :  { %v859_v5 = vpack.c.bf16 %v843_v4, %v843_v4 }
 0x1e2   :  { %v891_v7 = vsel %vm875_vm15, %v795_v1, %v859_v5  ;;  %v2905_v5 = vunpack.c.h.bf16 %v2930_v8 }
 0x1e3   :  { %v943_v10 = vunpack.c.l.b16 %v891_v7 }
 0x1e5   :  { %v951_v11 = vpack.c.b16 %v943_v10, %v942_v9  ;;  %v2881_v10 = vld [vmem:[#allocation13 + $0x38] sm:$0xff] }
 0x1e6   :  { %1646 = vmatpush.bf16.msrb.mxu1 %v2881_v10 }
 0x1e7   :  { %1051 = vmatmul.bf16.gmra.mxu3 %v951_v11 }
 0x1fa   :  { %v1017_v13 = vpop.f32.mrf.mxu3 }
 0x1fb   :  { %v1018_v15 = vadd.f32 %v3563_v58, %v1017_v13 }
 0x1fd   :  { %1057 = vst [vmem:[#allocation17] sm:$0xff] %v1018_v15  ;;  %v1073_v16 = vpack.c.bf16 %v1018_v15, %v1018_v15 }
 0x1ff   :  { %v1092_v17 = vunpack.c.l.bf16 %v1073_v16 }
 0x201   :  { %v1108_v18 = vmul.f32 1.442695, %v1092_v17 }
 0x202   :  { %v1019_v19 = vpop.f32.mrf.mxu3 }
 0x203   :  { %2959 = vpow2.f32 %v1108_v18  ;;  %v1020_v20 = vadd.f32 %v3563_v58, %v1019_v19  ;;  %v2931_v18 = vld [vmem:[#allocation5 + $0x10] sm:$0xff]  }
 0x205   :  { %1058 = vst [vmem:[#allocation17 + $0x8] sm:$0xff] %v1020_v20  ;;  %v1074_v21 = vpack.c.bf16 %v1020_v20, %v1020_v20 }
 0x207   :  { %v1093_v22 = vunpack.c.l.bf16 %v1074_v21 }
 0x209   :  { %v2960_v23 = vpop.eup %2959  ;;  %v1110_v25 = vmul.f32 1.442695, %v1093_v22 }
 0x20a   :  { %v1140_v26 = vpack.c.bf16 %v2960_v23, %v2960_v23  ;;  %v1022_v27 = vpop.f32.mrf.mxu3 }
 0x20b   :  { %2961 = vpow2.f32 %v1110_v25  ;;  %v1023_v29 = vadd.f32 %v3563_v58, %v1022_v27 }
 0x20c   :  { %v1172_v31 = vunpack.c.l.bf16 %v1140_v26  ;;  %v2908_v26 = vunpack.c.l.bf16 %v2931_v18 }
 0x20d   :  { %1059 = vst [vmem:[#allocation17 + $0x10] sm:$0xff] %v1023_v29  ;;  %v1075_v32 = vpack.c.bf16 %v1023_v29, %v1023_v29 }
 0x20e   :  { %v1204_v35 = vmul.f32 %v2900_v30, %v1172_v31 }
 0x20f   :  { %v1094_v34 = vunpack.c.l.bf16 %v1075_v32 }
 0x210   :  { %v1220_v42 = vpack.c.bf16 %v1204_v35, %v1204_v35  ;;  %v2909_v35 = vunpack.c.h.bf16 %v2931_v18 }
 0x211   :  { %v2962_v36 = vpop.eup %2961  ;;  %v1112_v37 = vmul.f32 1.442695, %v1094_v34 }
 0x212   :  { %v1141_v38 = vpack.c.bf16 %v2962_v36, %v2962_v36  ;;  %v1024_v40 = vpop.f32.mrf.mxu3  ;;  %v1237_v49 = vsel %vm3569_vm1, %v1073_v16, %v1220_v42 }
 0x213   :  { %2963 = vpow2.f32 %v1112_v37  ;;  %v1025_v41 = vadd.f32 %v3563_v58, %v1024_v40  ;;  %v1289_v56 = vunpack.c.l.b16 %v1237_v49 }
 0x214   :  { %v1173_v43 = vunpack.c.l.bf16 %v1141_v38 }
 0x215   :  { %1060 = vst [vmem:[#allocation17 + $0x18] sm:$0xff] %v1025_v41  ;;  %v1076_v44 = vpack.c.bf16 %v1025_v41, %v1025_v41 }
 0x216   :  { %v1205_v46 = vmul.f32 %v2901_v39, %v1173_v43 }
 0x217   :  { %v1095_v47 = vunpack.c.l.bf16 %v1076_v44 }
 0x218   :  { %v1221_v48 = vpack.c.bf16 %v1205_v46, %v1205_v46 }
 0x219   :  { %v2964_v50 = vpop.eup %2963  ;;  %v1114_v51 = vmul.f32 1.442695, %v1095_v47 }
 0x21a   :  { %v1142_v52 = vpack.c.bf16 %v2964_v50, %v2964_v50  ;;  %v1027_v53 = vpop.f32.mrf.mxu3  ;;  %v1238_v54 = vsel %vm3569_vm1, %v1074_v21, %v1221_v48  ;;  %v2932_v48 = vld [vmem:[#allocation5 + $0x18] sm:$0xff]  }
 0x21b   :  { %2965 = vpow2.f32 %v1114_v51  ;;  %v1028_v55 = vadd.f32 %v3563_v58, %v1027_v53  ;;  %v1290_v57 = vunpack.c.l.b16 %v1238_v54 }
 0x21c   :  { %v1174_v59 = vunpack.c.l.bf16 %v1142_v52 }
 0x21d   :  { %1061 = vst [vmem:[#allocation17 + $0x20] sm:$0xff] %v1028_v55  ;;  %v1077_v61 = vpack.c.bf16 %v1028_v55, %v1028_v55  ;;  %v1305_v62 = vpack.c.b16 %v1290_v57, %v1289_v56  ;;  %v2912_v55 = vunpack.c.l.bf16 %v2932_v48 }
 0x21e   :  { %v1206_v0 = vmul.f32 %v2904_v60, %v1174_v59 }
 0x21f   :  { %v1096_v63 = vunpack.c.l.bf16 %v1077_v61  ;;  %1377 = vmatmul.bf16.vlgmr.msrb.gmra.mxu0 %v1305_v62 }
 0x220   :  { %v1222_v9 = vpack.c.bf16 %v1206_v0, %v1206_v0 }
 0x221   :  { %v2966_v1 = vpop.eup %2965  ;;  %v1116_v2 = vmul.f32 1.442695, %v1096_v63 }
 0x222   :  { %v1143_v3 = vpack.c.bf16 %v2966_v1, %v2966_v1  ;;  %v1029_v4 = vpop.f32.mrf.mxu3  ;;  %v1239_v15 = vsel %vm3569_vm1, %v1075_v32, %v1222_v9  ;;  %v2913_v1 = vunpack.c.h.bf16 %v2932_v48 }
 0x223   :  { %2967 = vpow2.f32 %v1116_v2  ;;  %v1030_v6 = vadd.f32 %v3563_v58, %v1029_v4  ;;  %v1291_v23 = vunpack.c.l.b16 %v1239_v15 }
 0x224   :  { %v1175_v7 = vunpack.c.l.bf16 %v1143_v3 }
 0x225   :  { %1062 = vst [vmem:[#allocation17 + $0x28] sm:$0xff] %v1030_v6  ;;  %v1078_v11 = vpack.c.bf16 %v1030_v6, %v1030_v6 }
 0x226   :  { %v1207_v12 = vmul.f32 %v2905_v5, %v1175_v7 }
 0x227   :  { %v1097_v13 = vunpack.c.l.bf16 %v1078_v11 }
 0x228   :  { %v1223_v14 = vpack.c.bf16 %v1207_v12, %v1207_v12 }
 0x229   :  { %v2968_v16 = vpop.eup %2967  ;;  %v1118_v17 = vmul.f32 1.442695, %v1097_v13  ;;  %v2933_v13 = vld [vmem:[#allocation5 + $0x20] sm:$0xff]  }
 0x22a   :  { %v1144_v19 = vpack.c.bf16 %v2968_v16, %v2968_v16  ;;  %v1032_v20 = vpop.f32.mrf.mxu3  ;;  %v1240_v21 = vsel %vm3569_vm1, %v1076_v44, %v1223_v14  ;;  %v2880_v44 = vld [vmem:[#allocation13 + $0x30] sm:$0xff] }
 0x22b   :  { %2969 = vpow2.f32 %v1118_v17  ;;  %v1033_v22 = vadd.f32 %v3563_v58, %v1032_v20  ;;  %v1292_v24 = vunpack.c.l.b16 %v1240_v21  ;;  %1647 = vmatpush.bf16.msrb.mxu1 %v2880_v44  ;;  %v2916_v21 = vunpack.c.l.bf16 %v2933_v13 }
 0x22c   :  { %v1176_v25 = vunpack.c.l.bf16 %v1144_v19 }
 0x22d   :  { %1063 = vst [vmem:[#allocation17 + $0x30] sm:$0xff] %v1033_v22  ;;  %v1079_v27 = vpack.c.bf16 %v1033_v22, %v1033_v22  ;;  %v1306_v28 = vpack.c.b16 %v1292_v24, %v1291_v23 }
 0x22e   :  { %v1208_v30 = vmul.f32 %v2908_v26, %v1176_v25 }
 0x22f   :  { %v1098_v29 = vunpack.c.l.bf16 %v1079_v27  ;;  %1382 = vmatmul.bf16.gmra.mxu0 %v1306_v28 }
 0x230   :  { %v1224_v38 = vpack.c.bf16 %v1208_v30, %v1208_v30  ;;  %v2917_v30 = vunpack.c.h.bf16 %v2933_v13 }
 0x231   :  { %v2970_v31 = vpop.eup %2969  ;;  %v1120_v32 = vmul.f32 1.442695, %v1098_v29 }
 0x232   :  { %v1145_v33 = vpack.c.bf16 %v2970_v31, %v2970_v31  ;;  %v1034_v34 = vpop.f32.mrf.mxu3  ;;  %v1241_v43 = vsel %vm3569_vm1, %v1077_v61, %v1224_v38 }
 0x233   :  { %2971 = vpow2.f32 %v1120_v32  ;;  %v1035_v36 = vadd.f32 %v3563_v58, %v1034_v34  ;;  %v1293_v52 = vunpack.c.l.b16 %v1241_v43 }
 0x234   :  { %v1177_v37 = vunpack.c.l.bf16 %v1145_v33 }
 0x235   :  { %1064 = vst [vmem:[#allocation17 + $0x38] sm:$0xff] %v1035_v36  ;;  %v1080_v39 = vpack.c.bf16 %v1035_v36, %v1035_v36 }
 0x236   :  { %v1209_v40 = vmul.f32 %v2909_v35, %v1177_v37 }
 0x237   :  { %v1099_v41 = vunpack.c.l.bf16 %v1080_v39 }
 0x238   :  { %v1225_v42 = vpack.c.bf16 %v1209_v40, %v1209_v40  ;;  %v2878_v40 = vld [vmem:[#allocation13 + $0x20] sm:$0xff] }
 0x239   :  { %v2972_v46 = vpop.eup %2971  ;;  %v1122_v47 = vmul.f32 1.442695, %v1099_v41 }
 0x23a   :  { %v1146_v49 = vpack.c.bf16 %v2972_v46, %v2972_v46  ;;  %v1037_v50 = vpop.f32.mrf.mxu3  ;;  %v1242_v51 = vsel %vm3569_vm1, %v1078_v11, %v1225_v42  ;;  %v2879_v11 = vld [vmem:[#allocation13 + $0x28] sm:$0xff] }
 0x23b   :  { %2973 = vpow2.f32 %v1122_v47  ;;  %v1038_v8 = vadd.f32 %v3563_v58, %v1037_v50  ;;  %v1294_v53 = vunpack.c.l.b16 %v1242_v51  ;;  %1648 = vmatpush.bf16.msrb.mxu1 %v2879_v11  ;;  %v2934_v42 = vld [vmem:[#allocation5 + $0x28] sm:$0xff]  }
 0x23c   :  { %v1178_v54 = vunpack.c.l.bf16 %v1146_v49  ;;  %v2920_v51 = vunpack.c.l.bf16 %v2934_v42 }
 0x23d   :  { %1065 = vst [vmem:[#allocation17 + $0x40] sm:$0xff] %v1038_v8  ;;  %v1081_v56 = vpack.c.bf16 %v1038_v8, %v1038_v8  ;;  %v1307_v57 = vpack.c.b16 %v1294_v53, %v1293_v52 }
 0x23e   :  { %v1210_v60 = vmul.f32 %v2912_v55, %v1178_v54 }
 0x23f   :  { %v1100_v59 = vunpack.c.l.bf16 %v1081_v56  ;;  %1387 = vmatmul.bf16.gmra.mxu0 %v1307_v57  ;;  %1649 = vmatpush.bf16.msrb.mxu1 %v2878_v40 }
 0x240   :  { %v1226_v4 = vpack.c.bf16 %v1210_v60, %v1210_v60  ;;  %v2921_v60 = vunpack.c.h.bf16 %v2934_v42 }
 0x241   :  { %v2974_v61 = vpop.eup %2973  ;;  %v1124_v62 = vmul.f32 1.442695, %v1100_v59 }
 0x242   :  { %v1147_v63 = vpack.c.bf16 %v2974_v61, %v2974_v61  ;;  %v1039_v0 = vpop.f32.mrf.mxu3  ;;  %v1243_v10 = vsel %vm3569_vm1, %v1079_v27, %v1226_v4 }
 0x243   :  { %2975 = vpow2.f32 %v1124_v62  ;;  %v1040_v2 = vadd.f32 %v3563_v58, %v1039_v0  ;;  %v1295_v19 = vunpack.c.l.b16 %v1243_v10 }
 0x244   :  { %v1179_v3 = vunpack.c.l.bf16 %v1147_v63 }
 0x245   :  { %1066 = vst [vmem:[#allocation17 + $0x48] sm:$0xff] %v1040_v2  ;;  %v1082_v5 = vpack.c.bf16 %v1040_v2, %v1040_v2 }
 0x246   :  { %v1211_v6 = vmul.f32 %v2913_v1, %v1179_v3 }
 0x247   :  { %v1101_v7 = vunpack.c.l.bf16 %v1082_v5 }
 0x248   :  { %v1227_v9 = vpack.c.bf16 %v1211_v6, %v1211_v6  ;;  %v2877_v6 = vld [vmem:[#allocation13 + $0x18] sm:$0xff] }
 0x249   :  { %v2976_v12 = vpop.eup %2975  ;;  %v1126_v14 = vmul.f32 1.442695, %v1101_v7  ;;  %1650 = vmatpush.bf16.msrb.mxu1 %v2877_v6 }
 0x24a   :  { %v1148_v15 = vpack.c.bf16 %v2976_v12, %v2976_v12  ;;  %v1042_v16 = vpop.f32.mrf.mxu3  ;;  %v1244_v17 = vsel %vm3569_vm1, %v1080_v39, %v1227_v9  ;;  %v2935_v9 = vld [vmem:[#allocation5 + $0x30] sm:$0xff]  }
 0x24b   :  { %2977 = vpow2.f32 %v1126_v14  ;;  %v1043_v18 = vadd.f32 %v3563_v58, %v1042_v16  ;;  %v1296_v20 = vunpack.c.l.b16 %v1244_v17  ;;  %v2876_v14 = vld [vmem:[#allocation13 + $0x10] sm:$0xff] }
 0x24c   :  { %v1180_v22 = vunpack.c.l.bf16 %v1148_v15 }
 0x24d   :  { %1067 = vst [vmem:[#allocation17 + $0x50] sm:$0xff] %v1043_v18  ;;  %v1083_v23 = vpack.c.bf16 %v1043_v18, %v1043_v18  ;;  %v1308_v24 = vpack.c.b16 %v1296_v20, %v1295_v19  ;;  %v2924_v18 = vunpack.c.l.bf16 %v2935_v9  ;;  %1651 = vmatpush.bf16.msrb.mxu1 %v2876_v14  ;;  %v2812_v14 = vld [vmem:[#allocation14 + $0x70] sm:$0xf] }
 0x24e   :  { %v1212_v26 = vmul.f32 %v2916_v21, %v1180_v22 }
 0x24f   :  { %v1102_v25 = vunpack.c.l.bf16 %v1083_v23  ;;  %1392 = vmatmul.bf16.gmra.mxu0 %v1308_v24 }
 0x250   :  { %v1228_v33 = vpack.c.bf16 %v1212_v26, %v1212_v26 }
 0x251   :  { %v2978_v27 = vpop.eup %2977  ;;  %v1128_v28 = vmul.f32 1.442695, %v1102_v25 }
 0x252   :  { %v1149_v29 = vpack.c.bf16 %v2978_v27, %v2978_v27  ;;  %v1044_v31 = vpop.f32.mrf.mxu3  ;;  %v1245_v39 = vsel %vm3569_vm1, %v1081_v56, %v1228_v33 }
 0x253   :  { %2979 = vpow2.f32 %v1128_v28  ;;  %v1045_v32 = vadd.f32 %v3563_v58, %v1044_v31  ;;  %v1297_v49 = vunpack.c.l.b16 %v1245_v39  ;;  %v2925_v28 = vunpack.c.h.bf16 %v2935_v9  ;;  %v2936_v39 = vld [vmem:[#allocation5 + $0x38] sm:$0xff]  }
 0x254   :  { %v1181_v34 = vunpack.c.l.bf16 %v1149_v29 }
 0x255   :  { %1068 = vst [vmem:[#allocation17 + $0x58] sm:$0xff] %v1045_v32  ;;  %v1084_v35 = vpack.c.bf16 %v1045_v32, %v1045_v32 }
 0x256   :  { %v1213_v36 = vmul.f32 %v2917_v30, %v1181_v34 }
 0x257   :  { %v1103_v37 = vunpack.c.l.bf16 %v1084_v35 }
 0x258   :  { %v1229_v38 = vpack.c.bf16 %v1213_v36, %v1213_v36 }
 0x259   :  { %v2980_v41 = vpop.eup %2979  ;;  %v1130_v43 = vmul.f32 1.442695, %v1103_v37 }
 0x25a   :  { %v1150_v44 = vpack.c.bf16 %v2980_v41, %v2980_v41  ;;  %v1047_v46 = vpop.f32.mrf.mxu3  ;;  %v1246_v47 = vsel %vm3569_vm1, %v1082_v5, %v1229_v38 }
 0x25b   :  { %2981 = vpow2.f32 %v1130_v43  ;;  %v1048_v48 = vadd.f32 %v3563_v58, %v1047_v46  ;;  %v1298_v50 = vunpack.c.l.b16 %v1246_v47 }
 0x25c   :  { %v1182_v8 = vunpack.c.l.bf16 %v1150_v44  ;;  %v2928_v44 = vunpack.c.l.bf16 %v2936_v39 }
 0x25d   :  { %1069 = vst [vmem:[#allocation17 + $0x60] sm:$0xff] %v1048_v48  ;;  %v1085_v52 = vpack.c.bf16 %v1048_v48, %v1048_v48  ;;  %v1309_v53 = vpack.c.b16 %v1298_v50, %v1297_v49 }
 0x25e   :  { %v1214_v55 = vmul.f32 %v2920_v51, %v1182_v8  ;;  %v2929_v51 = vunpack.c.h.bf16 %v2936_v39  ;;  %v2894_v39 = vld [vmem:[#allocation14 + $0x64] sm:$0xf] }
 0x25f   :  { %v1104_v54 = vunpack.c.l.bf16 %v1085_v52  ;;  %1397 = vmatmul.bf16.gmra.mxu0 %v1309_v53 }
 0x260   :  { %v1230_v63 = vpack.c.bf16 %v1214_v55, %v1214_v55 }
 0x261   :  { %v2982_v56 = vpop.eup %2981  ;;  %v1132_v57 = vmul.f32 1.442695, %v1104_v54 }
 0x262   :  { %v1151_v59 = vpack.c.bf16 %v2982_v56, %v2982_v56  ;;  %v1049_v61 = vpop.f32.mrf.mxu3  ;;  %v1247_v5 = vsel %vm3569_vm1, %v1083_v23, %v1230_v63  ;;  %v2875_v23 = vld [vmem:[#allocation13 + $0x8] sm:$0xff] }
 0x263   :  { %2983 = vpow2.f32 %v1132_v57  ;;  %v1050_v62 = vadd.f32 %v3563_v58, %v1049_v61  ;;  %v1299_v16 = vunpack.c.l.b16 %v1247_v5  ;;  %1652 = vmatpush.bf16.msrb.mxu1 %v2875_v23  ;;  %v2874_v61 = vld [vmem:[#allocation13] sm:$0xff] }
 0x264   :  { %v1183_v0 = vunpack.c.l.bf16 %v1151_v59 }
 0x265   :  { %1070 = vst [vmem:[#allocation17 + $0x68] sm:$0xff] %v1050_v62  ;;  %v1086_v1 = vpack.c.bf16 %v1050_v62, %v1050_v62  ;;  %v3620_v62 = vld [vmem:[%s3752_s9] ss:$0 sm:$0xff] }
 0x266   :  { %v1215_v2 = vmul.f32 %v2921_v60, %v1183_v0 }
 0x267   :  { %v1105_v3 = vunpack.c.l.bf16 %v1086_v1  ;;  %1653 = vmatpush.bf16.msrb.mxu1 %v2874_v61 }
 0x268   :  { %v1231_v4 = vpack.c.bf16 %v1215_v2, %v1215_v2 }
 0x269   :  { %v2984_v7 = vpop.eup %2983  ;;  %v1134_v10 = vmul.f32 1.442695, %v1105_v3 }
 0x26a   :  { %v1152_v11 = vpack.c.bf16 %v2984_v7, %v2984_v7  ;;  %v1052_v12 = vpop.f32.mrf.mxu3  ;;  %v1248_v13 = vsel %vm3569_vm1, %v1084_v35, %v1231_v4 }
 0x26b   :  { %2985 = vpow2.f32 %v1134_v10  ;;  %v1053_v15 = vadd.f32 %v3563_v58, %v1052_v12  ;;  %v1300_v17 = vunpack.c.l.b16 %v1248_v13 }
 0x26c   :  { %v1184_v19 = vunpack.c.l.bf16 %v1152_v11 }
 0x26d   :  { %1071 = vst [vmem:[#allocation17 + $0x70] sm:$0xff] %v1053_v15  ;;  %v1087_v20 = vpack.c.bf16 %v1053_v15, %v1053_v15  ;;  %v1310_v21 = vpack.c.b16 %v1300_v17, %v1299_v16  ;;  %v2897_v15 = vld [vmem:[#allocation14 + $0x74] sm:$0xf0]  ;;  %v2896_v16 = vld [vmem:[#allocation14 + $0x74] sm:$0xf] }
 0x26e   :  { %v1216_v24 = vmul.f32 %v2924_v18, %v1184_v19  ;;  %v2813_v17 = vor.u32 %v2897_v15, %v2812_v14  ;;  %v2814_v18 = vld [vmem:[#allocation14 + $0x78] sm:$0xf0] }
 0x26f   :  { %v1106_v22 = vunpack.c.l.bf16 %v1087_v20  ;;  %1402 = vmatmul.bf16.gmra.mxu0 %v1310_v21  ;;  %v2817_v21 = vor.u32 %v2896_v16, %v2814_v18 }
 0x270   :  { %v1232_v31 = vpack.c.bf16 %v1216_v24, %v1216_v24  ;;  %1957 = vmatpush.bf16.msrb.mxu2 %v2813_v17 }
 0x271   :  { %v2986_v25 = vpop.eup %2985  ;;  %v1136_v26 = vmul.f32 1.442695, %v1106_v22  ;;  %2006 = vmatpush.bf16.msrb.mxu3 %v2817_v21 }
 0x272   :  { %v1153_v27 = vpack.c.bf16 %v2986_v25, %v2986_v25  ;;  %v1054_v29 = vpop.f32.mrf.mxu3  ;;  %v1249_v37 = vsel %vm3569_vm1, %v1085_v52, %v1232_v31 }
 0x273   :  { %2987 = vpow2.f32 %v1136_v26  ;;  %v1055_v30 = vadd.f32 %v3563_v58, %v1054_v29  ;;  %v1301_v43 = vunpack.c.l.b16 %v1249_v37  ;;  %v2804_v37 = vld [vmem:[#allocation14 + $0x60] sm:$0xf] }
 0x274   :  { %v1185_v32 = vunpack.c.l.bf16 %v1153_v27 }
 0x275   :  { %1072 = vst [vmem:[#allocation17 + $0x78] sm:$0xff] %v1055_v30  ;;  %v1088_v33 = vpack.c.bf16 %v1055_v30, %v1055_v30 }
 0x276   :  { %v1217_v34 = vmul.f32 %v2925_v28, %v1185_v32 }
 0x277   :  { %v1107_v35 = vunpack.c.l.bf16 %v1088_v33 }
 0x278   :  { %v1233_v36 = vpack.c.bf16 %v1217_v34, %v1217_v34 }
 0x279   :  { %v2988_v38 = vpop.eup %2987  ;;  %v1138_v40 = vmul.f32 1.442695, %v1107_v35 }
 0x27a   :  { %v1154_v41 = vpack.c.bf16 %v2988_v38, %v2988_v38  ;;  %v1250_v42 = vsel %vm3569_vm1, %v1086_v1, %v1233_v36  ;;  %v2895_v38 = vld [vmem:[#allocation14 + $0x64] sm:$0xf0] }
 0x27b   :  { %2989 = vpow2.f32 %v1138_v40  ;;  %v1302_v58 = vunpack.c.l.b16 %v1250_v42  ;;  %v2805_v40 = vor.u32 %v2895_v38, %v2804_v37 }
 0x27c   :  { %v1186_v46 = vunpack.c.l.bf16 %v1154_v41  ;;  %v2806_v41 = vld [vmem:[#allocation14 + $0x68] sm:$0xf0] }
 0x27d   :  { %v1311_v47 = vpack.c.b16 %v1302_v58, %v1301_v43  ;;  %v2809_v58 = vor.u32 %v2894_v39, %v2806_v41  ;;  %1958 = vmatpush.bf16.msrb.mxu2 %v2805_v40 }
 0x27e   :  { %v1218_v48 = vmul.f32 %v2928_v44, %v1186_v46 }
 0x27f   :  { %1407 = vmatmul.bf16.gmra.mxu0 %v1311_v47  ;;  %2007 = vmatpush.bf16.msrb.mxu3 %v2809_v58 }
 0x280   :  { %v1234_v8 = vpack.c.bf16 %v1218_v48, %v1218_v48 }
 0x281   :  { %v2990_v49 = vpop.eup %2989 }
 0x282   :  { %v1155_v50 = vpack.c.bf16 %v2990_v49, %v2990_v49  ;;  %v1251_v55 = vsel %vm3569_vm1, %v1087_v20, %v1234_v8 }
 0x283   :  { %v1303_v57 = vunpack.c.l.b16 %v1251_v55 }
 0x284   :  { %v1187_v52 = vunpack.c.l.bf16 %v1155_v50 }
 0x286   :  { %v1219_v53 = vmul.f32 %v2929_v51, %v1187_v52 }
 0x288   :  { %v1235_v54 = vpack.c.bf16 %v1219_v53, %v1219_v53 }
 0x28a   :  { %v1252_v56 = vsel %vm3569_vm1, %v1088_v33, %v1235_v54 }
 0x28b   :  { %v1304_v59 = vunpack.c.l.b16 %v1252_v56 }
 0x28d   :  { %v1312_v60 = vpack.c.b16 %v1304_v59, %v1303_v57 }
 0x28f   :  { %1412 = vmatmul.bf16.gmra.mxu0 %v1312_v60 }
 0x29c   :  { %v1378_v63 = vpop.f32.mrf.mxu0 }
 0x29d   :  { %v1379_v0 = vadd.f32 %v3620_v62, %v1378_v63 }
 0x29f   :  { %v1418_v1 = vpack.c.bf16 %v1379_v0, %v1379_v0 }
 0x2a1   :  { %v1434_v2 = vunpack.c.l.bf16 %v1418_v1 }
 0x2a3   :  { %v1466_v4 = vmul.f32 0.20019531, %v1434_v2  ;;  %vm1450_vm2 = vcmp.gt.f32.partialorder %v1434_v2, 0.0  ;;  %v2893_v2 = vld [vmem:[#allocation14 + $0x54] sm:$0xf0] }
 0x2a4   :  { %v1380_v3 = vpop.f32.mrf.mxu0  ;;  %vm1498_vm4 = vmpackc.low %vm1450_vm2, %vm1450_vm2 }
 0x2a5   :  { %v1381_v45 = vadd.f32 %v3620_v62, %v1380_v3  ;;  %v1482_v6 = vpack.c.bf16 %v1466_v4, %v1466_v4  ;;  %v2892_v3 = vld [vmem:[#allocation14 + $0x54] sm:$0xf] }
 0x2a7   :  { %v1419_v5 = vpack.c.bf16 %v1381_v45, %v1381_v45  ;;  %v1514_v11 = vsel %vm1498_vm4, %v1418_v1, %v1482_v6  ;;  %v2796_v1 = vld [vmem:[#allocation14 + $0x50] sm:$0xf] }
 0x2a8   :  { %v1566_v22 = vunpack.c.l.b16 %v1514_v11  ;;  %v2797_v45 = vor.u32 %v2893_v2, %v2796_v1 }
 0x2a9   :  { %v1435_v7 = vunpack.c.l.bf16 %v1419_v5 }
 0x2aa   :  { %1959 = vmatpush.bf16.msrb.mxu2 %v2797_v45 }
 0x2ab   :  { %vm1451_vm3 = vcmp.gt.f32.partialorder %v1435_v7, 0.0  ;;  %v1467_v9 = vmul.f32 0.20019531, %v1435_v7 }
 0x2ac   :  { %v1383_v10 = vpop.f32.mrf.mxu0  ;;  %vm1499_vm5 = vmpackc.low %vm1451_vm3, %vm1451_vm3 }
 0x2ad   :  { %v1483_v12 = vpack.c.bf16 %v1467_v9, %v1467_v9  ;;  %v1384_v13 = vadd.f32 %v3620_v62, %v1383_v10 }
 0x2af   :  { %v1515_v19 = vsel %vm1499_vm5, %v1419_v5, %v1483_v12  ;;  %v1420_v20 = vpack.c.bf16 %v1384_v13, %v1384_v13  ;;  %v2798_v5 = vld [vmem:[#allocation14 + $0x58] sm:$0xf0] }
 0x2b0   :  { %v1567_v23 = vunpack.c.l.b16 %v1515_v19  ;;  %v2801_v7 = vor.u32 %v2892_v3, %v2798_v5 }
 0x2b1   :  { %v1436_v24 = vunpack.c.l.bf16 %v1420_v20 }
 0x2b2   :  { %v1582_v25 = vpack.c.b16 %v1567_v23, %v1566_v22  ;;  %2008 = vmatpush.bf16.msrb.mxu3 %v2801_v7  ;;  %v2887_v7 = vld [vmem:[#allocation14 + $0x24] sm:$0xf0] }
 0x2b3   :  { %v1468_v27 = vmul.f32 0.20019531, %v1436_v24  ;;  %vm1452_vm6 = vcmp.gt.f32.partialorder %v1436_v24, 0.0  ;;  %v2788_v24 = vld [vmem:[#allocation14 + $0x40] sm:$0xf] }
 0x2b4   :  { %v1385_v26 = vpop.f32.mrf.mxu0  ;;  %1654 = vmatmul.bf16.vlgmr.msrb.gmra.mxu1 %v1582_v25  ;;  %vm1500_vm8 = vmpackc.low %vm1452_vm6, %vm1452_vm6  ;;  %v2891_v25 = vld [vmem:[#allocation14 + $0x44] sm:$0xf0] }
 0x2b5   :  { %v1386_v28 = vadd.f32 %v3620_v62, %v1385_v26  ;;  %v1484_v30 = vpack.c.bf16 %v1468_v27, %v1468_v27  ;;  %v2890_v26 = vld [vmem:[#allocation14 + $0x44] sm:$0xf] }
 0x2b7   :  { %v1421_v29 = vpack.c.bf16 %v1386_v28, %v1386_v28  ;;  %v1516_v36 = vsel %vm1500_vm8, %v1420_v20, %v1484_v30  ;;  %v2789_v28 = vor.u32 %v2891_v25, %v2788_v24 }
 0x2b8   :  { %v1568_v44 = vunpack.c.l.b16 %v1516_v36 }
 0x2b9   :  { %v1437_v31 = vunpack.c.l.bf16 %v1421_v29  ;;  %1960 = vmatpush.bf16.msrb.mxu2 %v2789_v28 }
 0x2bb   :  { %vm1453_vm7 = vcmp.gt.f32.partialorder %v1437_v31, 0.0  ;;  %v1469_v32 = vmul.f32 0.20019531, %v1437_v31 }
 0x2bc   :  { %v1388_v33 = vpop.f32.mrf.mxu0  ;;  %vm1501_vm9 = vmpackc.low %vm1453_vm7, %vm1453_vm7 }
 0x2bd   :  { %v1485_v34 = vpack.c.bf16 %v1469_v32, %v1469_v32  ;;  %v1389_v35 = vadd.f32 %v3620_v62, %v1388_v33 }
 0x2bf   :  { %v1422_v42 = vpack.c.bf16 %v1389_v35, %v1389_v35  ;;  %v1517_v43 = vsel %vm1501_vm9, %v1421_v29, %v1485_v34  ;;  %v2790_v29 = vld [vmem:[#allocation14 + $0x48] sm:$0xf0] }
 0x2c0   :  { %v1569_v46 = vunpack.c.l.b16 %v1517_v43  ;;  %v2793_v31 = vor.u32 %v2890_v26, %v2790_v29 }
 0x2c1   :  { %v1438_v47 = vunpack.c.l.bf16 %v1422_v42 }
 0x2c2   :  { %v1583_v48 = vpack.c.b16 %v1569_v46, %v1568_v44  ;;  %2009 = vmatpush.bf16.msrb.mxu3 %v2793_v31 }
 0x2c3   :  { %v1470_v50 = vmul.f32 0.20019531, %v1438_v47  ;;  %vm1454_vm10 = vcmp.gt.f32.partialorder %v1438_v47, 0.0  ;;  %v2780_v47 = vld [vmem:[#allocation14 + $0x30] sm:$0xf] }
 0x2c4   :  { %v1390_v49 = vpop.f32.mrf.mxu0  ;;  %1659 = vmatmul.bf16.gmra.mxu1 %v1583_v48  ;;  %vm1502_vm12 = vmpackc.low %vm1454_vm10, %vm1454_vm10  ;;  %v2889_v48 = vld [vmem:[#allocation14 + $0x34] sm:$0xf0] }
 0x2c5   :  { %v1391_v51 = vadd.f32 %v3620_v62, %v1390_v49  ;;  %v1486_v52 = vpack.c.bf16 %v1470_v50, %v1470_v50  ;;  %v2888_v49 = vld [vmem:[#allocation14 + $0x34] sm:$0xf] }
 0x2c7   :  { %v1423_v8 = vpack.c.bf16 %v1391_v51, %v1391_v51  ;;  %v1518_v59 = vsel %vm1502_vm12, %v1422_v42, %v1486_v52  ;;  %v2781_v51 = vor.u32 %v2889_v48, %v2780_v47 }
 0x2c8   :  { %v1570_v63 = vunpack.c.l.b16 %v1518_v59 }
 0x2c9   :  { %v1439_v53 = vunpack.c.l.bf16 %v1423_v8  ;;  %1961 = vmatpush.bf16.msrb.mxu2 %v2781_v51  ;;  %v2756_v51 = vld [vmem:[#allocation14] sm:$0xf] }
 0x2cb   :  { %vm1455_vm11 = vcmp.gt.f32.partialorder %v1439_v53, 0.0  ;;  %v1471_v54 = vmul.f32 0.20019531, %v1439_v53 }
 0x2cc   :  { %v1393_v55 = vpop.f32.mrf.mxu0  ;;  %vm1503_vm13 = vmpackc.low %vm1455_vm11, %vm1455_vm11 }
 0x2cd   :  { %v1487_v56 = vpack.c.bf16 %v1471_v54, %v1471_v54  ;;  %v1394_v57 = vadd.f32 %v3620_v62, %v1393_v55 }
 0x2cf   :  { %v1424_v60 = vpack.c.bf16 %v1394_v57, %v1394_v57  ;;  %v1519_v61 = vsel %vm1503_vm13, %v1423_v8, %v1487_v56  ;;  %v2782_v8 = vld [vmem:[#allocation14 + $0x38] sm:$0xf0] }
 0x2d0   :  { %v1571_v0 = vunpack.c.l.b16 %v1519_v61  ;;  %v2785_v53 = vor.u32 %v2888_v49, %v2782_v8  ;;  %v2883_v8 = vld [vmem:[#allocation14 + $0x4] sm:$0xf0] }
 0x2d1   :  { %v1440_v4 = vunpack.c.l.bf16 %v1424_v60 }
 0x2d2   :  { %v1584_v6 = vpack.c.b16 %v1571_v0, %v1570_v63  ;;  %2010 = vmatpush.bf16.msrb.mxu3 %v2785_v53  ;;  %v2757_v53 = vor.u32 %v2883_v8, %v2756_v51 }
 0x2d3   :  { %v1472_v10 = vmul.f32 0.20019531, %v1440_v4  ;;  %vm1456_vm14 = vcmp.gt.f32.partialorder %v1440_v4, 0.0 }
 0x2d4   :  { %v1395_v9 = vpop.f32.mrf.mxu0  ;;  %1664 = vmatmul.bf16.gmra.mxu1 %v1584_v6  ;;  %vm1504_vm0 = vmpackc.low %vm1456_vm14, %vm1456_vm14  ;;  %v2772_v6 = vld [vmem:[#allocation14 + $0x20] sm:$0xf] }
 0x2d5   :  { %v1396_v11 = vadd.f32 %v3620_v62, %v1395_v9  ;;  %v1488_v13 = vpack.c.bf16 %v1472_v10, %v1472_v10  ;;  %v2886_v9 = vld [vmem:[#allocation14 + $0x24] sm:$0xf] }
 0x2d7   :  { %v1425_v12 = vpack.c.bf16 %v1396_v11, %v1396_v11  ;;  %v1520_v19 = vsel %vm1504_vm0, %v1424_v60, %v1488_v13  ;;  %v2773_v11 = vor.u32 %v2887_v7, %v2772_v6 }
 0x2d8   :  { %v1572_v22 = vunpack.c.l.b16 %v1520_v19 }
 0x2d9   :  { %v1441_v14 = vunpack.c.l.bf16 %v1425_v12  ;;  %1962 = vmatpush.bf16.msrb.mxu2 %v2773_v11 }
 0x2db   :  { %vm1457_vm15 = vcmp.gt.f32.partialorder %v1441_v14, 0.0  ;;  %v1473_v15 = vmul.f32 0.20019531, %v1441_v14 }
 0x2dc   :  { %v1398_v16 = vpop.f32.mrf.mxu0  ;;  %vm1505_vm1 = vmpackc.low %vm1457_vm15, %vm1457_vm15 }
 0x2dd   :  { %v1489_v17 = vpack.c.bf16 %v1473_v15, %v1473_v15  ;;  %v1399_v18 = vadd.f32 %v3620_v62, %v1398_v16  ;;  %v2764_v16 = vld [vmem:[#allocation14 + $0x10] sm:$0xf] }
 0x2df   :  { %v1426_v20 = vpack.c.bf16 %v1399_v18, %v1399_v18  ;;  %v1521_v21 = vsel %vm1505_vm1, %v1425_v12, %v1489_v17  ;;  %v2774_v12 = vld [vmem:[#allocation14 + $0x28] sm:$0xf0]  ;;  %v2885_v17 = vld [vmem:[#allocation14 + $0x14] sm:$0xf0] }
 0x2e0   :  { %v1573_v23 = vunpack.c.l.b16 %v1521_v21  ;;  %v2777_v14 = vor.u32 %v2886_v9, %v2774_v12  ;;  %v2884_v21 = vld [vmem:[#allocation14 + $0x14] sm:$0xf] }
 0x2e1   :  { %v1442_v27 = vunpack.c.l.bf16 %v1426_v20 }
 0x2e2   :  { %v1585_v30 = vpack.c.b16 %v1573_v23, %v1572_v22  ;;  %2011 = vmatpush.bf16.msrb.mxu3 %v2777_v14  ;;  %v2766_v22 = vld [vmem:[#allocation14 + $0x18] sm:$0xf0] }
 0x2e3   :  { %v1474_v33 = vmul.f32 0.20019531, %v1442_v27  ;;  %vm1458_vm2 = vcmp.gt.f32.partialorder %v1442_v27, 0.0  ;;  %v2769_v23 = vor.u32 %v2884_v21, %v2766_v22 }
 0x2e4   :  { %v1400_v32 = vpop.f32.mrf.mxu0  ;;  %1669 = vmatmul.bf16.gmra.mxu1 %v1585_v30  ;;  %vm1506_vm4 = vmpackc.low %vm1458_vm2, %vm1458_vm2 }
 0x2e5   :  { %v1401_v34 = vadd.f32 %v3620_v62, %v1400_v32  ;;  %v1490_v36 = vpack.c.bf16 %v1474_v33, %v1474_v33 }
 0x2e6   :  { %2012 = vmatpush.bf16.msrb.mxu3 %v2769_v23 }
 0x2e7   :  { %v1427_v35 = vpack.c.bf16 %v1401_v34, %v1401_v34  ;;  %v1522_v40 = vsel %vm1506_vm4, %v1426_v20, %v1490_v36  ;;  %v2765_v20 = vor.u32 %v2885_v17, %v2764_v16 }
 0x2e8   :  { %v1574_v44 = vunpack.c.l.b16 %v1522_v40 }
 0x2e9   :  { %v1443_v37 = vunpack.c.l.bf16 %v1427_v35  ;;  %1963 = vmatpush.bf16.msrb.mxu2 %v2765_v20 }
 0x2eb   :  { %vm1459_vm3 = vcmp.gt.f32.partialorder %v1443_v37, 0.0  ;;  %v1475_v38 = vmul.f32 0.20019531, %v1443_v37 }
 0x2ec   :  { %v1403_v39 = vpop.f32.mrf.mxu0  ;;  %vm1507_vm5 = vmpackc.low %vm1459_vm3, %vm1459_vm3 }
 0x2ed   :  { %v1491_v41 = vpack.c.bf16 %v1475_v38, %v1475_v38  ;;  %v1404_v42 = vadd.f32 %v3620_v62, %v1403_v39  ;;  %1964 = vmatpush.bf16.msrb.mxu2 %v2757_v53 }
 0x2ef   :  { %v1523_v43 = vsel %vm1507_vm5, %v1427_v35, %v1491_v41  ;;  %v1428_v58 = vpack.c.bf16 %v1404_v42, %v1404_v42 }
 0x2f0   :  { %v1575_v46 = vunpack.c.l.b16 %v1523_v43 }
 0x2f1   :  { %v1444_v50 = vunpack.c.l.bf16 %v1428_v58 }
 0x2f2   :  { %v1586_v52 = vpack.c.b16 %v1575_v46, %v1574_v44 }
 0x2f3   :  { %v1476_v55 = vmul.f32 0.20019531, %v1444_v50  ;;  %vm1460_vm6 = vcmp.gt.f32.partialorder %v1444_v50, 0.0 }
 0x2f4   :  { %v1405_v54 = vpop.f32.mrf.mxu0  ;;  %1674 = vmatmul.bf16.gmra.mxu1 %v1586_v52  ;;  %vm1508_vm8 = vmpackc.low %vm1460_vm6, %vm1460_vm6  ;;  %v2882_v52 = vld [vmem:[#allocation14 + $0x4] sm:$0xf] }
 0x2f5   :  { %v1406_v56 = vadd.f32 %v3620_v62, %v1405_v54  ;;  %v1492_v59 = vpack.c.bf16 %v1476_v55, %v1476_v55  ;;  %v3641_v55 = vld [vmem:[%s3754_s11] ss:$0 sm:$0xff] }
 0x2f7   :  { %v1429_v57 = vpack.c.bf16 %v1406_v56, %v1406_v56  ;;  %v1524_v0 = vsel %vm1508_vm8, %v1428_v58, %v1492_v59 }
 0x2f8   :  { %v1576_v45 = vunpack.c.l.b16 %v1524_v0 }
 0x2f9   :  { %v1445_v60 = vunpack.c.l.bf16 %v1429_v57 }
 0x2fb   :  { %vm1461_vm7 = vcmp.gt.f32.partialorder %v1445_v60, 0.0  ;;  %v1477_v61 = vmul.f32 0.20019531, %v1445_v60 }
 0x2fc   :  { %v1408_v63 = vpop.f32.mrf.mxu0  ;;  %vm1509_vm9 = vmpackc.low %vm1461_vm7, %vm1461_vm7 }
 0x2fd   :  { %v1493_v1 = vpack.c.bf16 %v1477_v61, %v1477_v61  ;;  %v1409_v2 = vadd.f32 %v3620_v62, %v1408_v63 }
 0x2ff   :  { %v1525_v3 = vsel %vm1509_vm9, %v1429_v57, %v1493_v1  ;;  %v1430_v4 = vpack.c.bf16 %v1409_v2, %v1409_v2 }
 0x300   :  { %v1577_v5 = vunpack.c.l.b16 %v1525_v3 }
 0x301   :  { %v1446_v10 = vunpack.c.l.bf16 %v1430_v4 }
 0x302   :  { %v1587_v13 = vpack.c.b16 %v1577_v5, %v1576_v45 }
 0x303   :  { %v1478_v18 = vmul.f32 0.20019531, %v1446_v10  ;;  %vm1462_vm10 = vcmp.gt.f32.partialorder %v1446_v10, 0.0 }
 0x304   :  { %v1410_v15 = vpop.f32.mrf.mxu0  ;;  %1679 = vmatmul.bf16.gmra.mxu1 %v1587_v13  ;;  %vm1510_vm12 = vmpackc.low %vm1462_vm10, %vm1462_vm10 }
 0x305   :  { %v1411_v19 = vadd.f32 %v3620_v62, %v1410_v15  ;;  %v1494_v25 = vpack.c.bf16 %v1478_v18, %v1478_v18 }
 0x307   :  { %v1431_v24 = vpack.c.bf16 %v1411_v19, %v1411_v19  ;;  %v1526_v29 = vsel %vm1510_vm12, %v1430_v4, %v1494_v25 }
 0x308   :  { %v1578_v34 = vunpack.c.l.b16 %v1526_v29 }
 0x309   :  { %v1447_v26 = vunpack.c.l.bf16 %v1431_v24 }
 0x30b   :  { %vm1463_vm11 = vcmp.gt.f32.partialorder %v1447_v26, 0.0  ;;  %v1479_v27 = vmul.f32 0.20019531, %v1447_v26 }
 0x30c   :  { %v1413_v28 = vpop.f32.mrf.mxu0  ;;  %vm1511_vm13 = vmpackc.low %vm1463_vm11, %vm1463_vm11 }
 0x30d   :  { %v1495_v30 = vpack.c.bf16 %v1479_v27, %v1479_v27  ;;  %v1414_v31 = vadd.f32 %v3620_v62, %v1413_v28 }
 0x30f   :  { %v1527_v32 = vsel %vm1511_vm13, %v1431_v24, %v1495_v30  ;;  %v1432_v33 = vpack.c.bf16 %v1414_v31, %v1414_v31 }
 0x310   :  { %v1579_v35 = vunpack.c.l.b16 %v1527_v32 }
 0x311   :  { %v1448_v36 = vunpack.c.l.bf16 %v1432_v33 }
 0x312   :  { %v1588_v37 = vpack.c.b16 %v1579_v35, %v1578_v34 }
 0x313   :  { %v1480_v39 = vmul.f32 0.20019531, %v1448_v36  ;;  %vm1464_vm14 = vcmp.gt.f32.partialorder %v1448_v36, 0.0 }
 0x314   :  { %v1415_v38 = vpop.f32.mrf.mxu0  ;;  %1684 = vmatmul.bf16.gmra.mxu1 %v1588_v37  ;;  %vm1512_vm0 = vmpackc.low %vm1464_vm14, %vm1464_vm14 }
 0x315   :  { %v1416_v40 = vadd.f32 %v3620_v62, %v1415_v38  ;;  %v1496_v42 = vpack.c.bf16 %v1480_v39, %v1480_v39  ;;  %v2758_v62 = vld [vmem:[#allocation14 + $0x8] sm:$0xf0] }
 0x316   :  { %v2761_v54 = vor.u32 %v2882_v52, %v2758_v62 }
 0x317   :  { %v1433_v41 = vpack.c.bf16 %v1416_v40, %v1416_v40  ;;  %v1528_v44 = vsel %vm1512_vm0, %v1432_v33, %v1496_v42 }
 0x318   :  { %v1580_v48 = vunpack.c.l.b16 %v1528_v44  ;;  %2013 = vmatpush.bf16.msrb.mxu3 %v2761_v54 }
 0x319   :  { %v1449_v43 = vunpack.c.l.bf16 %v1433_v41 }
 0x31b   :  { %vm1465_vm15 = vcmp.gt.f32.partialorder %v1449_v43, 0.0  ;;  %v1481_v58 = vmul.f32 0.20019531, %v1449_v43 }
 0x31c   :  { %vm1513_vm1 = vmpackc.low %vm1465_vm15, %vm1465_vm15 }
 0x31d   :  { %v1497_v46 = vpack.c.bf16 %v1481_v58, %v1481_v58 }
 0x31f   :  { %v1529_v47 = vsel %vm1513_vm1, %v1433_v41, %v1497_v46 }
 0x320   :  { %v1581_v49 = vunpack.c.l.b16 %v1529_v47 }
 0x322   :  { %v1589_v50 = vpack.c.b16 %v1581_v49, %v1580_v48 }
 0x324   :  { %1689 = vmatmul.bf16.gmra.mxu1 %v1589_v50 }
 0x331   :  { %v1655_v56 = vpop.f32.mrf.mxu1 }
 0x332   :  { %v1656_v57 = vadd.f32 %v3641_v55, %v1655_v56 }
 0x334   :  { %v1695_v59 = vpack.c.bf16 %v1656_v57, %v1656_v57 }
 0x336   :  { %v1711_v60 = vunpack.c.l.bf16 %v1695_v59 }
 0x338   :  { %v1743_v63 = vmul.f32 0.20019531, %v1711_v60  ;;  %vm1727_vm2 = vcmp.gt.f32.partialorder %v1711_v60, 0.0 }
 0x339   :  { %v1657_v61 = vpop.f32.mrf.mxu1  ;;  %vm1775_vm4 = vmpackc.low %vm1727_vm2, %vm1727_vm2 }
 0x33a   :  { %v1658_v0 = vadd.f32 %v3641_v55, %v1657_v61  ;;  %v1759_v2 = vpack.c.bf16 %v1743_v63, %v1743_v63 }
 0x33c   :  { %v1696_v1 = vpack.c.bf16 %v1658_v0, %v1658_v0  ;;  %v1791_v5 = vsel %vm1775_vm4, %v1695_v59, %v1759_v2 }
 0x33d   :  { %v1845_v11 = vunpack.c.l.b16 %v1791_v5 }
 0x33e   :  { %v1712_v3 = vunpack.c.l.bf16 %v1696_v1 }
 0x340   :  { %vm1728_vm3 = vcmp.gt.f32.partialorder %v1712_v3, 0.0  ;;  %v1744_v4 = vmul.f32 0.20019531, %v1712_v3 }
 0x341   :  { %v1660_v45 = vpop.f32.mrf.mxu1  ;;  %vm1776_vm5 = vmpackc.low %vm1728_vm3, %vm1728_vm3 }
 0x342   :  { %v1760_v6 = vpack.c.bf16 %v1744_v4, %v1744_v4  ;;  %v1661_v7 = vadd.f32 %v3641_v55, %v1660_v45 }
 0x344   :  { %v1792_v9 = vsel %vm1776_vm5, %v1696_v1, %v1760_v6  ;;  %v1697_v10 = vpack.c.bf16 %v1661_v7, %v1661_v7 }
 0x345   :  { %v1846_v12 = vunpack.c.l.b16 %v1792_v9 }
 0x346   :  { %v1713_v13 = vunpack.c.l.bf16 %v1697_v10 }
 0x347   :  { %v1861_v14 = vpack.c.b16 %v1846_v12, %v1845_v11 }
 0x348   :  { %v1745_v16 = vmul.f32 0.20019531, %v1713_v13  ;;  %vm1729_vm6 = vcmp.gt.f32.partialorder %v1713_v13, 0.0 }
 0x349   :  { %v1662_v15 = vpop.f32.mrf.mxu1  ;;  %1965 = vmatmul.bf16.vlgmr.msrb.gmra.mxu2 %v1861_v14  ;;  %2014 = vmatmul.bf16.vlgmr.msrb.gmra.mxu3 %v1861_v14  ;;  %vm1777_vm8 = vmpackc.low %vm1729_vm6, %vm1729_vm6 }
 0x34a   :  { %v1663_v17 = vadd.f32 %v3641_v55, %v1662_v15  ;;  %v1761_v19 = vpack.c.bf16 %v1745_v16, %v1745_v16 }
 0x34c   :  { %v1698_v18 = vpack.c.bf16 %v1663_v17, %v1663_v17  ;;  %v1793_v25 = vsel %vm1777_vm8, %v1697_v10, %v1761_v19 }
 0x34d   :  { %v1847_v28 = vunpack.c.l.b16 %v1793_v25 }
 0x34e   :  { %v1714_v20 = vunpack.c.l.bf16 %v1698_v18 }
 0x350   :  { %vm1730_vm7 = vcmp.gt.f32.partialorder %v1714_v20, 0.0  ;;  %v1746_v21 = vmul.f32 0.20019531, %v1714_v20 }
 0x351   :  { %v1665_v22 = vpop.f32.mrf.mxu1  ;;  %vm1778_vm9 = vmpackc.low %vm1730_vm7, %vm1730_vm7 }
 0x352   :  { %v1762_v23 = vpack.c.bf16 %v1746_v21, %v1746_v21  ;;  %v1666_v24 = vadd.f32 %v3641_v55, %v1665_v22 }
 0x354   :  { %v1699_v26 = vpack.c.bf16 %v1666_v24, %v1666_v24  ;;  %v1794_v27 = vsel %vm1778_vm9, %v1698_v18, %v1762_v23 }
 0x355   :  { %v1848_v29 = vunpack.c.l.b16 %v1794_v27 }
 0x356   :  { %v1715_v30 = vunpack.c.l.bf16 %v1699_v26 }
 0x357   :  { %v1862_v31 = vpack.c.b16 %v1848_v29, %v1847_v28 }
 0x358   :  { %v1747_v33 = vmul.f32 0.20019531, %v1715_v30  ;;  %vm1731_vm10 = vcmp.gt.f32.partialorder %v1715_v30, 0.0 }
 0x359   :  { %v1667_v32 = vpop.f32.mrf.mxu1  ;;  %1970 = vmatmul.bf16.gmra.mxu2 %v1862_v31  ;;  %2019 = vmatmul.bf16.gmra.mxu3 %v1862_v31  ;;  %vm1779_vm12 = vmpackc.low %vm1731_vm10, %vm1731_vm10 }
 0x35a   :  { %v1668_v34 = vadd.f32 %v3641_v55, %v1667_v32  ;;  %v1763_v36 = vpack.c.bf16 %v1747_v33, %v1747_v33 }
 0x35c   :  { %v1700_v35 = vpack.c.bf16 %v1668_v34, %v1668_v34  ;;  %v1795_v42 = vsel %vm1779_vm12, %v1699_v26, %v1763_v36 }
 0x35d   :  { %v1849_v44 = vunpack.c.l.b16 %v1795_v42 }
 0x35e   :  { %v1716_v37 = vunpack.c.l.bf16 %v1700_v35 }
 0x360   :  { %vm1732_vm11 = vcmp.gt.f32.partialorder %v1716_v37, 0.0  ;;  %v1748_v38 = vmul.f32 0.20019531, %v1716_v37 }
 0x361   :  { %v1670_v39 = vpop.f32.mrf.mxu1  ;;  %vm1780_vm13 = vmpackc.low %vm1732_vm11, %vm1732_vm11 }
 0x362   :  { %v1764_v40 = vpack.c.bf16 %v1748_v38, %v1748_v38  ;;  %v1671_v41 = vadd.f32 %v3641_v55, %v1670_v39 }
 0x364   :  { %v1701_v43 = vpack.c.bf16 %v1671_v41, %v1671_v41  ;;  %v1796_v58 = vsel %vm1780_vm13, %v1700_v35, %v1764_v40 }
 0x365   :  { %v1850_v46 = vunpack.c.l.b16 %v1796_v58 }
 0x366   :  { %v1717_v47 = vunpack.c.l.bf16 %v1701_v43 }
 0x367   :  { %v1863_v48 = vpack.c.b16 %v1850_v46, %v1849_v44 }
 0x368   :  { %v1749_v50 = vmul.f32 0.20019531, %v1717_v47  ;;  %vm1733_vm14 = vcmp.gt.f32.partialorder %v1717_v47, 0.0 }
 0x369   :  { %v1672_v49 = vpop.f32.mrf.mxu1  ;;  %1975 = vmatmul.bf16.gmra.mxu2 %v1863_v48  ;;  %2024 = vmatmul.bf16.gmra.mxu3 %v1863_v48  ;;  %vm1781_vm0 = vmpackc.low %vm1733_vm14, %vm1733_vm14 }
 0x36a   :  { %v1673_v51 = vadd.f32 %v3641_v55, %v1672_v49  ;;  %v1765_v52 = vpack.c.bf16 %v1749_v50, %v1749_v50 }
 0x36c   :  { %v1702_v8 = vpack.c.bf16 %v1673_v51, %v1673_v51  ;;  %v1797_v59 = vsel %vm1781_vm0, %v1701_v43, %v1765_v52 }
 0x36d   :  { %v1851_v63 = vunpack.c.l.b16 %v1797_v59 }
 0x36e   :  { %v1718_v53 = vunpack.c.l.bf16 %v1702_v8 }
 0x370   :  { %vm1734_vm15 = vcmp.gt.f32.partialorder %v1718_v53, 0.0  ;;  %v1750_v62 = vmul.f32 0.20019531, %v1718_v53 }
 0x371   :  { %v1675_v54 = vpop.f32.mrf.mxu1  ;;  %vm1782_vm1 = vmpackc.low %vm1734_vm15, %vm1734_vm15 }
 0x372   :  { %v1766_v56 = vpack.c.bf16 %v1750_v62, %v1750_v62  ;;  %v1676_v57 = vadd.f32 %v3641_v55, %v1675_v54 }
 0x374   :  { %v1703_v60 = vpack.c.bf16 %v1676_v57, %v1676_v57  ;;  %v1798_v61 = vsel %vm1782_vm1, %v1702_v8, %v1766_v56 }
 0x375   :  { %v1852_v0 = vunpack.c.l.b16 %v1798_v61 }
 0x376   :  { %v1719_v1 = vunpack.c.l.bf16 %v1703_v60 }
 0x377   :  { %v1864_v2 = vpack.c.b16 %v1852_v0, %v1851_v63 }
 0x378   :  { %v1751_v4 = vmul.f32 0.20019531, %v1719_v1  ;;  %vm1735_vm2 = vcmp.gt.f32.partialorder %v1719_v1, 0.0 }
 0x379   :  { %v1677_v3 = vpop.f32.mrf.mxu1  ;;  %1980 = vmatmul.bf16.gmra.mxu2 %v1864_v2  ;;  %2029 = vmatmul.bf16.gmra.mxu3 %v1864_v2  ;;  %vm1783_vm4 = vmpackc.low %vm1735_vm2, %vm1735_vm2 }
 0x37a   :  { %v1678_v45 = vadd.f32 %v3641_v55, %v1677_v3  ;;  %v1767_v6 = vpack.c.bf16 %v1751_v4, %v1751_v4 }
 0x37c   :  { %v1704_v5 = vpack.c.bf16 %v1678_v45, %v1678_v45  ;;  %v1799_v11 = vsel %vm1783_vm4, %v1703_v60, %v1767_v6 }
 0x37d   :  { %v1853_v16 = vunpack.c.l.b16 %v1799_v11 }
 0x37e   :  { %v1720_v7 = vunpack.c.l.bf16 %v1704_v5 }
 0x380   :  { %vm1736_vm3 = vcmp.gt.f32.partialorder %v1720_v7, 0.0  ;;  %v1752_v9 = vmul.f32 0.20019531, %v1720_v7 }
 0x381   :  { %v1680_v10 = vpop.f32.mrf.mxu1  ;;  %vm1784_vm5 = vmpackc.low %vm1736_vm3, %vm1736_vm3 }
 0x382   :  { %v1768_v12 = vpack.c.bf16 %v1752_v9, %v1752_v9  ;;  %v1681_v13 = vadd.f32 %v3641_v55, %v1680_v10 }
 0x384   :  { %v1800_v14 = vsel %vm1784_vm5, %v1704_v5, %v1768_v12  ;;  %v1705_v15 = vpack.c.bf16 %v1681_v13, %v1681_v13 }
 0x385   :  { %v1854_v17 = vunpack.c.l.b16 %v1800_v14 }
 0x386   :  { %v1721_v18 = vunpack.c.l.bf16 %v1705_v15 }
 0x387   :  { %v1865_v19 = vpack.c.b16 %v1854_v17, %v1853_v16 }
 0x388   :  { %v1753_v21 = vmul.f32 0.20019531, %v1721_v18  ;;  %vm1737_vm6 = vcmp.gt.f32.partialorder %v1721_v18, 0.0 }
 0x389   :  { %v1682_v20 = vpop.f32.mrf.mxu1  ;;  %1985 = vmatmul.bf16.gmra.mxu2 %v1865_v19  ;;  %2034 = vmatmul.bf16.gmra.mxu3 %v1865_v19  ;;  %vm1785_vm8 = vmpackc.low %vm1737_vm6, %vm1737_vm6 }
 0x38a   :  { %v1683_v22 = vadd.f32 %v3641_v55, %v1682_v20  ;;  %v1769_v24 = vpack.c.bf16 %v1753_v21, %v1753_v21 }
 0x38c   :  { %v1706_v23 = vpack.c.bf16 %v1683_v22, %v1683_v22  ;;  %v1801_v28 = vsel %vm1785_vm8, %v1705_v15, %v1769_v24 }
 0x38d   :  { %v1855_v33 = vunpack.c.l.b16 %v1801_v28 }
 0x38e   :  { %v1722_v25 = vunpack.c.l.bf16 %v1706_v23 }
 0x390   :  { %vm1738_vm7 = vcmp.gt.f32.partialorder %v1722_v25, 0.0  ;;  %v1754_v26 = vmul.f32 0.20019531, %v1722_v25 }
 0x391   :  { %v1685_v27 = vpop.f32.mrf.mxu1  ;;  %vm1786_vm9 = vmpackc.low %vm1738_vm7, %vm1738_vm7 }
 0x392   :  { %v1770_v29 = vpack.c.bf16 %v1754_v26, %v1754_v26  ;;  %v1686_v30 = vadd.f32 %v3641_v55, %v1685_v27 }
 0x394   :  { %v1802_v31 = vsel %vm1786_vm9, %v1706_v23, %v1770_v29  ;;  %v1707_v32 = vpack.c.bf16 %v1686_v30, %v1686_v30 }
 0x395   :  { %v1856_v34 = vunpack.c.l.b16 %v1802_v31 }
 0x396   :  { %v1723_v35 = vunpack.c.l.bf16 %v1707_v32 }
 0x397   :  { %v1866_v36 = vpack.c.b16 %v1856_v34, %v1855_v33 }
 0x398   :  { %v1755_v38 = vmul.f32 0.20019531, %v1723_v35  ;;  %vm1739_vm10 = vcmp.gt.f32.partialorder %v1723_v35, 0.0 }
 0x399   :  { %v1687_v37 = vpop.f32.mrf.mxu1  ;;  %1990 = vmatmul.bf16.gmra.mxu2 %v1866_v36  ;;  %2039 = vmatmul.bf16.gmra.mxu3 %v1866_v36  ;;  %vm1787_vm12 = vmpackc.low %vm1739_vm10, %vm1739_vm10 }
 0x39a   :  { %v1688_v39 = vadd.f32 %v3641_v55, %v1687_v37  ;;  %v1771_v41 = vpack.c.bf16 %v1755_v38, %v1755_v38 }
 0x39c   :  { %v1708_v40 = vpack.c.bf16 %v1688_v39, %v1688_v39  ;;  %v1803_v44 = vsel %vm1787_vm12, %v1707_v32, %v1771_v41 }
 0x39d   :  { %v1857_v50 = vunpack.c.l.b16 %v1803_v44 }
 0x39e   :  { %v1724_v42 = vunpack.c.l.bf16 %v1708_v40 }
 0x3a0   :  { %vm1740_vm11 = vcmp.gt.f32.partialorder %v1724_v42, 0.0  ;;  %v1756_v43 = vmul.f32 0.20019531, %v1724_v42 }
 0x3a1   :  { %v1690_v58 = vpop.f32.mrf.mxu1  ;;  %vm1788_vm13 = vmpackc.low %vm1740_vm11, %vm1740_vm11 }
 0x3a2   :  { %v1772_v46 = vpack.c.bf16 %v1756_v43, %v1756_v43  ;;  %v1691_v47 = vadd.f32 %v3641_v55, %v1690_v58 }
 0x3a4   :  { %v1804_v48 = vsel %vm1788_vm13, %v1708_v40, %v1772_v46  ;;  %v1709_v49 = vpack.c.bf16 %v1691_v47, %v1691_v47 }
 0x3a5   :  { %v1858_v51 = vunpack.c.l.b16 %v1804_v48 }
 0x3a6   :  { %v1725_v8 = vunpack.c.l.bf16 %v1709_v49 }
 0x3a7   :  { %v1867_v52 = vpack.c.b16 %v1858_v51, %v1857_v50 }
 0x3a8   :  { %v1757_v62 = vmul.f32 0.20019531, %v1725_v8  ;;  %vm1741_vm14 = vcmp.gt.f32.partialorder %v1725_v8, 0.0 }
 0x3a9   :  { %v1692_v53 = vpop.f32.mrf.mxu1  ;;  %1995 = vmatmul.bf16.gmra.mxu2 %v1867_v52  ;;  %2044 = vmatmul.bf16.gmra.mxu3 %v1867_v52  ;;  %vm1789_vm0 = vmpackc.low %vm1741_vm14, %vm1741_vm14 }
 0x3aa   :  { %v1693_v54 = vadd.f32 %v3641_v55, %v1692_v53  ;;  %v1773_v57 = vpack.c.bf16 %v1757_v62, %v1757_v62  ;;  %v1823_v55 = vld [vmem:[%s3756_s13] sm:$0x3]  ;;  %s3386_s13 = smov [#allocation17]  }
 0x3ab   :  { %v3662_v4 = vperm.slane %v1823_v55, 0  ;;  %v3664_v45 = vperm.slane %v1823_v55, 1  ;;  %s2474_s1 = sshll.u32 %s3386_s13, 4  ;;  %s2475_s1 = int_to_ptr.vmem [resolvable:$true] %s2474_s1 }
 0x3ac   :  { %v1710_v56 = vpack.c.bf16 %v1693_v54, %v1693_v54  ;;  %v1805_v61 = vsel %vm1789_vm0, %v1709_v49, %v1773_v57  ;;  %2482 = dma.vmem_to_hbm [thread:$0]  %s2475_s1, 2048, %s2477_s17, [#allocation18], %s3379_s22, %s3379_s22, %s3380_s23  }
 0x3ad   :  { %v1859_v1 = vunpack.c.l.b16 %v1805_v61  ;;  %s2461_s22 = sshll.u32 %s3387_s15, 4  ;;  %s2462_s22 = int_to_ptr.vmem [resolvable:$true] %s2461_s22 }
 0x3ae   :  { %v1726_v59 = vunpack.c.l.bf16 %v1710_v56 }
 0x3b0   :  { %vm1742_vm15 = vcmp.gt.f32.partialorder %v1726_v59, 0.0  ;;  %v1758_v60 = vmul.f32 0.20019531, %v1726_v59  ;;  %v3385_v59 = vmov 1065369472  }
 0x3b1   :  { %vm1790_vm1 = vmpackc.low %vm1742_vm15, %vm1742_vm15 }
 0x3b2   :  { %v1774_v63 = vpack.c.bf16 %v1758_v60, %v1758_v60  ;;  %v3674_v60 = vunpack.c.h.bf16 %v3385_v59 }
 0x3b4   :  { %v1806_v0 = vsel %vm1790_vm1, %v1710_v56, %v1774_v63 }
 0x3b5   :  { %v1860_v2 = vunpack.c.l.b16 %v1806_v0 }
 0x3b7   :  { %v1868_v3 = vpack.c.b16 %v1860_v2, %v1859_v1 }
 0x3b9   :  { %2000 = vmatmul.bf16.gmra.mxu2 %v1868_v3  ;;  %2049 = vmatmul.bf16.gmra.mxu3 %v1868_v3  ;;  %v3676_v3 = vunpack.c.l.bf16 %v3385_v59 }
 0x3cc   :  { %v1966_v5 = vpop.f32.mrf.mxu2  ;;  %v2015_v6 = vpop.f32.mrf.mxu3 }
 0x3cd   :  { %v1967_v7 = vadd.f32 %v1966_v5, %v3662_v4  ;;  %v2016_v9 = vadd.f32 %v2015_v6, %v3664_v45 }
 0x3cf   :  { %v2055_v10 = vpack.c.bf16 %v2016_v9, %v1967_v7 }
 0x3d1   :  { %v2071_v11 = vxor.u32 2147516416, %v2055_v10 }
 0x3d3   :  { %v2087_v12 = vunpack.c.l.bf16 %v2071_v11  ;;  %v2088_v13 = vunpack.c.h.bf16 %v2071_v11 }
 0x3d4   :  { %v1968_v14 = vpop.f32.mrf.mxu2  ;;  %v2017_v15 = vpop.f32.mrf.mxu3 }
 0x3d5   :  { %v2119_v16 = vmul.f32 1.442695, %v2087_v12  ;;  %v2121_v17 = vmul.f32 1.442695, %v2088_v13  ;;  %v1969_v18 = vadd.f32 %v1968_v14, %v3662_v4  ;;  %v2018_v19 = vadd.f32 %v2017_v15, %v3664_v45 }
 0x3d7   :  { %2991 = vpow2.f32 %v2119_v16  ;;  %v2056_v20 = vpack.c.bf16 %v2018_v19, %v1969_v18 }
 0x3d8   :  { %2993 = vpow2.f32 %v2121_v17 }
 0x3d9   :  { %v2072_v21 = vxor.u32 2147516416, %v2056_v20 }
 0x3db   :  { %v2089_v22 = vunpack.c.l.bf16 %v2072_v21  ;;  %v2090_v23 = vunpack.c.h.bf16 %v2072_v21 }
 0x3dc   :  { %v1971_v24 = vpop.f32.mrf.mxu2  ;;  %v2020_v25 = vpop.f32.mrf.mxu3 }
 0x3dd   :  { %v2992_v26 = vpop.eup %2991  ;;  %v2123_v27 = vmul.f32 1.442695, %v2089_v22  ;;  %v2125_v28 = vmul.f32 1.442695, %v2090_v23  ;;  %v1972_v29 = vadd.f32 %v1971_v24, %v3662_v4  ;;  %v2021_v30 = vadd.f32 %v2020_v25, %v3664_v45 }
 0x3de   :  { %v2994_v31 = vpop.eup %2993 }
 0x3df   :  { %v2183_v32 = vpack.c.bf16 %v2994_v31, %v2992_v26  ;;  %2995 = vpow2.f32 %v2123_v27  ;;  %v2057_v33 = vpack.c.bf16 %v2021_v30, %v1972_v29 }
 0x3e0   :  { %2997 = vpow2.f32 %v2125_v28 }
 0x3e1   :  { %v2199_v34 = vunpack.c.l.bf16 %v2183_v32  ;;  %v2200_v35 = vunpack.c.h.bf16 %v2183_v32  ;;  %v2073_v36 = vxor.u32 2147516416, %v2057_v33 }
 0x3e3   :  { %v2231_v37 = vadd.f32 1.0, %v2199_v34  ;;  %v2232_v38 = vadd.f32 1.0, %v2200_v35  ;;  %v2091_v39 = vunpack.c.l.bf16 %v2073_v36  ;;  %v2092_v40 = vunpack.c.h.bf16 %v2073_v36 }
 0x3e4   :  { %v1973_v41 = vpop.f32.mrf.mxu2  ;;  %v2022_v42 = vpop.f32.mrf.mxu3 }
 0x3e5   :  { %v2996_v43 = vpop.eup %2995  ;;  %v2263_v58 = vpack.c.bf16 %v2232_v38, %v2231_v37  ;;  %v2127_v44 = vmul.f32 1.442695, %v2091_v39  ;;  %v2129_v46 = vmul.f32 1.442695, %v2092_v40  ;;  %v1974_v47 = vadd.f32 %v1973_v41, %v3662_v4 }
 0x3e6   :  { %v2998_v48 = vpop.eup %2997  ;;  %v2023_v49 = vadd.f32 %v2022_v42, %v3664_v45 }
 0x3e7   :  { %v2281_v50 = vunpack.c.h.bf16 %v2263_v58  ;;  %v2282_v51 = vunpack.c.l.bf16 %v2263_v58  ;;  %v2184_v8 = vpack.c.bf16 %v2998_v48, %v2996_v43  ;;  %2999 = vpow2.f32 %v2127_v44 }
 0x3e8   :  { %3001 = vpow2.f32 %v2129_v46  ;;  %v2058_v52 = vpack.c.bf16 %v2023_v49, %v1974_v47 }
 0x3e9   :  { %3003 = vrcp.f32 %v2281_v50  ;;  %v2201_v53 = vunpack.c.l.bf16 %v2184_v8  ;;  %v2202_v62 = vunpack.c.h.bf16 %v2184_v8 }
 0x3ea   :  { %3005 = vrcp.f32 %v2282_v51  ;;  %v2074_v54 = vxor.u32 2147516416, %v2058_v52 }
 0x3eb   :  { %v2233_v56 = vadd.f32 1.0, %v2201_v53  ;;  %v2234_v57 = vadd.f32 1.0, %v2202_v62 }
 0x3ec   :  { %v2093_v61 = vunpack.c.l.bf16 %v2074_v54  ;;  %v2094_v63 = vunpack.c.h.bf16 %v2074_v54  ;;  %v1976_v0 = vpop.f32.mrf.mxu2  ;;  %v2025_v1 = vpop.f32.mrf.mxu3 }
 0x3ed   :  { %v3000_v2 = vpop.eup %2999  ;;  %v2264_v55 = vpack.c.bf16 %v2234_v57, %v2233_v56  ;;  %v1977_v5 = vadd.f32 %v1976_v0, %v3662_v4  ;;  %v2026_v6 = vadd.f32 %v2025_v1, %v3664_v45 }
 0x3ee   :  { %v3002_v7 = vpop.eup %3001  ;;  %v2131_v9 = vmul.f32 1.442695, %v2093_v61  ;;  %v2133_v10 = vmul.f32 1.442695, %v2094_v63 }
 0x3ef   :  { %v3004_v11 = vpop.eup %3003  ;;  %v2288_v12 = vunpack.c.h.bf16 %v2264_v55  ;;  %v2289_v13 = vunpack.c.l.bf16 %v2264_v55  ;;  %v2185_v14 = vpack.c.bf16 %v3002_v7, %v3000_v2  ;;  %v2059_v15 = vpack.c.bf16 %v2026_v6, %v1977_v5 }
 0x3f0   :  { %v3006_v16 = vpop.eup %3005  ;;  %v2284_v17 = vmul.f32 %v3004_v11, %v3674_v60  ;;  %3007 = vpow2.f32 %v2131_v9 }
 0x3f1   :  { %v2286_v18 = vmul.f32 %v3006_v16, %v3676_v3  ;;  %3009 = vrcp.f32 %v2288_v12  ;;  %v2203_v19 = vunpack.c.l.bf16 %v2185_v14  ;;  %v2204_v20 = vunpack.c.h.bf16 %v2185_v14 }
 0x3f2   :  { %3011 = vrcp.f32 %v2289_v13  ;;  %v2075_v21 = vxor.u32 2147516416, %v2059_v15 }
 0x3f3   :  { %v2287_v22 = vpack.c.bf16 %v2284_v17, %v2286_v18  ;;  %v2235_v23 = vadd.f32 1.0, %v2203_v19  ;;  %v2236_v24 = vadd.f32 1.0, %v2204_v20  ;;  %3013 = vpow2.f32 %v2133_v10 }
 0x3f4   :  { %v2095_v25 = vunpack.c.l.bf16 %v2075_v21  ;;  %v2096_v26 = vunpack.c.h.bf16 %v2075_v21  ;;  %v1978_v27 = vpop.f32.mrf.mxu2  ;;  %v2027_v28 = vpop.f32.mrf.mxu3 }
 0x3f5   :  { %v2393_v29 = vunpack.c.l.bf16 %v2287_v22  ;;  %v2394_v30 = vunpack.c.h.bf16 %v2287_v22  ;;  %v2265_v31 = vpack.c.bf16 %v2236_v24, %v2235_v23  ;;  %v1979_v32 = vadd.f32 %v1978_v27, %v3662_v4 }
 0x3f6   :  { %v3008_v33 = vpop.eup %3007  ;;  %v2135_v34 = vmul.f32 1.442695, %v2095_v25  ;;  %v2028_v35 = vadd.f32 %v2027_v28, %v3664_v45  ;;  %v2137_v39 = vmul.f32 1.442695, %v2096_v26 }
 0x3f7   :  { %v3010_v36 = vpop.eup %3009  ;;  %2425 = vst [vmem:[#allocation16] sm:$0xff] %v2393_v29  ;;  %v2295_v37 = vunpack.c.h.bf16 %v2265_v31  ;;  %v2296_v38 = vunpack.c.l.bf16 %v2265_v31 }
 0x3f8   :  { %v3012_v40 = vpop.eup %3011  ;;  %2426 = vst [vmem:[#allocation16 + $0x8] sm:$0xff] %v2394_v30  ;;  %v2291_v41 = vmul.f32 %v3010_v36, %v3674_v60  ;;  %3015 = vpow2.f32 %v2135_v34  ;;  %v2060_v42 = vpack.c.bf16 %v2028_v35, %v1979_v32 }
 0x3f9   :  { %v3014_v43 = vpop.eup %3013  ;;  %v2293_v58 = vmul.f32 %v3012_v40, %v3676_v3  ;;  %3017 = vrcp.f32 %v2295_v37 }
 0x3fa   :  { %3019 = vrcp.f32 %v2296_v38  ;;  %v2186_v44 = vpack.c.bf16 %v3014_v43, %v3008_v33  ;;  %v2076_v46 = vxor.u32 2147516416, %v2060_v42 }
 0x3fb   :  { %v2294_v47 = vpack.c.bf16 %v2291_v41, %v2293_v58  ;;  %3021 = vpow2.f32 %v2137_v39 }
 0x3fc   :  { %v2205_v48 = vunpack.c.l.bf16 %v2186_v44  ;;  %v2206_v49 = vunpack.c.h.bf16 %v2186_v44  ;;  %v2097_v50 = vunpack.c.l.bf16 %v2076_v46  ;;  %v2098_v51 = vunpack.c.h.bf16 %v2076_v46  ;;  %v1981_v8 = vpop.f32.mrf.mxu2  ;;  %v2030_v52 = vpop.f32.mrf.mxu3 }
 0x3fd   :  { %v2395_v53 = vunpack.c.l.bf16 %v2294_v47  ;;  %v2396_v62 = vunpack.c.h.bf16 %v2294_v47  ;;  %v1982_v54 = vadd.f32 %v1981_v8, %v3662_v4  ;;  %v2031_v56 = vadd.f32 %v2030_v52, %v3664_v45 }
 0x3fe   :  { %v3016_v57 = vpop.eup %3015  ;;  %v2237_v59 = vadd.f32 1.0, %v2205_v48  ;;  %v2238_v61 = vadd.f32 1.0, %v2206_v49  ;;  %v2139_v63 = vmul.f32 1.442695, %v2097_v50  ;;  %v2141_v0 = vmul.f32 1.442695, %v2098_v51 }
 0x3ff   :  { %v3018_v1 = vpop.eup %3017  ;;  %2427 = vst [vmem:[#allocation16 + $0x10] sm:$0xff] %v2395_v53  ;;  %v2061_v2 = vpack.c.bf16 %v2031_v56, %v1982_v54 }
 0x400   :  { %v3020_v55 = vpop.eup %3019  ;;  %2428 = vst [vmem:[#allocation16 + $0x18] sm:$0xff] %v2396_v62  ;;  %v2298_v5 = vmul.f32 %v3018_v1, %v3674_v60  ;;  %v2266_v6 = vpack.c.bf16 %v2238_v61, %v2237_v59  ;;  %3023 = vpow2.f32 %v2139_v63 }
 0x401   :  { %v3022_v7 = vpop.eup %3021  ;;  %v2300_v9 = vmul.f32 %v3020_v55, %v3676_v3  ;;  %3025 = vpow2.f32 %v2141_v0  ;;  %v2077_v10 = vxor.u32 2147516416, %v2061_v2 }
 0x402   :  { %v2302_v11 = vunpack.c.h.bf16 %v2266_v6  ;;  %v2303_v12 = vunpack.c.l.bf16 %v2266_v6  ;;  %v2187_v13 = vpack.c.bf16 %v3022_v7, %v3016_v57 }
 0x403   :  { %v2301_v14 = vpack.c.bf16 %v2298_v5, %v2300_v9  ;;  %v2099_v15 = vunpack.c.l.bf16 %v2077_v10  ;;  %v2100_v16 = vunpack.c.h.bf16 %v2077_v10 }
 0x404   :  { %3027 = vrcp.f32 %v2302_v11  ;;  %v2207_v17 = vunpack.c.l.bf16 %v2187_v13  ;;  %v2208_v18 = vunpack.c.h.bf16 %v2187_v13  ;;  %v1983_v19 = vpop.f32.mrf.mxu2  ;;  %v2032_v20 = vpop.f32.mrf.mxu3 }
 0x405   :  { %v2397_v21 = vunpack.c.l.bf16 %v2301_v14  ;;  %v2398_v22 = vunpack.c.h.bf16 %v2301_v14  ;;  %3029 = vrcp.f32 %v2303_v12  ;;  %v2143_v23 = vmul.f32 1.442695, %v2099_v15 }
 0x406   :  { %v3024_v24 = vpop.eup %3023  ;;  %v2239_v25 = vadd.f32 1.0, %v2207_v17  ;;  %v2240_v26 = vadd.f32 1.0, %v2208_v18  ;;  %v2145_v27 = vmul.f32 1.442695, %v2100_v16  ;;  %v1984_v28 = vadd.f32 %v1983_v19, %v3662_v4 }
 0x407   :  { %v3026_v29 = vpop.eup %3025  ;;  %2429 = vst [vmem:[#allocation16 + $0x20] sm:$0xff] %v2397_v21  ;;  %3031 = vpow2.f32 %v2143_v23  ;;  %v2033_v30 = vadd.f32 %v2032_v20, %v3664_v45 }
 0x408   :  { %2430 = vst [vmem:[#allocation16 + $0x28] sm:$0xff] %v2398_v22  ;;  %v2267_v31 = vpack.c.bf16 %v2240_v26, %v2239_v25  ;;  %v2188_v32 = vpack.c.bf16 %v3026_v29, %v3024_v24  ;;  %3033 = vpow2.f32 %v2145_v27 }
 0x409   :  { %v2062_v33 = vpack.c.bf16 %v2033_v30, %v1984_v28 }
 0x40a   :  { %v3028_v34 = vpop.eup %3027  ;;  %v2309_v35 = vunpack.c.h.bf16 %v2267_v31  ;;  %v2310_v36 = vunpack.c.l.bf16 %v2267_v31  ;;  %v2209_v37 = vunpack.c.l.bf16 %v2188_v32  ;;  %v2210_v38 = vunpack.c.h.bf16 %v2188_v32 }
 0x40b   :  { %v3030_v39 = vpop.eup %3029  ;;  %v2305_v40 = vmul.f32 %v3028_v34, %v3674_v60  ;;  %v2078_v41 = vxor.u32 2147516416, %v2062_v33 }
 0x40c   :  { %v2307_v42 = vmul.f32 %v3030_v39, %v3676_v3  ;;  %3035 = vrcp.f32 %v2309_v35  ;;  %v2241_v43 = vadd.f32 1.0, %v2209_v37  ;;  %v2242_v58 = vadd.f32 1.0, %v2210_v38  ;;  %v1986_v44 = vpop.f32.mrf.mxu2  ;;  %v2035_v46 = vpop.f32.mrf.mxu3 }
 0x40d   :  { %v3032_v47 = vpop.eup %3031  ;;  %3037 = vrcp.f32 %v2310_v36  ;;  %v2101_v48 = vunpack.c.l.bf16 %v2078_v41  ;;  %v2102_v49 = vunpack.c.h.bf16 %v2078_v41  ;;  %v1987_v50 = vadd.f32 %v1986_v44, %v3662_v4 }
 0x40e   :  { %v3034_v51 = vpop.eup %3033  ;;  %v2308_v8 = vpack.c.bf16 %v2305_v40, %v2307_v42  ;;  %v2268_v52 = vpack.c.bf16 %v2242_v58, %v2241_v43  ;;  %v2036_v53 = vadd.f32 %v2035_v46, %v3664_v45 }
 0x40f   :  { %v2189_v62 = vpack.c.bf16 %v3034_v51, %v3032_v47  ;;  %v2147_v54 = vmul.f32 1.442695, %v2101_v48  ;;  %v2149_v56 = vmul.f32 1.442695, %v2102_v49 }
 0x410   :  { %v2399_v57 = vunpack.c.l.bf16 %v2308_v8  ;;  %v2400_v59 = vunpack.c.h.bf16 %v2308_v8  ;;  %v2316_v61 = vunpack.c.h.bf16 %v2268_v52  ;;  %v2317_v63 = vunpack.c.l.bf16 %v2268_v52 }
 0x411   :  { %v2211_v0 = vunpack.c.l.bf16 %v2189_v62  ;;  %v2212_v1 = vunpack.c.h.bf16 %v2189_v62  ;;  %3039 = vpow2.f32 %v2147_v54  ;;  %v2063_v2 = vpack.c.bf16 %v2036_v53, %v1987_v50 }
 0x412   :  { %v3036_v55 = vpop.eup %3035  ;;  %2431 = vst [vmem:[#allocation16 + $0x30] sm:$0xff] %v2399_v57  ;;  %3041 = vrcp.f32 %v2316_v61 }
 0x413   :  { %v3038_v5 = vpop.eup %3037  ;;  %2432 = vst [vmem:[#allocation16 + $0x38] sm:$0xff] %v2400_v59  ;;  %v2312_v6 = vmul.f32 %v3036_v55, %v3674_v60  ;;  %3043 = vrcp.f32 %v2317_v63  ;;  %v2243_v7 = vadd.f32 1.0, %v2211_v0  ;;  %v2244_v9 = vadd.f32 1.0, %v2212_v1 }
 0x414   :  { %v2314_v10 = vmul.f32 %v3038_v5, %v3676_v3  ;;  %3045 = vpow2.f32 %v2149_v56  ;;  %v2079_v11 = vxor.u32 2147516416, %v2063_v2  ;;  %v1988_v12 = vpop.f32.mrf.mxu2  ;;  %v2037_v13 = vpop.f32.mrf.mxu3 }
 0x415   :  { %v2269_v14 = vpack.c.bf16 %v2244_v9, %v2243_v7  ;;  %v1989_v15 = vadd.f32 %v1988_v12, %v3662_v4  ;;  %v2038_v16 = vadd.f32 %v2037_v13, %v3664_v45 }
 0x416   :  { %v2315_v17 = vpack.c.bf16 %v2312_v6, %v2314_v10  ;;  %v2103_v18 = vunpack.c.l.bf16 %v2079_v11  ;;  %v2104_v19 = vunpack.c.h.bf16 %v2079_v11 }
 0x417   :  { %v3040_v20 = vpop.eup %3039  ;;  %v2323_v21 = vunpack.c.h.bf16 %v2269_v14  ;;  %v2324_v22 = vunpack.c.l.bf16 %v2269_v14  ;;  %v2064_v23 = vpack.c.bf16 %v2038_v16, %v1989_v15 }
 0x418   :  { %v3042_v24 = vpop.eup %3041  ;;  %v2401_v25 = vunpack.c.l.bf16 %v2315_v17  ;;  %v2402_v26 = vunpack.c.h.bf16 %v2315_v17  ;;  %v2151_v27 = vmul.f32 1.442695, %v2103_v18  ;;  %v2153_v28 = vmul.f32 1.442695, %v2104_v19 }
 0x419   :  { %v3044_v29 = vpop.eup %3043  ;;  %v2319_v30 = vmul.f32 %v3042_v24, %v3674_v60  ;;  %3047 = vrcp.f32 %v2323_v21  ;;  %v2080_v31 = vxor.u32 2147516416, %v2064_v23 }
 0x41a   :  { %v3046_v32 = vpop.eup %3045  ;;  %2433 = vst [vmem:[#allocation16 + $0x40] sm:$0xff] %v2401_v25  ;;  %v2321_v33 = vmul.f32 %v3044_v29, %v3676_v3  ;;  %3049 = vrcp.f32 %v2324_v22 }
 0x41b   :  { %2434 = vst [vmem:[#allocation16 + $0x48] sm:$0xff] %v2402_v26  ;;  %v2190_v34 = vpack.c.bf16 %v3046_v32, %v3040_v20  ;;  %3051 = vpow2.f32 %v2151_v27  ;;  %v2105_v35 = vunpack.c.l.bf16 %v2080_v31  ;;  %v2106_v36 = vunpack.c.h.bf16 %v2080_v31 }
 0x41c   :  { %v2322_v37 = vpack.c.bf16 %v2319_v30, %v2321_v33  ;;  %3053 = vpow2.f32 %v2153_v28  ;;  %v1991_v38 = vpop.f32.mrf.mxu2  ;;  %v2040_v39 = vpop.f32.mrf.mxu3 }
 0x41d   :  { %v2213_v40 = vunpack.c.l.bf16 %v2190_v34  ;;  %v2214_v41 = vunpack.c.h.bf16 %v2190_v34  ;;  %v2155_v42 = vmul.f32 1.442695, %v2105_v35  ;;  %v2157_v43 = vmul.f32 1.442695, %v2106_v36 }
 0x41e   :  { %v2403_v58 = vunpack.c.l.bf16 %v2322_v37  ;;  %v2404_v44 = vunpack.c.h.bf16 %v2322_v37  ;;  %v1992_v46 = vadd.f32 %v1991_v38, %v3662_v4  ;;  %v2041_v47 = vadd.f32 %v2040_v39, %v3664_v45 }
 0x41f   :  { %v3048_v48 = vpop.eup %3047  ;;  %v2245_v49 = vadd.f32 1.0, %v2213_v40  ;;  %v2246_v50 = vadd.f32 1.0, %v2214_v41  ;;  %3055 = vpow2.f32 %v2155_v42 }
 0x420   :  { %v3050_v51 = vpop.eup %3049  ;;  %2435 = vst [vmem:[#allocation16 + $0x50] sm:$0xff] %v2403_v58  ;;  %v2326_v8 = vmul.f32 %v3048_v48, %v3674_v60  ;;  %3057 = vpow2.f32 %v2157_v43  ;;  %v2065_v52 = vpack.c.bf16 %v2041_v47, %v1992_v46 }
 0x421   :  { %v3052_v53 = vpop.eup %3051  ;;  %2436 = vst [vmem:[#allocation16 + $0x58] sm:$0xff] %v2404_v44  ;;  %v2328_v62 = vmul.f32 %v3050_v51, %v3676_v3  ;;  %v2270_v54 = vpack.c.bf16 %v2246_v50, %v2245_v49 }
 0x422   :  { %v3054_v56 = vpop.eup %3053  ;;  %v2081_v57 = vxor.u32 2147516416, %v2065_v52 }
 0x423   :  { %v2329_v59 = vpack.c.bf16 %v2326_v8, %v2328_v62  ;;  %v2330_v61 = vunpack.c.h.bf16 %v2270_v54  ;;  %v2331_v63 = vunpack.c.l.bf16 %v2270_v54  ;;  %v2191_v0 = vpack.c.bf16 %v3054_v56, %v3052_v53 }
 0x424   :  { %v2107_v1 = vunpack.c.l.bf16 %v2081_v57  ;;  %v2108_v2 = vunpack.c.h.bf16 %v2081_v57  ;;  %v1993_v55 = vpop.f32.mrf.mxu2  ;;  %v2042_v5 = vpop.f32.mrf.mxu3 }
 0x425   :  { %v3056_v6 = vpop.eup %3055  ;;  %v2405_v7 = vunpack.c.l.bf16 %v2329_v59  ;;  %v2406_v9 = vunpack.c.h.bf16 %v2329_v59  ;;  %3059 = vrcp.f32 %v2330_v61  ;;  %v2215_v10 = vunpack.c.l.bf16 %v2191_v0 }
 0x426   :  { %v3058_v11 = vpop.eup %3057  ;;  %3061 = vrcp.f32 %v2331_v63  ;;  %v2216_v12 = vunpack.c.h.bf16 %v2191_v0  ;;  %v2159_v13 = vmul.f32 1.442695, %v2107_v1  ;;  %v2161_v14 = vmul.f32 1.442695, %v2108_v2 }
 0x427   :  { %2437 = vst [vmem:[#allocation16 + $0x60] sm:$0xff] %v2405_v7  ;;  %v2247_v15 = vadd.f32 1.0, %v2215_v10  ;;  %v2192_v16 = vpack.c.bf16 %v3058_v11, %v3056_v6  ;;  %v1994_v17 = vadd.f32 %v1993_v55, %v3662_v4  ;;  %v2043_v18 = vadd.f32 %v2042_v5, %v3664_v45 }
 0x428   :  { %2438 = vst [vmem:[#allocation16 + $0x68] sm:$0xff] %v2406_v9  ;;  %v2248_v19 = vadd.f32 1.0, %v2216_v12  ;;  %3063 = vpow2.f32 %v2159_v13 }
 0x429   :  { %v2217_v20 = vunpack.c.l.bf16 %v2192_v16  ;;  %v2218_v21 = vunpack.c.h.bf16 %v2192_v16  ;;  %3065 = vpow2.f32 %v2161_v14  ;;  %v2066_v22 = vpack.c.bf16 %v2043_v18, %v1994_v17 }
 0x42a   :  { %v2271_v23 = vpack.c.bf16 %v2248_v19, %v2247_v15 }
 0x42b   :  { %v3060_v24 = vpop.eup %3059  ;;  %v2249_v25 = vadd.f32 1.0, %v2217_v20  ;;  %v2250_v26 = vadd.f32 1.0, %v2218_v21  ;;  %v2082_v27 = vxor.u32 2147516416, %v2066_v22 }
 0x42c   :  { %v3062_v28 = vpop.eup %3061  ;;  %v2333_v29 = vmul.f32 %v3060_v24, %v3674_v60  ;;  %v2337_v30 = vunpack.c.h.bf16 %v2271_v23  ;;  %v2338_v31 = vunpack.c.l.bf16 %v2271_v23  ;;  %v1996_v32 = vpop.f32.mrf.mxu2 }
 0x42d   :  { %v2045_v33 = vpop.f32.mrf.mxu3  ;;  %v2335_v34 = vmul.f32 %v3062_v28, %v3676_v3  ;;  %v2272_v35 = vpack.c.bf16 %v2250_v26, %v2249_v25  ;;  %v2109_v36 = vunpack.c.l.bf16 %v2082_v27  ;;  %v2110_v37 = vunpack.c.h.bf16 %v2082_v27 }
 0x42e   :  { %v3064_v38 = vpop.eup %3063  ;;  %3067 = vrcp.f32 %v2337_v30  ;;  %v1997_v39 = vadd.f32 %v1996_v32, %v3662_v4  ;;  %v2046_v40 = vadd.f32 %v2045_v33, %v3664_v45 }
 0x42f   :  { %v3066_v41 = vpop.eup %3065  ;;  %v2336_v42 = vpack.c.bf16 %v2333_v29, %v2335_v34  ;;  %3069 = vrcp.f32 %v2338_v31  ;;  %v2344_v43 = vunpack.c.h.bf16 %v2272_v35  ;;  %v2345_v58 = vunpack.c.l.bf16 %v2272_v35 }
 0x430   :  { %v2193_v44 = vpack.c.bf16 %v3066_v41, %v3064_v38  ;;  %v2163_v46 = vmul.f32 1.442695, %v2109_v36  ;;  %v2165_v47 = vmul.f32 1.442695, %v2110_v37  ;;  %v2067_v48 = vpack.c.bf16 %v2046_v40, %v1997_v39 }
 0x431   :  { %v2407_v49 = vunpack.c.l.bf16 %v2336_v42  ;;  %v2408_v50 = vunpack.c.h.bf16 %v2336_v42  ;;  %3071 = vrcp.f32 %v2344_v43 }
 0x432   :  { %3073 = vrcp.f32 %v2345_v58  ;;  %v2219_v51 = vunpack.c.l.bf16 %v2193_v44  ;;  %v2220_v8 = vunpack.c.h.bf16 %v2193_v44  ;;  %v2083_v52 = vxor.u32 2147516416, %v2067_v48 }
 0x433   :  { %2439 = vst [vmem:[#allocation16 + $0x70] sm:$0xff] %v2407_v49  ;;  %3075 = vpow2.f32 %v2163_v46 }
 0x434   :  { %v3068_v53 = vpop.eup %3067  ;;  %2440 = vst [vmem:[#allocation16 + $0x78] sm:$0xff] %v2408_v50  ;;  %v2251_v62 = vadd.f32 1.0, %v2219_v51  ;;  %v2252_v54 = vadd.f32 1.0, %v2220_v8  ;;  %3077 = vpow2.f32 %v2165_v47  ;;  %v2111_v56 = vunpack.c.l.bf16 %v2083_v52  ;;  %v1998_v57 = vpop.f32.mrf.mxu2 }
 0x435   :  { %v2047_v59 = vpop.f32.mrf.mxu3  ;;  %v3070_v61 = vpop.eup %3069  ;;  %v2340_v63 = vmul.f32 %v3068_v53, %v3674_v60  ;;  %v2112_v0 = vunpack.c.h.bf16 %v2083_v52  ;;  %v1999_v1 = vadd.f32 %v1998_v57, %v3662_v4 }
 0x436   :  { %v2048_v2 = vadd.f32 %v2047_v59, %v3664_v45  ;;  %v2342_v55 = vmul.f32 %v3070_v61, %v3676_v3  ;;  %v2273_v5 = vpack.c.bf16 %v2252_v54, %v2251_v62  ;;  %v2167_v6 = vmul.f32 1.442695, %v2111_v56 }
 0x437   :  { %v3072_v7 = vpop.eup %3071  ;;  %v2169_v9 = vmul.f32 1.442695, %v2112_v0 }
 0x438   :  { %v2068_v10 = vpack.c.bf16 %v2048_v2, %v1999_v1  ;;  %v3074_v11 = vpop.eup %3073  ;;  %v2343_v12 = vpack.c.bf16 %v2340_v63, %v2342_v55  ;;  %v2347_v13 = vmul.f32 %v3072_v7, %v3674_v60  ;;  %v2351_v14 = vunpack.c.h.bf16 %v2273_v5 }
 0x439   :  { %v2352_v15 = vunpack.c.l.bf16 %v2273_v5  ;;  %v3076_v16 = vpop.eup %3075  ;;  %v2349_v17 = vmul.f32 %v3074_v11, %v3676_v3  ;;  %3079 = vpow2.f32 %v2167_v6 }
 0x43a   :  { %v2084_v18 = vxor.u32 2147516416, %v2068_v10  ;;  %v3078_v19 = vpop.eup %3077  ;;  %v2409_v20 = vunpack.c.l.bf16 %v2343_v12  ;;  %v2410_v21 = vunpack.c.h.bf16 %v2343_v12  ;;  %3081 = vrcp.f32 %v2351_v14 }
 0x43b   :  { %v2350_v22 = vpack.c.bf16 %v2347_v13, %v2349_v17  ;;  %3083 = vrcp.f32 %v2352_v15  ;;  %v2194_v23 = vpack.c.bf16 %v3078_v19, %v3076_v16 }
 0x43c   :  { %v2113_v24 = vunpack.c.l.bf16 %v2084_v18  ;;  %2441 = vst [vmem:[#allocation16 + $0x80] sm:$0xff] %v2409_v20  ;;  %3085 = vpow2.f32 %v2169_v9  ;;  %v2114_v25 = vunpack.c.h.bf16 %v2084_v18  ;;  %v2001_v26 = vpop.f32.mrf.mxu2 }
 0x43d   :  { %v2050_v27 = vpop.f32.mrf.mxu3  ;;  %2442 = vst [vmem:[#allocation16 + $0x88] sm:$0xff] %v2410_v21  ;;  %v2411_v28 = vunpack.c.l.bf16 %v2350_v22  ;;  %v2412_v29 = vunpack.c.h.bf16 %v2350_v22  ;;  %v2221_v30 = vunpack.c.l.bf16 %v2194_v23  ;;  %v2222_v31 = vunpack.c.h.bf16 %v2194_v23 }
 0x43e   :  { %v2171_v32 = vmul.f32 1.442695, %v2113_v24  ;;  %v2173_v33 = vmul.f32 1.442695, %v2114_v25  ;;  %v2002_v34 = vadd.f32 %v2001_v26, %v3662_v4  ;;  %v2051_v35 = vadd.f32 %v2050_v27, %v3664_v45 }
 0x43f   :  { %v3080_v36 = vpop.eup %3079  ;;  %2443 = vst [vmem:[#allocation16 + $0x90] sm:$0xff] %v2411_v28  ;;  %v2253_v37 = vadd.f32 1.0, %v2221_v30  ;;  %v2254_v38 = vadd.f32 1.0, %v2222_v31 }
 0x440   :  { %v3082_v39 = vpop.eup %3081  ;;  %2444 = vst [vmem:[#allocation16 + $0x98] sm:$0xff] %v2412_v29  ;;  %3087 = vpow2.f32 %v2171_v32  ;;  %v2069_v40 = vpack.c.bf16 %v2051_v35, %v2002_v34 }
 0x441   :  { %v3084_v41 = vpop.eup %3083  ;;  %v2354_v42 = vmul.f32 %v3082_v39, %v3674_v60  ;;  %v2274_v43 = vpack.c.bf16 %v2254_v38, %v2253_v37  ;;  %3089 = vpow2.f32 %v2173_v33 }
 0x442   :  { %v3086_v58 = vpop.eup %3085  ;;  %v2356_v44 = vmul.f32 %v3084_v41, %v3676_v3  ;;  %v2085_v46 = vxor.u32 2147516416, %v2069_v40 }
 0x443   :  { %v2358_v47 = vunpack.c.h.bf16 %v2274_v43  ;;  %v2359_v48 = vunpack.c.l.bf16 %v2274_v43  ;;  %v2195_v49 = vpack.c.bf16 %v3086_v58, %v3080_v36 }
 0x444   :  { %v2357_v50 = vpack.c.bf16 %v2354_v42, %v2356_v44  ;;  %v2115_v51 = vunpack.c.l.bf16 %v2085_v46  ;;  %v2116_v8 = vunpack.c.h.bf16 %v2085_v46  ;;  %v2003_v52 = vpop.f32.mrf.mxu2 }
 0x445   :  { %v2052_v53 = vpop.f32.mrf.mxu3  ;;  %3091 = vrcp.f32 %v2358_v47  ;;  %v2223_v62 = vunpack.c.l.bf16 %v2195_v49  ;;  %v2224_v54 = vunpack.c.h.bf16 %v2195_v49  ;;  %v2004_v56 = vadd.f32 %v2003_v52, %v3662_v4 }
 0x446   :  { %v3088_v57 = vpop.eup %3087  ;;  %v2413_v59 = vunpack.c.l.bf16 %v2357_v50  ;;  %v2414_v61 = vunpack.c.h.bf16 %v2357_v50  ;;  %3093 = vrcp.f32 %v2359_v48  ;;  %v2175_v63 = vmul.f32 1.442695, %v2115_v51 }
 0x447   :  { %v3090_v0 = vpop.eup %3089  ;;  %v2255_v1 = vadd.f32 1.0, %v2223_v62  ;;  %v2256_v2 = vadd.f32 1.0, %v2224_v54  ;;  %v2177_v55 = vmul.f32 1.442695, %v2116_v8  ;;  %v2053_v5 = vadd.f32 %v2052_v53, %v3664_v45 }
 0x448   :  { %2445 = vst [vmem:[#allocation16 + $0xa0] sm:$0xff] %v2413_v59  ;;  %v2196_v6 = vpack.c.bf16 %v3090_v0, %v3088_v57  ;;  %3095 = vpow2.f32 %v2175_v63 }
 0x449   :  { %2446 = vst [vmem:[#allocation16 + $0xa8] sm:$0xff] %v2414_v61  ;;  %v2275_v7 = vpack.c.bf16 %v2256_v2, %v2255_v1  ;;  %3097 = vpow2.f32 %v2177_v55  ;;  %v2070_v9 = vpack.c.bf16 %v2053_v5, %v2004_v56 }
 0x44a   :  { %v2225_v10 = vunpack.c.l.bf16 %v2196_v6  ;;  %v2226_v4 = vunpack.c.h.bf16 %v2196_v6 }
 0x44b   :  { %v3092_v11 = vpop.eup %3091  ;;  %v2365_v12 = vunpack.c.h.bf16 %v2275_v7  ;;  %v2366_v13 = vunpack.c.l.bf16 %v2275_v7  ;;  %v2086_v14 = vxor.u32 2147516416, %v2070_v9 }
 0x44c   :  { %v3094_v15 = vpop.eup %3093  ;;  %v2361_v16 = vmul.f32 %v3092_v11, %v3674_v60  ;;  %v2257_v17 = vadd.f32 1.0, %v2225_v10  ;;  %v2258_v18 = vadd.f32 1.0, %v2226_v4 }
 0x44d   :  { %v2363_v45 = vmul.f32 %v3094_v15, %v3676_v3  ;;  %3099 = vrcp.f32 %v2365_v12  ;;  %v2117_v19 = vunpack.c.l.bf16 %v2086_v14  ;;  %v2118_v20 = vunpack.c.h.bf16 %v2086_v14 }
 0x44e   :  { %v3096_v21 = vpop.eup %3095  ;;  %3101 = vrcp.f32 %v2366_v13  ;;  %v2276_v22 = vpack.c.bf16 %v2258_v18, %v2257_v17 }
 0x44f   :  { %v3098_v23 = vpop.eup %3097  ;;  %v2364_v24 = vpack.c.bf16 %v2361_v16, %v2363_v45  ;;  %v2179_v25 = vmul.f32 1.442695, %v2117_v19  ;;  %v2181_v29 = vmul.f32 1.442695, %v2118_v20 }
 0x450   :  { %v2372_v26 = vunpack.c.h.bf16 %v2276_v22  ;;  %v2373_v27 = vunpack.c.l.bf16 %v2276_v22  ;;  %v2197_v28 = vpack.c.bf16 %v3098_v23, %v3096_v21 }
 0x451   :  { %v2415_v30 = vunpack.c.l.bf16 %v2364_v24  ;;  %v2416_v31 = vunpack.c.h.bf16 %v2364_v24  ;;  %3103 = vpow2.f32 %v2179_v25 }
 0x452   :  { %3105 = vrcp.f32 %v2372_v26  ;;  %v2227_v32 = vunpack.c.l.bf16 %v2197_v28  ;;  %v2228_v33 = vunpack.c.h.bf16 %v2197_v28 }
 0x453   :  { %v3100_v34 = vpop.eup %3099  ;;  %2447 = vst [vmem:[#allocation16 + $0xb0] sm:$0xff] %v2415_v30  ;;  %3107 = vrcp.f32 %v2373_v27 }
 0x454   :  { %v3102_v35 = vpop.eup %3101  ;;  %2448 = vst [vmem:[#allocation16 + $0xb8] sm:$0xff] %v2416_v31  ;;  %v2368_v36 = vmul.f32 %v3100_v34, %v3674_v60  ;;  %v2259_v37 = vadd.f32 1.0, %v2227_v32  ;;  %v2260_v38 = vadd.f32 1.0, %v2228_v33  ;;  %3109 = vpow2.f32 %v2181_v29 }
 0x455   :  { %v2370_v39 = vmul.f32 %v3102_v35, %v3676_v3 }
 0x456   :  { %v2277_v40 = vpack.c.bf16 %v2260_v38, %v2259_v37 }
 0x457   :  { %v3104_v41 = vpop.eup %3103  ;;  %v2371_v42 = vpack.c.bf16 %v2368_v36, %v2370_v39 }
 0x458   :  { %v3106_v43 = vpop.eup %3105  ;;  %v2379_v58 = vunpack.c.h.bf16 %v2277_v40  ;;  %v2380_v44 = vunpack.c.l.bf16 %v2277_v40 }
 0x459   :  { %v3108_v46 = vpop.eup %3107  ;;  %v2417_v47 = vunpack.c.l.bf16 %v2371_v42  ;;  %v2418_v48 = vunpack.c.h.bf16 %v2371_v42  ;;  %v2375_v49 = vmul.f32 %v3106_v43, %v3674_v60 }
 0x45a   :  { %v3110_v50 = vpop.eup %3109  ;;  %v2377_v51 = vmul.f32 %v3108_v46, %v3676_v3  ;;  %3111 = vrcp.f32 %v2379_v58 }
 0x45b   :  { %2449 = vst [vmem:[#allocation16 + $0xc0] sm:$0xff] %v2417_v47  ;;  %3113 = vrcp.f32 %v2380_v44  ;;  %v2198_v8 = vpack.c.bf16 %v3110_v50, %v3104_v41 }
 0x45c   :  { %2450 = vst [vmem:[#allocation16 + $0xc8] sm:$0xff] %v2418_v48  ;;  %v2378_v52 = vpack.c.bf16 %v2375_v49, %v2377_v51 }
 0x45d   :  { %v2229_v53 = vunpack.c.l.bf16 %v2198_v8  ;;  %v2230_v62 = vunpack.c.h.bf16 %v2198_v8 }
 0x45e   :  { %v2419_v54 = vunpack.c.l.bf16 %v2378_v52  ;;  %v2420_v56 = vunpack.c.h.bf16 %v2378_v52 }
 0x45f   :  { %v2261_v57 = vadd.f32 1.0, %v2229_v53  ;;  %v2262_v59 = vadd.f32 1.0, %v2230_v62 }
 0x460   :  { %v3112_v61 = vpop.eup %3111  ;;  %2451 = vst [vmem:[#allocation16 + $0xd0] sm:$0xff] %v2419_v54 }
 0x461   :  { %v3114_v63 = vpop.eup %3113  ;;  %2452 = vst [vmem:[#allocation16 + $0xd8] sm:$0xff] %v2420_v56  ;;  %v2382_v0 = vmul.f32 %v3112_v61, %v3674_v60  ;;  %v2278_v1 = vpack.c.bf16 %v2262_v59, %v2261_v57 }
 0x462   :  { %v2384_v2 = vmul.f32 %v3114_v63, %v3676_v3 }
 0x463   :  { %v2386_v55 = vunpack.c.h.bf16 %v2278_v1  ;;  %v2387_v5 = vunpack.c.l.bf16 %v2278_v1 }
 0x464   :  { %v2385_v6 = vpack.c.bf16 %v2382_v0, %v2384_v2 }
 0x465   :  { %3115 = vrcp.f32 %v2386_v55 }
 0x466   :  { %v2421_v7 = vunpack.c.l.bf16 %v2385_v6  ;;  %v2422_v9 = vunpack.c.h.bf16 %v2385_v6  ;;  %3117 = vrcp.f32 %v2387_v5 }
 0x468   :  { %2453 = vst [vmem:[#allocation16 + $0xe0] sm:$0xff] %v2421_v7 }
 0x469   :  { %2454 = vst [vmem:[#allocation16 + $0xe8] sm:$0xff] %v2422_v9 }
 0x46b   :  { %v3116_v10 = vpop.eup %3115 }
 0x46c   :  { %v3118_v4 = vpop.eup %3117  ;;  %v2389_v11 = vmul.f32 %v3116_v10, %v3674_v60 }
 0x46d   :  { %v2391_v12 = vmul.f32 %v3118_v4, %v3676_v3 }
 0x46f   :  { %v2392_v13 = vpack.c.bf16 %v2389_v11, %v2391_v12 }
 0x471   :  { %v2423_v14 = vunpack.c.l.bf16 %v2392_v13  ;;  %v2424_v15 = vunpack.c.h.bf16 %v2392_v13 }
 0x473   :  { %2455 = vst [vmem:[#allocation16 + $0xf0] sm:$0xff] %v2423_v14 }
 0x474   :  { %2456 = vst [vmem:[#allocation16 + $0xf8] sm:$0xff] %v2424_v15 }
 0x475   :  { %2469 = dma.vmem_to_hbm [thread:$0]  %s2462_s22, 4096, %s2464_s19, [#allocation4], %s3388_s21, %s3388_s21, %s3389_s2  }
 0x476   :  { %3369 = dma.done.wait [#allocation4], 4096  }
 0x477   :  { %3370 = vsyncadd [#allocation4], 4294963200 }
 0x478   :  { %3371 = dma.done.wait [#allocation18], 2048  }
 0x479   :  { %3372 = vsyncadd [#allocation18], 4294965248 }
 0x47a   :  { %2491 = vsyncpa [#allocation3], 1 }
 0x47b   :  { %2492 = vsyncpa [#allocation6], 1 }
 0x47c   :  { %2493 = vsyncpa [#allocation9], 1 }
 0x47d   :  { %2494 = vsyncpa [#allocation12], 1 }
 0x47e   :  { %2495 = vsyncpa [#allocation15], 1 }
 0x47f   :  { %2496 = vsyncpa [#allocation4], 1 }
 0x480   :  { %2497 = vsyncpa [#allocation18], 1 }

// kernel: tpu_custom_call.1
= control target key start
LH: loop header
LB: loop body
LE: loop exit
PB: predicated region body
PF: predicated region fallthrough
CT: control target
= control target key end

     0   :  { %21 = vsyncpa [#allocation3], 0  ;;  %s3743_s0 = inlined_call_operand.hbm [shape: bf16[128,256], index: 0, kind: input, shape index: {}]   ;;  %s3744_s1 = inlined_call_operand.hbm [shape: bf16[128,128], index: 1, kind: input, shape index: {}]   ;;  %s3745_s2 = inlined_call_operand.hbm [shape: bf16[256,128], index: 2, kind: input, shape index: {}]   ;;  %s3746_s3 = inlined_call_operand.vmem [shape: f32[1,128], index: 3, kind: input, shape index: {}]   ;;  %s3747_s4 = inlined_call_operand.hbm [shape: bf16[128,128], index: 4, kind: input, shape index: {}]   ;;  %s3748_s5 = inlined_call_operand.vmem [shape: f32[1,128], index: 5, kind: input, shape index: {}]   ;;  %s3749_s6 = inlined_call_operand.hbm [shape: bf16[128,128], index: 6, kind: input, shape index: {}]   ;;  %s3750_s7 = inlined_call_operand.vmem [shape: f32[1,128], index: 7, kind: input, shape index: {}]   ;;  %s3751_s8 = inlined_call_operand.hbm [shape: bf16[128,128], index: 8, kind: input, shape index: {}]   ;;  %s3752_s9 = inlined_call_operand.vmem [shape: f32[1,128], index: 9, kind: input, shape index: {}]   ;;  %s3753_s10 = inlined_call_operand.hbm [shape: bf16[128,128], index: 10, kind: input, shape index: {}]   ;;  %s3754_s11 = inlined_call_operand.vmem [shape: f32[1,128], index: 11, kind: input, shape index: {}]   ;;  %s3755_s12 = inlined_call_operand.hbm [shape: bf16[128,256], index: 12, kind: input, shape index: {}]   ;;  %s3756_s13 = inlined_call_operand.vmem [shape: f32[1,256], index: 13, kind: input, shape index: {}]   ;;  %s3757_s14 = inlined_call_operand.hbm [shape: f32[128,256], index: 14, kind: output, shape index: {0}]   ;;  %s3758_s15 = inlined_call_operand.hbm [shape: f32[128,128], index: 15, kind: output, shape index: {1}]  }
   0x1   :  { %22 = vsyncpa [#allocation6], 0 }
   0x2   :  { %23 = vsyncpa [#allocation9], 0 }
   0x3   :  { %24 = vsyncpa [#allocation12], 0 }
   0x4   :  { %25 = vsyncpa [#allocation15], 0 }
   0x5   :  { %26 = vsyncpa [#allocation4], 0  ;;  %s45_s20 = sshll.u32 %s3744_s1, 4  ;;  %s46_s20 = int_to_ptr.hbm [resolvable:$true] %s45_s20 }
   0x6   :  { %27 = vsyncpa [#allocation18], 0  ;;  %s3373_s21 = smov [#allocation5]   ;;  %s73_s25 = sshll.u32 %s3747_s4, 4  ;;  %s74_s25 = int_to_ptr.hbm [resolvable:$true] %s73_s25 }
   0x7   :  { %s47_s22 = sshll.u32 %s3373_s21, 4  ;;  %s3374_s26 = smov 64   ;;  %s48_s22 = int_to_ptr.vmem [resolvable:$true] %s47_s22 }
   0x8   :  { %s3375_s27 = smov 4   ;;  %s3376_s28 = smov [#allocation8]  }
   0x9   :  { %53 = dma.hbm_to_vmem [thread:$0]  %s46_s20, 1024, %s48_s22, [#allocation6], %s3374_s26, %s3374_s26, %s3375_s27  }
   0xa   :  { %s75_s29 = sshll.u32 %s3376_s28, 4  ;;  %s103_s16 = sshll.u32 %s3751_s8, 4  ;;  %s76_s29 = int_to_ptr.vmem [resolvable:$true] %s75_s29  ;;  %s104_s16 = int_to_ptr.hbm [resolvable:$true] %s103_s16 }
   0xb   :  { %81 = dma.hbm_to_vmem [thread:$0]  %s74_s25, 1024, %s76_s29, [#allocation9], %s3374_s26, %s3374_s26, %s3375_s27  }
   0xc   :  { %s32_s18 = sshll.u32 %s3743_s0, 4  ;;  %s3377_s19 = smov [#allocation11]   ;;  %s33_s18 = int_to_ptr.hbm [resolvable:$true] %s32_s18 }
   0xd   :  { %s105_s21 = sshll.u32 %s3377_s19, 4  ;;  %s3378_s20 = smov [#allocation2]   ;;  %s106_s21 = int_to_ptr.vmem [resolvable:$true] %s105_s21 }
   0xe   :  { %111 = dma.hbm_to_vmem [thread:$0]  %s104_s16, 1024, %s106_s21, [#allocation12], %s3374_s26, %s3374_s26, %s3375_s27  }
   0xf   :  { %s34_s8 = sshll.u32 %s3378_s20, 4  ;;  %s3379_s22 = smov 128   ;;  %s35_s8 = int_to_ptr.vmem [resolvable:$true] %s34_s8 }
  0x10   :  { %s3380_s23 = smov 8   ;;  %s58_s0 = sshll.u32 %s3745_s2, 4  ;;  %s59_s0 = int_to_ptr.hbm [resolvable:$true] %s58_s0 }
  0x11   :  { %40 = dma.hbm_to_vmem [thread:$0]  %s33_s18, 2048, %s35_s8, [#allocation3], %s3379_s22, %s3379_s22, %s3380_s23  }
  0x12   :  { %s3381_s28 = smov [#allocation7]   ;;  %s88_s16 = sshll.u32 %s3749_s6, 4  ;;  %s89_s16 = int_to_ptr.hbm [resolvable:$true] %s88_s16 }
  0x13   :  { %s60_s29 = sshll.u32 %s3381_s28, 4  ;;  %s3382_s4 = smov [#allocation10]   ;;  %s61_s29 = int_to_ptr.vmem [resolvable:$true] %s60_s29 }
  0x14   :  { %66 = dma.hbm_to_vmem [thread:$0]  %s59_s0, 2048, %s61_s29, [#allocation6], %s3374_s26, %s3374_s26, %s3375_s27  }
  0x15   :  { %s90_s17 = sshll.u32 %s3382_s4, 4  ;;  %s118_s21 = sshll.u32 %s3753_s10, 4  ;;  %s91_s17 = int_to_ptr.vmem [resolvable:$true] %s90_s17  ;;  %s119_s21 = int_to_ptr.hbm [resolvable:$true] %s118_s21 }
  0x16   :  { %96 = dma.hbm_to_vmem [thread:$0]  %s89_s16, 1024, %s91_s17, [#allocation9], %s3374_s26, %s3374_s26, %s3375_s27  }
  0x17   :  { %s133_s6 = sshll.u32 %s3755_s12, 4  ;;  %s3383_s8 = smov [#allocation13]   ;;  %s134_s6 = int_to_ptr.hbm [resolvable:$true] %s133_s6 }
  0x18   :  { %s120_s24 = sshll.u32 %s3383_s8, 4  ;;  %s3384_s25 = smov [#allocation14]   ;;  %s121_s24 = int_to_ptr.vmem [resolvable:$true] %s120_s24 }
  0x19   :  { %126 = dma.hbm_to_vmem [thread:$0]  %s119_s21, 1024, %s121_s24, [#allocation12], %s3374_s26, %s3374_s26, %s3375_s27  }
  0x1a   :  { %s135_s10 = sshll.u32 %s3384_s25, 4  ;;  %s136_s10 = int_to_ptr.vmem [resolvable:$true] %s135_s10 }
  0x1b   :  { %141 = dma.hbm_to_vmem [thread:$0]  %s134_s6, 2048, %s136_s10, [#allocation15], %s3379_s22, %s3379_s22, %s3380_s23  }
  0x1c   :  { %3359 = dma.done.wait [#allocation3], 2048  }
  0x1d   :  { %3360 = vsyncadd [#allocation3], 4294965248 }
  0x1e   :  { %3361 = dma.done.wait [#allocation6], 3072  }
  0x1f   :  { %3362 = vsyncadd [#allocation6], 4294964224 }
  0x20   :  { %3363 = dma.done.wait [#allocation9], 2048  }
  0x21   :  { %3364 = vsyncadd [#allocation9], 4294965248 }
  0x22   :  { %3365 = dma.done.wait [#allocation12], 2048  }
  0x23   :  { %3366 = vsyncadd [#allocation12], 4294965248 }
  0x24   :  { %3367 = dma.done.wait [#allocation15], 2048  }
  0x25   :  { %3368 = vsyncadd [#allocation15], 4294965248  ;;  %v2841_v0 = vld [vmem:[#allocation7 + $0x38] sm:$0xff]  ;;  %v2840_v2 = vld [vmem:[#allocation7 + $0x30] sm:$0xff]  ;;  %s2476_s17 = sshll.u32 %s3758_s15, 4  ;;  %s3387_s15 = smov [#allocation16]   ;;  %s2477_s17 = int_to_ptr.hbm [resolvable:$true] %s2476_s17 }
  0x26   :  { %v2849_v1 = vld [vmem:[#allocation7 + $0x78] sm:$0xff]  ;;  %405 = vmatpush.bf16.msra.mxu0 %v2841_v0  ;;  %v2848_v3 = vld [vmem:[#allocation7 + $0x70] sm:$0xff]  ;;  %v2839_v4 = vld [vmem:[#allocation7 + $0x28] sm:$0xff]  ;;  %s2463_s19 = sshll.u32 %s3757_s14, 4  ;;  %s3388_s21 = smov 256   ;;  %s2464_s19 = int_to_ptr.hbm [resolvable:$true] %s2463_s19 }
  0x27   :  { %454 = vmatpush.bf16.msra.mxu1 %v2849_v1  ;;  %v2847_v5 = vld [vmem:[#allocation7 + $0x68] sm:$0xff]  ;;  %v2838_v6 = vld [vmem:[#allocation7 + $0x20] sm:$0xff]  ;;  %v2837_v8 = vld [vmem:[#allocation7 + $0x18] sm:$0xff]  ;;  %s3389_s2 = smov 16  }
  0x28   :  { %v2846_v7 = vld [vmem:[#allocation7 + $0x60] sm:$0xff]  ;;  %v2845_v9 = vld [vmem:[#allocation7 + $0x58] sm:$0xff]  ;;  %v2836_v10 = vld [vmem:[#allocation7 + $0x10] sm:$0xff] }
  0x29   :  { %v2844_v11 = vld [vmem:[#allocation7 + $0x50] sm:$0xff]  ;;  %v2835_v12 = vld [vmem:[#allocation7 + $0x8] sm:$0xff]  ;;  %v2834_v14 = vld [vmem:[#allocation7] sm:$0xff] }
  0x2a   :  { %406 = vmatpush.bf16.msra.mxu0 %v2840_v2  ;;  %v2843_v13 = vld [vmem:[#allocation7 + $0x48] sm:$0xff]  ;;  %v2842_v15 = vld [vmem:[#allocation7 + $0x40] sm:$0xff]  ;;  %v2508_v22 = vld [vmem:[#allocation2 + $0x10] sm:$0xf] }
  0x2b   :  { %455 = vmatpush.bf16.msra.mxu1 %v2848_v3  ;;  %v2500_v16 = vld [vmem:[#allocation2] sm:$0xf]  ;;  %v2819_v17 = vld [vmem:[#allocation2 + $0x4] sm:$0xf0]  ;;  %v2818_v18 = vld [vmem:[#allocation2 + $0x4] sm:$0xf] }
  0x2c   :  { %v2502_v19 = vld [vmem:[#allocation2 + $0x8] sm:$0xf0]  ;;  %v2501_v20 = vor.u32 %v2819_v17, %v2500_v16  ;;  %v2821_v23 = vld [vmem:[#allocation2 + $0x14] sm:$0xf0]  ;;  %v2820_v24 = vld [vmem:[#allocation2 + $0x14] sm:$0xf] }
  0x2d   :  { %v2505_v21 = vor.u32 %v2818_v18, %v2502_v19  ;;  %v2510_v25 = vld [vmem:[#allocation2 + $0x18] sm:$0xf0]  ;;  %v2509_v26 = vor.u32 %v2821_v23, %v2508_v22  ;;  %v2516_v28 = vld [vmem:[#allocation2 + $0x20] sm:$0xf]  ;;  %v2823_v29 = vld [vmem:[#allocation2 + $0x24] sm:$0xf0] }
  0x2e   :  { %407 = vmatpush.bf16.msra.mxu0 %v2839_v4  ;;  %v2513_v27 = vor.u32 %v2820_v24, %v2510_v25  ;;  %v2822_v30 = vld [vmem:[#allocation2 + $0x24] sm:$0xf]  ;;  %v2518_v31 = vld [vmem:[#allocation2 + $0x28] sm:$0xf0]  ;;  %v2517_v32 = vor.u32 %v2823_v29, %v2516_v28  ;;  %v2524_v34 = vld [vmem:[#allocation2 + $0x30] sm:$0xf] }
  0x2f   :  { %456 = vmatpush.bf16.msra.mxu1 %v2847_v5  ;;  %v2521_v33 = vor.u32 %v2822_v30, %v2518_v31  ;;  %v2825_v35 = vld [vmem:[#allocation2 + $0x34] sm:$0xf0]  ;;  %v2824_v36 = vld [vmem:[#allocation2 + $0x34] sm:$0xf]  ;;  %v2526_v37 = vld [vmem:[#allocation2 + $0x38] sm:$0xf0] }
  0x30   :  { %v2525_v38 = vor.u32 %v2825_v35, %v2524_v34  ;;  %v2529_v39 = vor.u32 %v2824_v36, %v2526_v37  ;;  %v2532_v40 = vld [vmem:[#allocation2 + $0x40] sm:$0xf]  ;;  %v2827_v41 = vld [vmem:[#allocation2 + $0x44] sm:$0xf0]  ;;  %v2826_v42 = vld [vmem:[#allocation2 + $0x44] sm:$0xf] }
  0x31   :  { %v2534_v43 = vld [vmem:[#allocation2 + $0x48] sm:$0xf0]  ;;  %v2533_v44 = vor.u32 %v2827_v41, %v2532_v40  ;;  %v2540_v46 = vld [vmem:[#allocation2 + $0x50] sm:$0xf]  ;;  %v2829_v47 = vld [vmem:[#allocation2 + $0x54] sm:$0xf0] }
  0x32   :  { %408 = vmatpush.bf16.msra.mxu0 %v2838_v6  ;;  %v2537_v45 = vor.u32 %v2826_v42, %v2534_v43  ;;  %v2828_v48 = vld [vmem:[#allocation2 + $0x54] sm:$0xf]  ;;  %v2542_v49 = vld [vmem:[#allocation2 + $0x58] sm:$0xf0]  ;;  %v2541_v50 = vor.u32 %v2829_v47, %v2540_v46  ;;  %v2548_v54 = vld [vmem:[#allocation2 + $0x60] sm:$0xf] }
  0x33   :  { %457 = vmatpush.bf16.msra.mxu1 %v2846_v7  ;;  %v2545_v51 = vor.u32 %v2828_v48, %v2542_v49  ;;  %v2857_v52 = vld [vmem:[#allocation8 + $0x38] sm:$0xff]  ;;  %v2856_v53 = vld [vmem:[#allocation8 + $0x30] sm:$0xff]  ;;  %v2831_v55 = vld [vmem:[#allocation2 + $0x64] sm:$0xf0] }
  0x34   :  { %731 = vmatpush.bf16.msra.mxu2 %v2857_v52  ;;  %v2830_v56 = vld [vmem:[#allocation2 + $0x64] sm:$0xf]  ;;  %v2550_v57 = vld [vmem:[#allocation2 + $0x68] sm:$0xf0]  ;;  %v2549_v58 = vor.u32 %v2831_v55, %v2548_v54  ;;  %v2853_v62 = vld [vmem:[#allocation8 + $0x18] sm:$0xff] }
  0x35   :  { %v2553_v59 = vor.u32 %v2830_v56, %v2550_v57  ;;  %v2855_v60 = vld [vmem:[#allocation8 + $0x28] sm:$0xff]  ;;  %v2854_v61 = vld [vmem:[#allocation8 + $0x20] sm:$0xff]  ;;  %v2556_v63 = vld [vmem:[#allocation2 + $0x70] sm:$0xf] }
  0x36   :  { %409 = vmatpush.bf16.msra.mxu0 %v2837_v8  ;;  %v2833_v0 = vld [vmem:[#allocation2 + $0x74] sm:$0xf0]  ;;  %v2832_v1 = vld [vmem:[#allocation2 + $0x74] sm:$0xf]  ;;  %v2558_v2 = vld [vmem:[#allocation2 + $0x78] sm:$0xf0] }
  0x37   :  { %458 = vmatpush.bf16.msra.mxu1 %v2845_v9  ;;  %v2852_v3 = vld [vmem:[#allocation8 + $0x10] sm:$0xff]  ;;  %v2557_v4 = vor.u32 %v2833_v0, %v2556_v63  ;;  %v2561_v5 = vor.u32 %v2832_v1, %v2558_v2  ;;  %v2851_v6 = vld [vmem:[#allocation8 + $0x8] sm:$0xff]  ;;  %v2850_v7 = vld [vmem:[#allocation8] sm:$0xff] }
  0x38   :  { %732 = vmatpush.bf16.msra.mxu2 %v2856_v53  ;;  %v3521_v8 = vld [vmem:[%s3746_s3] ss:$0 sm:$0xff] }
  0x3a   :  { %410 = vmatpush.bf16.msra.mxu0 %v2836_v10 }
  0x3b   :  { %459 = vmatpush.bf16.msra.mxu1 %v2844_v11 }
  0x3c   :  { %733 = vmatpush.bf16.msra.mxu2 %v2855_v60 }
  0x3e   :  { %411 = vmatpush.bf16.msra.mxu0 %v2835_v12 }
  0x3f   :  { %460 = vmatpush.bf16.msra.mxu1 %v2843_v13 }
  0x40   :  { %734 = vmatpush.bf16.msra.mxu2 %v2854_v61 }
  0x42   :  { %412 = vmatpush.bf16.msra.mxu0 %v2834_v14 }
  0x43   :  { %461 = vmatpush.bf16.msra.mxu1 %v2842_v15 }
  0x44   :  { %735 = vmatpush.bf16.msra.mxu2 %v2853_v62 }
  0x45   :  { %413 = vmatmul.bf16.vlgmr.msra.gmra.mxu0 %v2501_v20 }
  0x46   :  { %462 = vmatmul.bf16.vlgmr.msra.gmra.mxu1 %v2505_v21 }
  0x48   :  { %736 = vmatpush.bf16.msra.mxu2 %v2852_v3 }
  0x4c   :  { %737 = vmatpush.bf16.msra.mxu2 %v2851_v6 }
  0x50   :  { %738 = vmatpush.bf16.msra.mxu2 %v2850_v7 }
  0x55   :  { %418 = vmatmul.bf16.gmra.mxu0 %v2509_v26 }
  0x56   :  { %467 = vmatmul.bf16.gmra.mxu1 %v2513_v27 }
  0x65   :  { %423 = vmatmul.bf16.gmra.mxu0 %v2517_v32 }
  0x66   :  { %472 = vmatmul.bf16.gmra.mxu1 %v2521_v33 }
  0x75   :  { %428 = vmatmul.bf16.gmra.mxu0 %v2525_v38 }
  0x76   :  { %477 = vmatmul.bf16.gmra.mxu1 %v2529_v39 }
  0x85   :  { %433 = vmatmul.bf16.gmra.mxu0 %v2533_v44 }
  0x86   :  { %482 = vmatmul.bf16.gmra.mxu1 %v2537_v45 }
  0x95   :  { %438 = vmatmul.bf16.gmra.mxu0 %v2541_v50 }
  0x96   :  { %487 = vmatmul.bf16.gmra.mxu1 %v2545_v51 }
  0xa5   :  { %443 = vmatmul.bf16.gmra.mxu0 %v2549_v58 }
  0xa6   :  { %492 = vmatmul.bf16.gmra.mxu1 %v2553_v59 }
  0xb5   :  { %448 = vmatmul.bf16.gmra.mxu0 %v2557_v4 }
  0xb6   :  { %497 = vmatmul.bf16.gmra.mxu1 %v2561_v5 }
  0xc2   :  { %v414_v9 = vpop.f32.mrf.mxu0 }
  0xc3   :  { %v463_v10 = vpop.f32.mrf.mxu1  ;;  %v415_v11 = vadd.f32 %v3521_v8, %v414_v9 }
  0xc5   :  { %v464_v12 = vadd.f32 %v463_v10, %v415_v11 }
  0xc7   :  { %v503_v13 = vpack.c.bf16 %v464_v12, %v464_v12 }
  0xc9   :  { %v519_v14 = vunpack.c.l.bf16 %v503_v13 }
  0xca   :  { %v416_v15 = vpop.f32.mrf.mxu0 }
  0xcb   :  { %v465_v16 = vpop.f32.mrf.mxu1  ;;  %v417_v17 = vadd.f32 %v3521_v8, %v416_v15  ;;  %v551_v18 = vmul.f32 0.20019531, %v519_v14  ;;  %vm535_vm0 = vcmp.gt.f32.partialorder %v519_v14, 0.0 }
  0xcc   :  { %vm583_vm2 = vmpackc.low %vm535_vm0, %vm535_vm0 }
  0xcd   :  { %v466_v19 = vadd.f32 %v465_v16, %v417_v17  ;;  %v567_v21 = vpack.c.bf16 %v551_v18, %v551_v18 }
  0xcf   :  { %v504_v20 = vpack.c.bf16 %v466_v19, %v466_v19  ;;  %v599_v29 = vsel %vm583_vm2, %v503_v13, %v567_v21 }
  0xd0   :  { %v651_v32 = vunpack.c.l.b16 %v599_v29 }
  0xd1   :  { %v520_v22 = vunpack.c.l.bf16 %v504_v20 }
  0xd2   :  { %v419_v23 = vpop.f32.mrf.mxu0 }
  0xd3   :  { %v468_v24 = vpop.f32.mrf.mxu1  ;;  %v552_v25 = vmul.f32 0.20019531, %v520_v22  ;;  %v420_v26 = vadd.f32 %v3521_v8, %v419_v23  ;;  %vm536_vm1 = vcmp.gt.f32.partialorder %v520_v22, 0.0 }
  0xd4   :  { %vm584_vm3 = vmpackc.low %vm536_vm1, %vm536_vm1 }
  0xd5   :  { %v568_v27 = vpack.c.bf16 %v552_v25, %v552_v25  ;;  %v469_v28 = vadd.f32 %v468_v24, %v420_v26 }
  0xd7   :  { %v505_v30 = vpack.c.bf16 %v469_v28, %v469_v28  ;;  %v600_v31 = vsel %vm584_vm3, %v504_v20, %v568_v27 }
  0xd8   :  { %v652_v33 = vunpack.c.l.b16 %v600_v31 }
  0xd9   :  { %v521_v34 = vunpack.c.l.bf16 %v505_v30 }
  0xda   :  { %v421_v35 = vpop.f32.mrf.mxu0  ;;  %v667_v37 = vpack.c.b16 %v652_v33, %v651_v32 }
  0xdb   :  { %v470_v36 = vpop.f32.mrf.mxu1  ;;  %v422_v38 = vadd.f32 %v3521_v8, %v421_v35  ;;  %v553_v39 = vmul.f32 0.20019531, %v521_v34  ;;  %vm537_vm4 = vcmp.gt.f32.partialorder %v521_v34, 0.0 }
  0xdc   :  { %739 = vmatmul.bf16.vlgmr.msra.gmra.mxu2 %v667_v37  ;;  %vm585_vm6 = vmpackc.low %vm537_vm4, %vm537_vm4 }
  0xdd   :  { %v471_v40 = vadd.f32 %v470_v36, %v422_v38  ;;  %v569_v42 = vpack.c.bf16 %v553_v39, %v553_v39 }
  0xdf   :  { %v506_v41 = vpack.c.bf16 %v471_v40, %v471_v40  ;;  %v601_v50 = vsel %vm585_vm6, %v505_v30, %v569_v42 }
  0xe0   :  { %v653_v53 = vunpack.c.l.b16 %v601_v50 }
  0xe1   :  { %v522_v43 = vunpack.c.l.bf16 %v506_v41 }
  0xe2   :  { %v424_v44 = vpop.f32.mrf.mxu0 }
  0xe3   :  { %v473_v45 = vpop.f32.mrf.mxu1  ;;  %v554_v46 = vmul.f32 0.20019531, %v522_v43  ;;  %v425_v47 = vadd.f32 %v3521_v8, %v424_v44  ;;  %vm538_vm5 = vcmp.gt.f32.partialorder %v522_v43, 0.0 }
  0xe4   :  { %vm586_vm7 = vmpackc.low %vm538_vm5, %vm538_vm5 }
  0xe5   :  { %v570_v48 = vpack.c.bf16 %v554_v46, %v554_v46  ;;  %v474_v49 = vadd.f32 %v473_v45, %v425_v47 }
  0xe7   :  { %v507_v51 = vpack.c.bf16 %v474_v49, %v474_v49  ;;  %v602_v52 = vsel %vm586_vm7, %v506_v41, %v570_v48 }
  0xe8   :  { %v654_v54 = vunpack.c.l.b16 %v602_v52 }
  0xe9   :  { %v523_v55 = vunpack.c.l.bf16 %v507_v51 }
  0xea   :  { %v426_v56 = vpop.f32.mrf.mxu0  ;;  %v668_v58 = vpack.c.b16 %v654_v54, %v653_v53 }
  0xeb   :  { %v475_v57 = vpop.f32.mrf.mxu1  ;;  %v427_v59 = vadd.f32 %v3521_v8, %v426_v56  ;;  %v555_v60 = vmul.f32 0.20019531, %v523_v55  ;;  %vm539_vm8 = vcmp.gt.f32.partialorder %v523_v55, 0.0 }
  0xec   :  { %744 = vmatmul.bf16.gmra.mxu2 %v668_v58  ;;  %vm587_vm10 = vmpackc.low %vm539_vm8, %vm539_vm8 }
  0xed   :  { %v476_v61 = vadd.f32 %v475_v57, %v427_v59  ;;  %v571_v63 = vpack.c.bf16 %v555_v60, %v555_v60 }
  0xef   :  { %v508_v62 = vpack.c.bf16 %v476_v61, %v476_v61  ;;  %v603_v7 = vsel %vm587_vm10, %v507_v51, %v571_v63 }
  0xf0   :  { %v655_v11 = vunpack.c.l.b16 %v603_v7 }
  0xf1   :  { %v524_v0 = vunpack.c.l.bf16 %v508_v62 }
  0xf2   :  { %v429_v1 = vpop.f32.mrf.mxu0 }
  0xf3   :  { %v478_v2 = vpop.f32.mrf.mxu1  ;;  %v556_v3 = vmul.f32 0.20019531, %v524_v0  ;;  %v430_v4 = vadd.f32 %v3521_v8, %v429_v1  ;;  %vm540_vm9 = vcmp.gt.f32.partialorder %v524_v0, 0.0 }
  0xf4   :  { %vm588_vm11 = vmpackc.low %vm540_vm9, %vm540_vm9 }
  0xf5   :  { %v572_v5 = vpack.c.bf16 %v556_v3, %v556_v3  ;;  %v479_v6 = vadd.f32 %v478_v2, %v430_v4 }
  0xf7   :  { %v509_v9 = vpack.c.bf16 %v479_v6, %v479_v6  ;;  %v604_v10 = vsel %vm588_vm11, %v508_v62, %v572_v5 }
  0xf8   :  { %v656_v12 = vunpack.c.l.b16 %v604_v10 }
  0xf9   :  { %v525_v13 = vunpack.c.l.bf16 %v509_v9 }
  0xfa   :  { %v431_v14 = vpop.f32.mrf.mxu0  ;;  %v669_v16 = vpack.c.b16 %v656_v12, %v655_v11 }
  0xfb   :  { %v480_v15 = vpop.f32.mrf.mxu1  ;;  %v432_v17 = vadd.f32 %v3521_v8, %v431_v14  ;;  %v557_v18 = vmul.f32 0.20019531, %v525_v13  ;;  %vm541_vm12 = vcmp.gt.f32.partialorder %v525_v13, 0.0 }
  0xfc   :  { %749 = vmatmul.bf16.gmra.mxu2 %v669_v16  ;;  %vm589_vm14 = vmpackc.low %vm541_vm12, %vm541_vm12 }
  0xfd   :  { %v481_v19 = vadd.f32 %v480_v15, %v432_v17  ;;  %v573_v21 = vpack.c.bf16 %v557_v18, %v557_v18  ;;  %v2865_v18 = vld [vmem:[#allocation10 + $0x38] sm:$0xff] }
  0xfe   :  { %1008 = vmatpush.bf16.msra.mxu3 %v2865_v18 }
  0xff   :  { %v510_v20 = vpack.c.bf16 %v481_v19, %v481_v19  ;;  %v605_v29 = vsel %vm589_vm14, %v509_v9, %v573_v21  ;;  %v2864_v21 = vld [vmem:[#allocation10 + $0x30] sm:$0xff] }
 0x100   :  { %v657_v32 = vunpack.c.l.b16 %v605_v29 }
 0x101   :  { %v526_v22 = vunpack.c.l.bf16 %v510_v20 }
 0x102   :  { %v434_v23 = vpop.f32.mrf.mxu0  ;;  %1009 = vmatpush.bf16.msra.mxu3 %v2864_v21 }
 0x103   :  { %v483_v24 = vpop.f32.mrf.mxu1  ;;  %v558_v25 = vmul.f32 0.20019531, %v526_v22  ;;  %v435_v26 = vadd.f32 %v3521_v8, %v434_v23  ;;  %vm542_vm13 = vcmp.gt.f32.partialorder %v526_v22, 0.0 }
 0x104   :  { %vm590_vm15 = vmpackc.low %vm542_vm13, %vm542_vm13 }
 0x105   :  { %v574_v27 = vpack.c.bf16 %v558_v25, %v558_v25  ;;  %v484_v28 = vadd.f32 %v483_v24, %v435_v26 }
 0x107   :  { %v511_v30 = vpack.c.bf16 %v484_v28, %v484_v28  ;;  %v606_v31 = vsel %vm590_vm15, %v510_v20, %v574_v27 }
 0x108   :  { %v658_v33 = vunpack.c.l.b16 %v606_v31 }
 0x109   :  { %v527_v34 = vunpack.c.l.bf16 %v511_v30 }
 0x10a   :  { %v436_v35 = vpop.f32.mrf.mxu0  ;;  %v670_v37 = vpack.c.b16 %v658_v33, %v657_v32 }
 0x10b   :  { %v485_v36 = vpop.f32.mrf.mxu1  ;;  %v437_v38 = vadd.f32 %v3521_v8, %v436_v35  ;;  %v559_v39 = vmul.f32 0.20019531, %v527_v34  ;;  %vm543_vm0 = vcmp.gt.f32.partialorder %v527_v34, 0.0 }
 0x10c   :  { %754 = vmatmul.bf16.gmra.mxu2 %v670_v37  ;;  %vm591_vm2 = vmpackc.low %vm543_vm0, %vm543_vm0 }
 0x10d   :  { %v486_v40 = vadd.f32 %v485_v36, %v437_v38  ;;  %v575_v42 = vpack.c.bf16 %v559_v39, %v559_v39 }
 0x10f   :  { %v512_v41 = vpack.c.bf16 %v486_v40, %v486_v40  ;;  %v607_v50 = vsel %vm591_vm2, %v511_v30, %v575_v42 }
 0x110   :  { %v659_v53 = vunpack.c.l.b16 %v607_v50 }
 0x111   :  { %v528_v43 = vunpack.c.l.bf16 %v512_v41 }
 0x112   :  { %v439_v44 = vpop.f32.mrf.mxu0 }
 0x113   :  { %v488_v45 = vpop.f32.mrf.mxu1  ;;  %vm544_vm1 = vcmp.gt.f32.partialorder %v528_v43, 0.0  ;;  %v560_v46 = vmul.f32 0.20019531, %v528_v43  ;;  %v440_v47 = vadd.f32 %v3521_v8, %v439_v44  ;;  %v2863_v43 = vld [vmem:[#allocation10 + $0x28] sm:$0xff] }
 0x114   :  { %vm592_vm3 = vmpackc.low %vm544_vm1, %vm544_vm1  ;;  %1010 = vmatpush.bf16.msra.mxu3 %v2863_v43 }
 0x115   :  { %v576_v48 = vpack.c.bf16 %v560_v46, %v560_v46  ;;  %v489_v49 = vadd.f32 %v488_v45, %v440_v47  ;;  %v2862_v47 = vld [vmem:[#allocation10 + $0x20] sm:$0xff] }
 0x117   :  { %v513_v51 = vpack.c.bf16 %v489_v49, %v489_v49  ;;  %v608_v52 = vsel %vm592_vm3, %v512_v41, %v576_v48 }
 0x118   :  { %v660_v54 = vunpack.c.l.b16 %v608_v52  ;;  %1011 = vmatpush.bf16.msra.mxu3 %v2862_v47 }
 0x119   :  { %v529_v55 = vunpack.c.l.bf16 %v513_v51 }
 0x11a   :  { %v441_v56 = vpop.f32.mrf.mxu0  ;;  %v671_v58 = vpack.c.b16 %v660_v54, %v659_v53 }
 0x11b   :  { %v490_v57 = vpop.f32.mrf.mxu1  ;;  %v442_v59 = vadd.f32 %v3521_v8, %v441_v56  ;;  %v561_v60 = vmul.f32 0.20019531, %v529_v55  ;;  %vm545_vm4 = vcmp.gt.f32.partialorder %v529_v55, 0.0  ;;  %v2860_v55 = vld [vmem:[#allocation10 + $0x10] sm:$0xff]  ;;  %v2859_v56 = vld [vmem:[#allocation10 + $0x8] sm:$0xff] }
 0x11c   :  { %759 = vmatmul.bf16.gmra.mxu2 %v671_v58  ;;  %vm593_vm6 = vmpackc.low %vm545_vm4, %vm545_vm4  ;;  %v3542_v58 = vld [vmem:[%s3748_s5] ss:$0 sm:$0xff] }
 0x11d   :  { %v491_v61 = vadd.f32 %v490_v57, %v442_v59  ;;  %v577_v63 = vpack.c.bf16 %v561_v60, %v561_v60  ;;  %v2858_v57 = vld [vmem:[#allocation10] sm:$0xff] }
 0x11f   :  { %v514_v62 = vpack.c.bf16 %v491_v61, %v491_v61  ;;  %v609_v7 = vsel %vm593_vm6, %v513_v51, %v577_v63  ;;  %v2861_v51 = vld [vmem:[#allocation10 + $0x18] sm:$0xff] }
 0x120   :  { %v661_v11 = vunpack.c.l.b16 %v609_v7  ;;  %1012 = vmatpush.bf16.msra.mxu3 %v2861_v51 }
 0x121   :  { %v530_v0 = vunpack.c.l.bf16 %v514_v62 }
 0x122   :  { %v444_v1 = vpop.f32.mrf.mxu0 }
 0x123   :  { %v493_v2 = vpop.f32.mrf.mxu1  ;;  %vm546_vm5 = vcmp.gt.f32.partialorder %v530_v0, 0.0  ;;  %v562_v3 = vmul.f32 0.20019531, %v530_v0  ;;  %v445_v4 = vadd.f32 %v3521_v8, %v444_v1 }
 0x124   :  { %vm594_vm7 = vmpackc.low %vm546_vm5, %vm546_vm5  ;;  %1013 = vmatpush.bf16.msra.mxu3 %v2860_v55 }
 0x125   :  { %v578_v5 = vpack.c.bf16 %v562_v3, %v562_v3  ;;  %v494_v6 = vadd.f32 %v493_v2, %v445_v4 }
 0x127   :  { %v515_v9 = vpack.c.bf16 %v494_v6, %v494_v6  ;;  %v610_v10 = vsel %vm594_vm7, %v514_v62, %v578_v5 }
 0x128   :  { %v662_v12 = vunpack.c.l.b16 %v610_v10  ;;  %1014 = vmatpush.bf16.msra.mxu3 %v2859_v56 }
 0x129   :  { %v531_v13 = vunpack.c.l.bf16 %v515_v9 }
 0x12a   :  { %v446_v14 = vpop.f32.mrf.mxu0  ;;  %v672_v16 = vpack.c.b16 %v662_v12, %v661_v11 }
 0x12b   :  { %v495_v15 = vpop.f32.mrf.mxu1  ;;  %v447_v17 = vadd.f32 %v3521_v8, %v446_v14  ;;  %v563_v19 = vmul.f32 0.20019531, %v531_v13  ;;  %vm547_vm8 = vcmp.gt.f32.partialorder %v531_v13, 0.0 }
 0x12c   :  { %764 = vmatmul.bf16.gmra.mxu2 %v672_v16  ;;  %vm595_vm10 = vmpackc.low %vm547_vm8, %vm547_vm8  ;;  %1015 = vmatpush.bf16.msra.mxu3 %v2858_v57 }
 0x12d   :  { %v496_v20 = vadd.f32 %v495_v15, %v447_v17  ;;  %v579_v23 = vpack.c.bf16 %v563_v19, %v563_v19 }
 0x12f   :  { %v516_v22 = vpack.c.bf16 %v496_v20, %v496_v20  ;;  %v611_v31 = vsel %vm595_vm10, %v515_v9, %v579_v23 }
 0x130   :  { %v663_v34 = vunpack.c.l.b16 %v611_v31 }
 0x131   :  { %v532_v24 = vunpack.c.l.bf16 %v516_v22 }
 0x132   :  { %v449_v25 = vpop.f32.mrf.mxu0 }
 0x133   :  { %v498_v26 = vpop.f32.mrf.mxu1  ;;  %vm548_vm9 = vcmp.gt.f32.partialorder %v532_v24, 0.0  ;;  %v564_v27 = vmul.f32 0.20019531, %v532_v24  ;;  %v450_v28 = vadd.f32 %v3521_v8, %v449_v25 }
 0x134   :  { %vm596_vm11 = vmpackc.low %vm548_vm9, %vm548_vm9 }
 0x135   :  { %v580_v29 = vpack.c.bf16 %v564_v27, %v564_v27  ;;  %v499_v30 = vadd.f32 %v498_v26, %v450_v28 }
 0x137   :  { %v517_v32 = vpack.c.bf16 %v499_v30, %v499_v30  ;;  %v612_v33 = vsel %vm596_vm11, %v516_v22, %v580_v29 }
 0x138   :  { %v664_v35 = vunpack.c.l.b16 %v612_v33 }
 0x139   :  { %v533_v36 = vunpack.c.l.bf16 %v517_v32 }
 0x13a   :  { %v451_v37 = vpop.f32.mrf.mxu0  ;;  %v673_v38 = vpack.c.b16 %v664_v35, %v663_v34 }
 0x13b   :  { %v452_v39 = vadd.f32 %v3521_v8, %v451_v37  ;;  %v500_v40 = vpop.f32.mrf.mxu1  ;;  %v565_v41 = vmul.f32 0.20019531, %v533_v36  ;;  %vm549_vm12 = vcmp.gt.f32.partialorder %v533_v36, 0.0  ;;  %v2873_v37 = vld [vmem:[#allocation11 + $0x38] sm:$0xff] }
 0x13c   :  { %769 = vmatmul.bf16.gmra.mxu2 %v673_v38  ;;  %vm597_vm14 = vmpackc.low %vm549_vm12, %vm549_vm12  ;;  %1369 = vmatpush.bf16.msrb.mxu0 %v2873_v37  ;;  %v2869_v37 = vld [vmem:[#allocation11 + $0x18] sm:$0xff] }
 0x13d   :  { %v501_v42 = vadd.f32 %v500_v40, %v452_v39  ;;  %v581_v45 = vpack.c.bf16 %v565_v41, %v565_v41 }
 0x13f   :  { %v518_v44 = vpack.c.bf16 %v501_v42, %v501_v42  ;;  %v613_v50 = vsel %vm597_vm14, %v517_v32, %v581_v45 }
 0x140   :  { %v665_v52 = vunpack.c.l.b16 %v613_v50 }
 0x141   :  { %v534_v46 = vunpack.c.l.bf16 %v518_v44 }
 0x143   :  { %vm550_vm13 = vcmp.gt.f32.partialorder %v534_v46, 0.0  ;;  %v566_v48 = vmul.f32 0.20019531, %v534_v46 }
 0x144   :  { %vm598_vm15 = vmpackc.low %vm550_vm13, %vm550_vm13 }
 0x145   :  { %v582_v49 = vpack.c.bf16 %v566_v48, %v566_v48 }
 0x147   :  { %v614_v8 = vsel %vm598_vm15, %v518_v44, %v582_v49 }
 0x148   :  { %v666_v53 = vunpack.c.l.b16 %v614_v8 }
 0x14a   :  { %v674_v54 = vpack.c.b16 %v666_v53, %v665_v52 }
 0x14c   :  { %774 = vmatmul.bf16.gmra.mxu2 %v674_v54  ;;  %v2872_v54 = vld [vmem:[#allocation11 + $0x30] sm:$0xff] }
 0x14d   :  { %1370 = vmatpush.bf16.msrb.mxu0 %v2872_v54 }
 0x15f   :  { %v740_v59 = vpop.f32.mrf.mxu2 }
 0x160   :  { %v741_v60 = vadd.f32 %v3542_v58, %v740_v59 }
 0x162   :  { %v780_v61 = vpack.c.bf16 %v741_v60, %v741_v60 }
 0x164   :  { %v796_v62 = vunpack.c.l.bf16 %v780_v61 }
 0x166   :  { %v828_v0 = vmul.f32 0.20019531, %v796_v62  ;;  %vm812_vm0 = vcmp.gt.f32.partialorder %v796_v62, 0.0 }
 0x167   :  { %v742_v63 = vpop.f32.mrf.mxu2  ;;  %vm860_vm2 = vmpackc.low %vm812_vm0, %vm812_vm0 }
 0x168   :  { %v743_v1 = vadd.f32 %v3542_v58, %v742_v63  ;;  %v844_v3 = vpack.c.bf16 %v828_v0, %v828_v0 }
 0x16a   :  { %v781_v2 = vpack.c.bf16 %v743_v1, %v743_v1  ;;  %v876_v10 = vsel %vm860_vm2, %v780_v61, %v844_v3 }
 0x16b   :  { %v928_v13 = vunpack.c.l.b16 %v876_v10  ;;  %v2871_v10 = vld [vmem:[#allocation11 + $0x28] sm:$0xff] }
 0x16c   :  { %v797_v4 = vunpack.c.l.bf16 %v781_v2  ;;  %1371 = vmatpush.bf16.msrb.mxu0 %v2871_v10 }
 0x16e   :  { %v829_v5 = vmul.f32 0.20019531, %v797_v4  ;;  %vm813_vm1 = vcmp.gt.f32.partialorder %v797_v4, 0.0 }
 0x16f   :  { %v745_v6 = vpop.f32.mrf.mxu2  ;;  %vm861_vm3 = vmpackc.low %vm813_vm1, %vm813_vm1 }
 0x170   :  { %v845_v7 = vpack.c.bf16 %v829_v5, %v829_v5  ;;  %v746_v9 = vadd.f32 %v3542_v58, %v745_v6 }
 0x172   :  { %v782_v11 = vpack.c.bf16 %v746_v9, %v746_v9  ;;  %v877_v12 = vsel %vm861_vm3, %v781_v2, %v845_v7 }
 0x173   :  { %v929_v14 = vunpack.c.l.b16 %v877_v12 }
 0x174   :  { %v798_v15 = vunpack.c.l.bf16 %v782_v11 }
 0x175   :  { %v944_v16 = vpack.c.b16 %v929_v14, %v928_v13 }
 0x176   :  { %v830_v18 = vmul.f32 0.20019531, %v798_v15  ;;  %vm814_vm4 = vcmp.gt.f32.partialorder %v798_v15, 0.0 }
 0x177   :  { %v747_v17 = vpop.f32.mrf.mxu2  ;;  %1016 = vmatmul.bf16.vlgmr.msra.gmra.mxu3 %v944_v16  ;;  %vm862_vm6 = vmpackc.low %vm814_vm4, %vm814_vm4 }
 0x178   :  { %v748_v19 = vadd.f32 %v3542_v58, %v747_v17  ;;  %v846_v21 = vpack.c.bf16 %v830_v18, %v830_v18 }
 0x17a   :  { %v783_v20 = vpack.c.bf16 %v748_v19, %v748_v19  ;;  %v878_v27 = vsel %vm862_vm6, %v782_v11, %v846_v21 }
 0x17b   :  { %v930_v30 = vunpack.c.l.b16 %v878_v27 }
 0x17c   :  { %v799_v22 = vunpack.c.l.bf16 %v783_v20 }
 0x17e   :  { %v831_v23 = vmul.f32 0.20019531, %v799_v22  ;;  %vm815_vm5 = vcmp.gt.f32.partialorder %v799_v22, 0.0 }
 0x17f   :  { %v750_v24 = vpop.f32.mrf.mxu2  ;;  %vm863_vm7 = vmpackc.low %vm815_vm5, %vm815_vm5 }
 0x180   :  { %v847_v25 = vpack.c.bf16 %v831_v23, %v831_v23  ;;  %v751_v26 = vadd.f32 %v3542_v58, %v750_v24 }
 0x182   :  { %v784_v28 = vpack.c.bf16 %v751_v26, %v751_v26  ;;  %v879_v29 = vsel %vm863_vm7, %v783_v20, %v847_v25 }
 0x183   :  { %v931_v31 = vunpack.c.l.b16 %v879_v29 }
 0x184   :  { %v800_v32 = vunpack.c.l.bf16 %v784_v28 }
 0x185   :  { %v945_v33 = vpack.c.b16 %v931_v31, %v930_v30 }
 0x186   :  { %v832_v35 = vmul.f32 0.20019531, %v800_v32  ;;  %vm816_vm8 = vcmp.gt.f32.partialorder %v800_v32, 0.0 }
 0x187   :  { %v752_v34 = vpop.f32.mrf.mxu2  ;;  %1021 = vmatmul.bf16.gmra.mxu3 %v945_v33  ;;  %vm864_vm10 = vmpackc.low %vm816_vm8, %vm816_vm8 }
 0x188   :  { %v753_v36 = vadd.f32 %v3542_v58, %v752_v34  ;;  %v848_v39 = vpack.c.bf16 %v832_v35, %v832_v35 }
 0x18a   :  { %v785_v38 = vpack.c.bf16 %v753_v36, %v753_v36  ;;  %v880_v45 = vsel %vm864_vm10, %v784_v28, %v848_v39  ;;  %v2870_v28 = vld [vmem:[#allocation11 + $0x20] sm:$0xff] }
 0x18b   :  { %v932_v48 = vunpack.c.l.b16 %v880_v45  ;;  %1372 = vmatpush.bf16.msrb.mxu0 %v2870_v28  ;;  %v2868_v45 = vld [vmem:[#allocation11 + $0x10] sm:$0xff]  ;;  %v1089_v28 = vlaneseq }
 0x18c   :  { %v801_v40 = vunpack.c.l.bf16 %v785_v38 }
 0x18e   :  { %v833_v41 = vmul.f32 0.20019531, %v801_v40  ;;  %vm817_vm9 = vcmp.gt.f32.partialorder %v801_v40, 0.0 }
 0x18f   :  { %v755_v42 = vpop.f32.mrf.mxu2  ;;  %vm865_vm11 = vmpackc.low %vm817_vm9, %vm817_vm9  ;;  %1373 = vmatpush.bf16.msrb.mxu0 %v2869_v37 }
 0x190   :  { %v849_v43 = vpack.c.bf16 %v833_v41, %v833_v41  ;;  %v756_v44 = vadd.f32 %v3542_v58, %v755_v42 }
 0x192   :  { %v786_v46 = vpack.c.bf16 %v756_v44, %v756_v44  ;;  %v881_v47 = vsel %vm865_vm11, %v785_v38, %v849_v43 }
 0x193   :  { %v933_v49 = vunpack.c.l.b16 %v881_v47  ;;  %1374 = vmatpush.bf16.msrb.mxu0 %v2868_v45 }
 0x194   :  { %v802_v50 = vunpack.c.l.bf16 %v786_v46 }
 0x195   :  { %v946_v51 = vpack.c.b16 %v933_v49, %v932_v48 }
 0x196   :  { %v834_v52 = vmul.f32 0.20019531, %v802_v50  ;;  %vm818_vm12 = vcmp.gt.f32.partialorder %v802_v50, 0.0 }
 0x197   :  { %v757_v8 = vpop.f32.mrf.mxu2  ;;  %1026 = vmatmul.bf16.gmra.mxu3 %v946_v51  ;;  %vm866_vm14 = vmpackc.low %vm818_vm12, %vm818_vm12 }
 0x198   :  { %v758_v53 = vadd.f32 %v3542_v58, %v757_v8  ;;  %v850_v56 = vpack.c.bf16 %v834_v52, %v834_v52 }
 0x19a   :  { %v787_v55 = vpack.c.bf16 %v758_v53, %v758_v53  ;;  %v882_v63 = vsel %vm866_vm14, %v786_v46, %v850_v56 }
 0x19b   :  { %v934_v2 = vunpack.c.l.b16 %v882_v63 }
 0x19c   :  { %v803_v57 = vunpack.c.l.bf16 %v787_v55 }
 0x19e   :  { %v835_v59 = vmul.f32 0.20019531, %v803_v57  ;;  %vm819_vm13 = vcmp.gt.f32.partialorder %v803_v57, 0.0 }
 0x19f   :  { %v760_v60 = vpop.f32.mrf.mxu2  ;;  %vm867_vm15 = vmpackc.low %vm819_vm13, %vm819_vm13 }
 0x1a0   :  { %v851_v61 = vpack.c.bf16 %v835_v59, %v835_v59  ;;  %v761_v62 = vadd.f32 %v3542_v58, %v760_v60 }
 0x1a2   :  { %v788_v0 = vpack.c.bf16 %v761_v62, %v761_v62  ;;  %v883_v1 = vsel %vm867_vm15, %v787_v55, %v851_v61 }
 0x1a3   :  { %v935_v3 = vunpack.c.l.b16 %v883_v1 }
 0x1a4   :  { %v804_v4 = vunpack.c.l.bf16 %v788_v0 }
 0x1a5   :  { %v947_v5 = vpack.c.b16 %v935_v3, %v934_v2 }
 0x1a6   :  { %v836_v7 = vmul.f32 0.20019531, %v804_v4  ;;  %vm820_vm0 = vcmp.gt.f32.partialorder %v804_v4, 0.0 }
 0x1a7   :  { %v762_v6 = vpop.f32.mrf.mxu2  ;;  %1031 = vmatmul.bf16.gmra.mxu3 %v947_v5  ;;  %vm868_vm2 = vmpackc.low %vm820_vm0, %vm820_vm0 }
 0x1a8   :  { %v763_v9 = vadd.f32 %v3542_v58, %v762_v6  ;;  %v852_v12 = vpack.c.bf16 %v836_v7, %v836_v7 }
 0x1aa   :  { %v789_v11 = vpack.c.bf16 %v763_v9, %v763_v9  ;;  %v884_v18 = vsel %vm868_vm2, %v788_v0, %v852_v12  ;;  %v2867_v12 = vld [vmem:[#allocation11 + $0x8] sm:$0xff] }
 0x1ab   :  { %v936_v21 = vunpack.c.l.b16 %v884_v18  ;;  %1375 = vmatpush.bf16.msrb.mxu0 %v2867_v12 }
 0x1ac   :  { %v805_v13 = vunpack.c.l.bf16 %v789_v11 }
 0x1ae   :  { %vm821_vm1 = vcmp.gt.f32.partialorder %v805_v13, 0.0  ;;  %v837_v14 = vmul.f32 0.20019531, %v805_v13 }
 0x1af   :  { %v765_v15 = vpop.f32.mrf.mxu2  ;;  %vm869_vm3 = vmpackc.low %vm821_vm1, %vm821_vm1 }
 0x1b0   :  { %v853_v16 = vpack.c.bf16 %v837_v14, %v837_v14  ;;  %v766_v17 = vadd.f32 %v3542_v58, %v765_v15  ;;  %v2866_v14 = vld [vmem:[#allocation11] sm:$0xff] }
 0x1b1   :  { %1376 = vmatpush.bf16.msrb.mxu0 %v2866_v14 }
 0x1b2   :  { %v790_v19 = vpack.c.bf16 %v766_v17, %v766_v17  ;;  %v885_v20 = vsel %vm869_vm3, %v789_v11, %v853_v16 }
 0x1b3   :  { %v937_v22 = vunpack.c.l.b16 %v885_v20 }
 0x1b4   :  { %v806_v23 = vunpack.c.l.bf16 %v790_v19 }
 0x1b5   :  { %v948_v24 = vpack.c.b16 %v937_v22, %v936_v21 }
 0x1b6   :  { %v838_v26 = vmul.f32 0.20019531, %v806_v23  ;;  %vm822_vm4 = vcmp.gt.f32.partialorder %v806_v23, 0.0 }
 0x1b7   :  { %v767_v25 = vpop.f32.mrf.mxu2  ;;  %1036 = vmatmul.bf16.gmra.mxu3 %v948_v24  ;;  %vm870_vm6 = vmpackc.low %vm822_vm4, %vm822_vm4  ;;  %v2899_v24 = vld [vmem:[#allocation5] sm:$0xff]  }
 0x1b8   :  { %v768_v27 = vadd.f32 %v3542_v58, %v767_v25  ;;  %v854_v30 = vpack.c.bf16 %v838_v26, %v838_v26 }
 0x1ba   :  { %v791_v29 = vpack.c.bf16 %v768_v27, %v768_v27  ;;  %v886_v36 = vsel %vm870_vm6, %v790_v19, %v854_v30  ;;  %v2900_v30 = vunpack.c.l.bf16 %v2899_v24 }
 0x1bb   :  { %v938_v40 = vunpack.c.l.b16 %v886_v36 }
 0x1bc   :  { %v807_v31 = vunpack.c.l.bf16 %v791_v29 }
 0x1be   :  { %vm823_vm5 = vcmp.gt.f32.partialorder %v807_v31, 0.0  ;;  %v839_v32 = vmul.f32 0.20019531, %v807_v31 }
 0x1bf   :  { %v770_v33 = vpop.f32.mrf.mxu2  ;;  %vm871_vm7 = vmpackc.low %vm823_vm5, %vm823_vm5 }
 0x1c0   :  { %v855_v34 = vpack.c.bf16 %v839_v32, %v839_v32  ;;  %v771_v35 = vadd.f32 %v3542_v58, %v770_v33  ;;  %v1090_v33 = vand.u32 127, %v1089_v28 }
 0x1c2   :  { %v792_v38 = vpack.c.bf16 %v771_v35, %v771_v35  ;;  %v887_v39 = vsel %vm871_vm7, %v791_v29, %v855_v34  ;;  %vm1091_vm0 = vcmp.lt.s32.totalorder %v1090_v33, 64 }
 0x1c3   :  { %v939_v41 = vunpack.c.l.b16 %v887_v39  ;;  %v2901_v39 = vunpack.c.h.bf16 %v2899_v24  ;;  %vm3569_vm1 = vmpackc.low %vm1091_vm0, %vm1091_vm0 }
 0x1c4   :  { %v808_v42 = vunpack.c.l.bf16 %v792_v38 }
 0x1c5   :  { %v949_v43 = vpack.c.b16 %v939_v41, %v938_v40 }
 0x1c6   :  { %v840_v46 = vmul.f32 0.20019531, %v808_v42  ;;  %vm824_vm8 = vcmp.gt.f32.partialorder %v808_v42, 0.0 }
 0x1c7   :  { %v772_v44 = vpop.f32.mrf.mxu2  ;;  %1041 = vmatmul.bf16.gmra.mxu3 %v949_v43  ;;  %vm872_vm10 = vmpackc.low %vm824_vm8, %vm824_vm8 }
 0x1c8   :  { %v773_v47 = vadd.f32 %v3542_v58, %v772_v44  ;;  %v856_v49 = vpack.c.bf16 %v840_v46, %v840_v46 }
 0x1ca   :  { %v793_v48 = vpack.c.bf16 %v773_v47, %v773_v47  ;;  %v888_v54 = vsel %vm872_vm10, %v792_v38, %v856_v49 }
 0x1cb   :  { %v940_v57 = vunpack.c.l.b16 %v888_v54 }
 0x1cc   :  { %v809_v50 = vunpack.c.l.bf16 %v793_v48 }
 0x1ce   :  { %vm825_vm9 = vcmp.gt.f32.partialorder %v809_v50, 0.0  ;;  %v841_v51 = vmul.f32 0.20019531, %v809_v50 }
 0x1cf   :  { %v775_v8 = vpop.f32.mrf.mxu2  ;;  %vm873_vm11 = vmpackc.low %vm825_vm9, %vm825_vm9 }
 0x1d0   :  { %v857_v52 = vpack.c.bf16 %v841_v51, %v841_v51  ;;  %v776_v53 = vadd.f32 %v3542_v58, %v775_v8  ;;  %v2930_v8 = vld [vmem:[#allocation5 + $0x8] sm:$0xff]  }
 0x1d2   :  { %v794_v55 = vpack.c.bf16 %v776_v53, %v776_v53  ;;  %v889_v56 = vsel %vm873_vm11, %v793_v48, %v857_v52 }
 0x1d3   :  { %v941_v59 = vunpack.c.l.b16 %v889_v56 }
 0x1d4   :  { %v810_v60 = vunpack.c.l.bf16 %v794_v55 }
 0x1d5   :  { %v950_v61 = vpack.c.b16 %v941_v59, %v940_v57 }
 0x1d6   :  { %v842_v63 = vmul.f32 0.20019531, %v810_v60  ;;  %vm826_vm12 = vcmp.gt.f32.partialorder %v810_v60, 0.0  ;;  %v2904_v60 = vunpack.c.l.bf16 %v2930_v8 }
 0x1d7   :  { %v777_v62 = vpop.f32.mrf.mxu2  ;;  %1046 = vmatmul.bf16.gmra.mxu3 %v950_v61  ;;  %vm874_vm14 = vmpackc.low %vm826_vm12, %vm826_vm12 }
 0x1d8   :  { %v778_v0 = vadd.f32 %v3542_v58, %v777_v62  ;;  %v858_v2 = vpack.c.bf16 %v842_v63, %v842_v63  ;;  %v3563_v58 = vld [vmem:[%s3750_s7] ss:$0 sm:$0xff] }
 0x1da   :  { %v795_v1 = vpack.c.bf16 %v778_v0, %v778_v0  ;;  %v890_v6 = vsel %vm874_vm14, %v794_v55, %v858_v2 }
 0x1db   :  { %v942_v9 = vunpack.c.l.b16 %v890_v6 }
 0x1dc   :  { %v811_v3 = vunpack.c.l.bf16 %v795_v1 }
 0x1de   :  { %vm827_vm13 = vcmp.gt.f32.partialorder %v811_v3, 0.0  ;;  %v843_v4 = vmul.f32 0.20019531, %v811_v3 }
 0x1df   :  { %vm875_vm15 = vmpackc.low %vm827_vm13, %vm827_vm13 }
 0x1e0   :  { %v859_v5 = vpack.c.bf16 %v843_v4, %v843_v4 }
 0x1e2   :  { %v891_v7 = vsel %vm875_vm15, %v795_v1, %v859_v5  ;;  %v2905_v5 = vunpack.c.h.bf16 %v2930_v8 }
 0x1e3   :  { %v943_v10 = vunpack.c.l.b16 %v891_v7 }
 0x1e5   :  { %v951_v11 = vpack.c.b16 %v943_v10, %v942_v9  ;;  %v2881_v10 = vld [vmem:[#allocation13 + $0x38] sm:$0xff] }
 0x1e6   :  { %1646 = vmatpush.bf16.msrb.mxu1 %v2881_v10 }
 0x1e7   :  { %1051 = vmatmul.bf16.gmra.mxu3 %v951_v11 }
 0x1fa   :  { %v1017_v13 = vpop.f32.mrf.mxu3 }
 0x1fb   :  { %v1018_v15 = vadd.f32 %v3563_v58, %v1017_v13 }
 0x1fd   :  { %1057 = vst [vmem:[#allocation17] sm:$0xff] %v1018_v15  ;;  %v1073_v16 = vpack.c.bf16 %v1018_v15, %v1018_v15 }
 0x1ff   :  { %v1092_v17 = vunpack.c.l.bf16 %v1073_v16 }
 0x201   :  { %v1108_v18 = vmul.f32 1.442695, %v1092_v17 }
 0x202   :  { %v1019_v19 = vpop.f32.mrf.mxu3 }
 0x203   :  { %2959 = vpow2.f32 %v1108_v18  ;;  %v1020_v20 = vadd.f32 %v3563_v58, %v1019_v19  ;;  %v2931_v18 = vld [vmem:[#allocation5 + $0x10] sm:$0xff]  }
 0x205   :  { %1058 = vst [vmem:[#allocation17 + $0x8] sm:$0xff] %v1020_v20  ;;  %v1074_v21 = vpack.c.bf16 %v1020_v20, %v1020_v20 }
 0x207   :  { %v1093_v22 = vunpack.c.l.bf16 %v1074_v21 }
 0x209   :  { %v2960_v23 = vpop.eup %2959  ;;  %v1110_v25 = vmul.f32 1.442695, %v1093_v22 }
 0x20a   :  { %v1140_v26 = vpack.c.bf16 %v2960_v23, %v2960_v23  ;;  %v1022_v27 = vpop.f32.mrf.mxu3 }
 0x20b   :  { %2961 = vpow2.f32 %v1110_v25  ;;  %v1023_v29 = vadd.f32 %v3563_v58, %v1022_v27 }
 0x20c   :  { %v1172_v31 = vunpack.c.l.bf16 %v1140_v26  ;;  %v2908_v26 = vunpack.c.l.bf16 %v2931_v18 }
 0x20d   :  { %1059 = vst [vmem:[#allocation17 + $0x10] sm:$0xff] %v1023_v29  ;;  %v1075_v32 = vpack.c.bf16 %v1023_v29, %v1023_v29 }
 0x20e   :  { %v1204_v35 = vmul.f32 %v2900_v30, %v1172_v31 }
 0x20f   :  { %v1094_v34 = vunpack.c.l.bf16 %v1075_v32 }
 0x210   :  { %v1220_v42 = vpack.c.bf16 %v1204_v35, %v1204_v35  ;;  %v2909_v35 = vunpack.c.h.bf16 %v2931_v18 }
 0x211   :  { %v2962_v36 = vpop.eup %2961  ;;  %v1112_v37 = vmul.f32 1.442695, %v1094_v34 }
 0x212   :  { %v1141_v38 = vpack.c.bf16 %v2962_v36, %v2962_v36  ;;  %v1024_v40 = vpop.f32.mrf.mxu3  ;;  %v1237_v49 = vsel %vm3569_vm1, %v1073_v16, %v1220_v42 }
 0x213   :  { %2963 = vpow2.f32 %v1112_v37  ;;  %v1025_v41 = vadd.f32 %v3563_v58, %v1024_v40  ;;  %v1289_v56 = vunpack.c.l.b16 %v1237_v49 }
 0x214   :  { %v1173_v43 = vunpack.c.l.bf16 %v1141_v38 }
 0x215   :  { %1060 = vst [vmem:[#allocation17 + $0x18] sm:$0xff] %v1025_v41  ;;  %v1076_v44 = vpack.c.bf16 %v1025_v41, %v1025_v41 }
 0x216   :  { %v1205_v46 = vmul.f32 %v2901_v39, %v1173_v43 }
 0x217   :  { %v1095_v47 = vunpack.c.l.bf16 %v1076_v44 }
 0x218   :  { %v1221_v48 = vpack.c.bf16 %v1205_v46, %v1205_v46 }
 0x219   :  { %v2964_v50 = vpop.eup %2963  ;;  %v1114_v51 = vmul.f32 1.442695, %v1095_v47 }
 0x21a   :  { %v1142_v52 = vpack.c.bf16 %v2964_v50, %v2964_v50  ;;  %v1027_v53 = vpop.f32.mrf.mxu3  ;;  %v1238_v54 = vsel %vm3569_vm1, %v1074_v21, %v1221_v48  ;;  %v2932_v48 = vld [vmem:[#allocation5 + $0x18] sm:$0xff]  }
 0x21b   :  { %2965 = vpow2.f32 %v1114_v51  ;;  %v1028_v55 = vadd.f32 %v3563_v58, %v1027_v53  ;;  %v1290_v57 = vunpack.c.l.b16 %v1238_v54 }
 0x21c   :  { %v1174_v59 = vunpack.c.l.bf16 %v1142_v52 }
 0x21d   :  { %1061 = vst [vmem:[#allocation17 + $0x20] sm:$0xff] %v1028_v55  ;;  %v1077_v61 = vpack.c.bf16 %v1028_v55, %v1028_v55  ;;  %v1305_v62 = vpack.c.b16 %v1290_v57, %v1289_v56  ;;  %v2912_v55 = vunpack.c.l.bf16 %v2932_v48 }
 0x21e   :  { %v1206_v0 = vmul.f32 %v2904_v60, %v1174_v59 }
 0x21f   :  { %v1096_v63 = vunpack.c.l.bf16 %v1077_v61  ;;  %1377 = vmatmul.bf16.vlgmr.msrb.gmra.mxu0 %v1305_v62 }
 0x220   :  { %v1222_v9 = vpack.c.bf16 %v1206_v0, %v1206_v0 }
 0x221   :  { %v2966_v1 = vpop.eup %2965  ;;  %v1116_v2 = vmul.f32 1.442695, %v1096_v63 }
 0x222   :  { %v1143_v3 = vpack.c.bf16 %v2966_v1, %v2966_v1  ;;  %v1029_v4 = vpop.f32.mrf.mxu3  ;;  %v1239_v15 = vsel %vm3569_vm1, %v1075_v32, %v1222_v9  ;;  %v2913_v1 = vunpack.c.h.bf16 %v2932_v48 }
 0x223   :  { %2967 = vpow2.f32 %v1116_v2  ;;  %v1030_v6 = vadd.f32 %v3563_v58, %v1029_v4  ;;  %v1291_v23 = vunpack.c.l.b16 %v1239_v15 }
 0x224   :  { %v1175_v7 = vunpack.c.l.bf16 %v1143_v3 }
 0x225   :  { %1062 = vst [vmem:[#allocation17 + $0x28] sm:$0xff] %v1030_v6  ;;  %v1078_v11 = vpack.c.bf16 %v1030_v6, %v1030_v6 }
 0x226   :  { %v1207_v12 = vmul.f32 %v2905_v5, %v1175_v7 }
 0x227   :  { %v1097_v13 = vunpack.c.l.bf16 %v1078_v11 }
 0x228   :  { %v1223_v14 = vpack.c.bf16 %v1207_v12, %v1207_v12 }
 0x229   :  { %v2968_v16 = vpop.eup %2967  ;;  %v1118_v17 = vmul.f32 1.442695, %v1097_v13  ;;  %v2933_v13 = vld [vmem:[#allocation5 + $0x20] sm:$0xff]  }
 0x22a   :  { %v1144_v19 = vpack.c.bf16 %v2968_v16, %v2968_v16  ;;  %v1032_v20 = vpop.f32.mrf.mxu3  ;;  %v1240_v21 = vsel %vm3569_vm1, %v1076_v44, %v1223_v14  ;;  %v2880_v44 = vld [vmem:[#allocation13 + $0x30] sm:$0xff] }
 0x22b   :  { %2969 = vpow2.f32 %v1118_v17  ;;  %v1033_v22 = vadd.f32 %v3563_v58, %v1032_v20  ;;  %v1292_v24 = vunpack.c.l.b16 %v1240_v21  ;;  %1647 = vmatpush.bf16.msrb.mxu1 %v2880_v44  ;;  %v2916_v21 = vunpack.c.l.bf16 %v2933_v13 }
 0x22c   :  { %v1176_v25 = vunpack.c.l.bf16 %v1144_v19 }
 0x22d   :  { %1063 = vst [vmem:[#allocation17 + $0x30] sm:$0xff] %v1033_v22  ;;  %v1079_v27 = vpack.c.bf16 %v1033_v22, %v1033_v22  ;;  %v1306_v28 = vpack.c.b16 %v1292_v24, %v1291_v23 }
 0x22e   :  { %v1208_v30 = vmul.f32 %v2908_v26, %v1176_v25 }
 0x22f   :  { %v1098_v29 = vunpack.c.l.bf16 %v1079_v27  ;;  %1382 = vmatmul.bf16.gmra.mxu0 %v1306_v28 }
 0x230   :  { %v1224_v38 = vpack.c.bf16 %v1208_v30, %v1208_v30  ;;  %v2917_v30 = vunpack.c.h.bf16 %v2933_v13 }
 0x231   :  { %v2970_v31 = vpop.eup %2969  ;;  %v1120_v32 = vmul.f32 1.442695, %v1098_v29 }
 0x232   :  { %v1145_v33 = vpack.c.bf16 %v2970_v31, %v2970_v31  ;;  %v1034_v34 = vpop.f32.mrf.mxu3  ;;  %v1241_v43 = vsel %vm3569_vm1, %v1077_v61, %v1224_v38 }
 0x233   :  { %2971 = vpow2.f32 %v1120_v32  ;;  %v1035_v36 = vadd.f32 %v3563_v58, %v1034_v34  ;;  %v1293_v52 = vunpack.c.l.b16 %v1241_v43 }
 0x234   :  { %v1177_v37 = vunpack.c.l.bf16 %v1145_v33 }
 0x235   :  { %1064 = vst [vmem:[#allocation17 + $0x38] sm:$0xff] %v1035_v36  ;;  %v1080_v39 = vpack.c.bf16 %v1035_v36, %v1035_v36 }
 0x236   :  { %v1209_v40 = vmul.f32 %v2909_v35, %v1177_v37 }
 0x237   :  { %v1099_v41 = vunpack.c.l.bf16 %v1080_v39 }
 0x238   :  { %v1225_v42 = vpack.c.bf16 %v1209_v40, %v1209_v40  ;;  %v2878_v40 = vld [vmem:[#allocation13 + $0x20] sm:$0xff] }
 0x239   :  { %v2972_v46 = vpop.eup %2971  ;;  %v1122_v47 = vmul.f32 1.442695, %v1099_v41 }
 0x23a   :  { %v1146_v49 = vpack.c.bf16 %v2972_v46, %v2972_v46  ;;  %v1037_v50 = vpop.f32.mrf.mxu3  ;;  %v1242_v51 = vsel %vm3569_vm1, %v1078_v11, %v1225_v42  ;;  %v2879_v11 = vld [vmem:[#allocation13 + $0x28] sm:$0xff] }
 0x23b   :  { %2973 = vpow2.f32 %v1122_v47  ;;  %v1038_v8 = vadd.f32 %v3563_v58, %v1037_v50  ;;  %v1294_v53 = vunpack.c.l.b16 %v1242_v51  ;;  %1648 = vmatpush.bf16.msrb.mxu1 %v2879_v11  ;;  %v2934_v42 = vld [vmem:[#allocation5 + $0x28] sm:$0xff]  }
 0x23c   :  { %v1178_v54 = vunpack.c.l.bf16 %v1146_v49  ;;  %v2920_v51 = vunpack.c.l.bf16 %v2934_v42 }
 0x23d   :  { %1065 = vst [vmem:[#allocation17 + $0x40] sm:$0xff] %v1038_v8  ;;  %v1081_v56 = vpack.c.bf16 %v1038_v8, %v1038_v8  ;;  %v1307_v57 = vpack.c.b16 %v1294_v53, %v1293_v52 }
 0x23e   :  { %v1210_v60 = vmul.f32 %v2912_v55, %v1178_v54 }
 0x23f   :  { %v1100_v59 = vunpack.c.l.bf16 %v1081_v56  ;;  %1387 = vmatmul.bf16.gmra.mxu0 %v1307_v57  ;;  %1649 = vmatpush.bf16.msrb.mxu1 %v2878_v40 }
 0x240   :  { %v1226_v4 = vpack.c.bf16 %v1210_v60, %v1210_v60  ;;  %v2921_v60 = vunpack.c.h.bf16 %v2934_v42 }
 0x241   :  { %v2974_v61 = vpop.eup %2973  ;;  %v1124_v62 = vmul.f32 1.442695, %v1100_v59 }
 0x242   :  { %v1147_v63 = vpack.c.bf16 %v2974_v61, %v2974_v61  ;;  %v1039_v0 = vpop.f32.mrf.mxu3  ;;  %v1243_v10 = vsel %vm3569_vm1, %v1079_v27, %v1226_v4 }
 0x243   :  { %2975 = vpow2.f32 %v1124_v62  ;;  %v1040_v2 = vadd.f32 %v3563_v58, %v1039_v0  ;;  %v1295_v19 = vunpack.c.l.b16 %v1243_v10 }
 0x244   :  { %v1179_v3 = vunpack.c.l.bf16 %v1147_v63 }
 0x245   :  { %1066 = vst [vmem:[#allocation17 + $0x48] sm:$0xff] %v1040_v2  ;;  %v1082_v5 = vpack.c.bf16 %v1040_v2, %v1040_v2 }
 0x246   :  { %v1211_v6 = vmul.f32 %v2913_v1, %v1179_v3 }
 0x247   :  { %v1101_v7 = vunpack.c.l.bf16 %v1082_v5 }
 0x248   :  { %v1227_v9 = vpack.c.bf16 %v1211_v6, %v1211_v6  ;;  %v2877_v6 = vld [vmem:[#allocation13 + $0x18] sm:$0xff] }
 0x249   :  { %v2976_v12 = vpop.eup %2975  ;;  %v1126_v14 = vmul.f32 1.442695, %v1101_v7  ;;  %1650 = vmatpush.bf16.msrb.mxu1 %v2877_v6 }
 0x24a   :  { %v1148_v15 = vpack.c.bf16 %v2976_v12, %v2976_v12  ;;  %v1042_v16 = vpop.f32.mrf.mxu3  ;;  %v1244_v17 = vsel %vm3569_vm1, %v1080_v39, %v1227_v9  ;;  %v2935_v9 = vld [vmem:[#allocation5 + $0x30] sm:$0xff]  }
 0x24b   :  { %2977 = vpow2.f32 %v1126_v14  ;;  %v1043_v18 = vadd.f32 %v3563_v58, %v1042_v16  ;;  %v1296_v20 = vunpack.c.l.b16 %v1244_v17  ;;  %v2876_v14 = vld [vmem:[#allocation13 + $0x10] sm:$0xff] }
 0x24c   :  { %v1180_v22 = vunpack.c.l.bf16 %v1148_v15 }
 0x24d   :  { %1067 = vst [vmem:[#allocation17 + $0x50] sm:$0xff] %v1043_v18  ;;  %v1083_v23 = vpack.c.bf16 %v1043_v18, %v1043_v18  ;;  %v1308_v24 = vpack.c.b16 %v1296_v20, %v1295_v19  ;;  %v2924_v18 = vunpack.c.l.bf16 %v2935_v9  ;;  %1651 = vmatpush.bf16.msrb.mxu1 %v2876_v14  ;;  %v2812_v14 = vld [vmem:[#allocation14 + $0x70] sm:$0xf] }
 0x24e   :  { %v1212_v26 = vmul.f32 %v2916_v21, %v1180_v22 }
 0x24f   :  { %v1102_v25 = vunpack.c.l.bf16 %v1083_v23  ;;  %1392 = vmatmul.bf16.gmra.mxu0 %v1308_v24 }
 0x250   :  { %v1228_v33 = vpack.c.bf16 %v1212_v26, %v1212_v26 }
 0x251   :  { %v2978_v27 = vpop.eup %2977  ;;  %v1128_v28 = vmul.f32 1.442695, %v1102_v25 }
 0x252   :  { %v1149_v29 = vpack.c.bf16 %v2978_v27, %v2978_v27  ;;  %v1044_v31 = vpop.f32.mrf.mxu3  ;;  %v1245_v39 = vsel %vm3569_vm1, %v1081_v56, %v1228_v33 }
 0x253   :  { %2979 = vpow2.f32 %v1128_v28  ;;  %v1045_v32 = vadd.f32 %v3563_v58, %v1044_v31  ;;  %v1297_v49 = vunpack.c.l.b16 %v1245_v39  ;;  %v2925_v28 = vunpack.c.h.bf16 %v2935_v9  ;;  %v2936_v39 = vld [vmem:[#allocation5 + $0x38] sm:$0xff]  }
 0x254   :  { %v1181_v34 = vunpack.c.l.bf16 %v1149_v29 }
 0x255   :  { %1068 = vst [vmem:[#allocation17 + $0x58] sm:$0xff] %v1045_v32  ;;  %v1084_v35 = vpack.c.bf16 %v1045_v32, %v1045_v32 }
 0x256   :  { %v1213_v36 = vmul.f32 %v2917_v30, %v1181_v34 }
 0x257   :  { %v1103_v37 = vunpack.c.l.bf16 %v1084_v35 }
 0x258   :  { %v1229_v38 = vpack.c.bf16 %v1213_v36, %v1213_v36 }
 0x259   :  { %v2980_v41 = vpop.eup %2979  ;;  %v1130_v43 = vmul.f32 1.442695, %v1103_v37 }
 0x25a   :  { %v1150_v44 = vpack.c.bf16 %v2980_v41, %v2980_v41  ;;  %v1047_v46 = vpop.f32.mrf.mxu3  ;;  %v1246_v47 = vsel %vm3569_vm1, %v1082_v5, %v1229_v38 }
 0x25b   :  { %2981 = vpow2.f32 %v1130_v43  ;;  %v1048_v48 = vadd.f32 %v3563_v58, %v1047_v46  ;;  %v1298_v50 = vunpack.c.l.b16 %v1246_v47 }
 0x25c   :  { %v1182_v8 = vunpack.c.l.bf16 %v1150_v44  ;;  %v2928_v44 = vunpack.c.l.bf16 %v2936_v39 }
 0x25d   :  { %1069 = vst [vmem:[#allocation17 + $0x60] sm:$0xff] %v1048_v48  ;;  %v1085_v52 = vpack.c.bf16 %v1048_v48, %v1048_v48  ;;  %v1309_v53 = vpack.c.b16 %v1298_v50, %v1297_v49 }
 0x25e   :  { %v1214_v55 = vmul.f32 %v2920_v51, %v1182_v8  ;;  %v2929_v51 = vunpack.c.h.bf16 %v2936_v39  ;;  %v2894_v39 = vld [vmem:[#allocation14 + $0x64] sm:$0xf] }
 0x25f   :  { %v1104_v54 = vunpack.c.l.bf16 %v1085_v52  ;;  %1397 = vmatmul.bf16.gmra.mxu0 %v1309_v53 }
 0x260   :  { %v1230_v63 = vpack.c.bf16 %v1214_v55, %v1214_v55 }
 0x261   :  { %v2982_v56 = vpop.eup %2981  ;;  %v1132_v57 = vmul.f32 1.442695, %v1104_v54 }
 0x262   :  { %v1151_v59 = vpack.c.bf16 %v2982_v56, %v2982_v56  ;;  %v1049_v61 = vpop.f32.mrf.mxu3  ;;  %v1247_v5 = vsel %vm3569_vm1, %v1083_v23, %v1230_v63  ;;  %v2875_v23 = vld [vmem:[#allocation13 + $0x8] sm:$0xff] }
 0x263   :  { %2983 = vpow2.f32 %v1132_v57  ;;  %v1050_v62 = vadd.f32 %v3563_v58, %v1049_v61  ;;  %v1299_v16 = vunpack.c.l.b16 %v1247_v5  ;;  %1652 = vmatpush.bf16.msrb.mxu1 %v2875_v23  ;;  %v2874_v61 = vld [vmem:[#allocation13] sm:$0xff] }
 0x264   :  { %v1183_v0 = vunpack.c.l.bf16 %v1151_v59 }
 0x265   :  { %1070 = vst [vmem:[#allocation17 + $0x68] sm:$0xff] %v1050_v62  ;;  %v1086_v1 = vpack.c.bf16 %v1050_v62, %v1050_v62  ;;  %v3620_v62 = vld [vmem:[%s3752_s9] ss:$0 sm:$0xff] }
 0x266   :  { %v1215_v2 = vmul.f32 %v2921_v60, %v1183_v0 }
 0x267   :  { %v1105_v3 = vunpack.c.l.bf16 %v1086_v1  ;;  %1653 = vmatpush.bf16.msrb.mxu1 %v2874_v61 }
 0x268   :  { %v1231_v4 = vpack.c.bf16 %v1215_v2, %v1215_v2 }
 0x269   :  { %v2984_v7 = vpop.eup %2983  ;;  %v1134_v10 = vmul.f32 1.442695, %v1105_v3 }
 0x26a   :  { %v1152_v11 = vpack.c.bf16 %v2984_v7, %v2984_v7  ;;  %v1052_v12 = vpop.f32.mrf.mxu3  ;;  %v1248_v13 = vsel %vm3569_vm1, %v1084_v35, %v1231_v4 }
 0x26b   :  { %2985 = vpow2.f32 %v1134_v10  ;;  %v1053_v15 = vadd.f32 %v3563_v58, %v1052_v12  ;;  %v1300_v17 = vunpack.c.l.b16 %v1248_v13 }
 0x26c   :  { %v1184_v19 = vunpack.c.l.bf16 %v1152_v11 }
 0x26d   :  { %1071 = vst [vmem:[#allocation17 + $0x70] sm:$0xff] %v1053_v15  ;;  %v1087_v20 = vpack.c.bf16 %v1053_v15, %v1053_v15  ;;  %v1310_v21 = vpack.c.b16 %v1300_v17, %v1299_v16  ;;  %v2897_v15 = vld [vmem:[#allocation14 + $0x74] sm:$0xf0]  ;;  %v2896_v16 = vld [vmem:[#allocation14 + $0x74] sm:$0xf] }
 0x26e   :  { %v1216_v24 = vmul.f32 %v2924_v18, %v1184_v19  ;;  %v2813_v17 = vor.u32 %v2897_v15, %v2812_v14  ;;  %v2814_v18 = vld [vmem:[#allocation14 + $0x78] sm:$0xf0] }
 0x26f   :  { %v1106_v22 = vunpack.c.l.bf16 %v1087_v20  ;;  %1402 = vmatmul.bf16.gmra.mxu0 %v1310_v21  ;;  %v2817_v21 = vor.u32 %v2896_v16, %v2814_v18 }
 0x270   :  { %v1232_v31 = vpack.c.bf16 %v1216_v24, %v1216_v24  ;;  %1957 = vmatpush.bf16.msrb.mxu2 %v2813_v17 }
 0x271   :  { %v2986_v25 = vpop.eup %2985  ;;  %v1136_v26 = vmul.f32 1.442695, %v1106_v22  ;;  %2006 = vmatpush.bf16.msrb.mxu3 %v2817_v21 }
 0x272   :  { %v1153_v27 = vpack.c.bf16 %v2986_v25, %v2986_v25  ;;  %v1054_v29 = vpop.f32.mrf.mxu3  ;;  %v1249_v37 = vsel %vm3569_vm1, %v1085_v52, %v1232_v31 }
 0x273   :  { %2987 = vpow2.f32 %v1136_v26  ;;  %v1055_v30 = vadd.f32 %v3563_v58, %v1054_v29  ;;  %v1301_v43 = vunpack.c.l.b16 %v1249_v37  ;;  %v2804_v37 = vld [vmem:[#allocation14 + $0x60] sm:$0xf] }
 0x274   :  { %v1185_v32 = vunpack.c.l.bf16 %v1153_v27 }
 0x275   :  { %1072 = vst [vmem:[#allocation17 + $0x78] sm:$0xff] %v1055_v30  ;;  %v1088_v33 = vpack.c.bf16 %v1055_v30, %v1055_v30 }
 0x276   :  { %v1217_v34 = vmul.f32 %v2925_v28, %v1185_v32 }
 0x277   :  { %v1107_v35 = vunpack.c.l.bf16 %v1088_v33 }
 0x278   :  { %v1233_v36 = vpack.c.bf16 %v1217_v34, %v1217_v34 }
 0x279   :  { %v2988_v38 = vpop.eup %2987  ;;  %v1138_v40 = vmul.f32 1.442695, %v1107_v35 }
 0x27a   :  { %v1154_v41 = vpack.c.bf16 %v2988_v38, %v2988_v38  ;;  %v1250_v42 = vsel %vm3569_vm1, %v1086_v1, %v1233_v36  ;;  %v2895_v38 = vld [vmem:[#allocation14 + $0x64] sm:$0xf0] }
 0x27b   :  { %2989 = vpow2.f32 %v1138_v40  ;;  %v1302_v58 = vunpack.c.l.b16 %v1250_v42  ;;  %v2805_v40 = vor.u32 %v2895_v38, %v2804_v37 }
 0x27c   :  { %v1186_v46 = vunpack.c.l.bf16 %v1154_v41  ;;  %v2806_v41 = vld [vmem:[#allocation14 + $0x68] sm:$0xf0] }
 0x27d   :  { %v1311_v47 = vpack.c.b16 %v1302_v58, %v1301_v43  ;;  %v2809_v58 = vor.u32 %v2894_v39, %v2806_v41  ;;  %1958 = vmatpush.bf16.msrb.mxu2 %v2805_v40 }
 0x27e   :  { %v1218_v48 = vmul.f32 %v2928_v44, %v1186_v46 }
 0x27f   :  { %1407 = vmatmul.bf16.gmra.mxu0 %v1311_v47  ;;  %2007 = vmatpush.bf16.msrb.mxu3 %v2809_v58 }
 0x280   :  { %v1234_v8 = vpack.c.bf16 %v1218_v48, %v1218_v48 }
 0x281   :  { %v2990_v49 = vpop.eup %2989 }
 0x282   :  { %v1155_v50 = vpack.c.bf16 %v2990_v49, %v2990_v49  ;;  %v1251_v55 = vsel %vm3569_vm1, %v1087_v20, %v1234_v8 }
 0x283   :  { %v1303_v57 = vunpack.c.l.b16 %v1251_v55 }
 0x284   :  { %v1187_v52 = vunpack.c.l.bf16 %v1155_v50 }
 0x286   :  { %v1219_v53 = vmul.f32 %v2929_v51, %v1187_v52 }
 0x288   :  { %v1235_v54 = vpack.c.bf16 %v1219_v53, %v1219_v53 }
 0x28a   :  { %v1252_v56 = vsel %vm3569_vm1, %v1088_v33, %v1235_v54 }
 0x28b   :  { %v1304_v59 = vunpack.c.l.b16 %v1252_v56 }
 0x28d   :  { %v1312_v60 = vpack.c.b16 %v1304_v59, %v1303_v57 }
 0x28f   :  { %1412 = vmatmul.bf16.gmra.mxu0 %v1312_v60 }
 0x29c   :  { %v1378_v63 = vpop.f32.mrf.mxu0 }
 0x29d   :  { %v1379_v0 = vadd.f32 %v3620_v62, %v1378_v63 }
 0x29f   :  { %v1418_v1 = vpack.c.bf16 %v1379_v0, %v1379_v0 }
 0x2a1   :  { %v1434_v2 = vunpack.c.l.bf16 %v1418_v1 }
 0x2a3   :  { %v1466_v4 = vmul.f32 0.20019531, %v1434_v2  ;;  %vm1450_vm2 = vcmp.gt.f32.partialorder %v1434_v2, 0.0  ;;  %v2893_v2 = vld [vmem:[#allocation14 + $0x54] sm:$0xf0] }
 0x2a4   :  { %v1380_v3 = vpop.f32.mrf.mxu0  ;;  %vm1498_vm4 = vmpackc.low %vm1450_vm2, %vm1450_vm2 }
 0x2a5   :  { %v1381_v45 = vadd.f32 %v3620_v62, %v1380_v3  ;;  %v1482_v6 = vpack.c.bf16 %v1466_v4, %v1466_v4  ;;  %v2892_v3 = vld [vmem:[#allocation14 + $0x54] sm:$0xf] }
 0x2a7   :  { %v1419_v5 = vpack.c.bf16 %v1381_v45, %v1381_v45  ;;  %v1514_v11 = vsel %vm1498_vm4, %v1418_v1, %v1482_v6  ;;  %v2796_v1 = vld [vmem:[#allocation14 + $0x50] sm:$0xf] }
 0x2a8   :  { %v1566_v22 = vunpack.c.l.b16 %v1514_v11  ;;  %v2797_v45 = vor.u32 %v2893_v2, %v2796_v1 }
 0x2a9   :  { %v1435_v7 = vunpack.c.l.bf16 %v1419_v5 }
 0x2aa   :  { %1959 = vmatpush.bf16.msrb.mxu2 %v2797_v45 }
 0x2ab   :  { %vm1451_vm3 = vcmp.gt.f32.partialorder %v1435_v7, 0.0  ;;  %v1467_v9 = vmul.f32 0.20019531, %v1435_v7 }
 0x2ac   :  { %v1383_v10 = vpop.f32.mrf.mxu0  ;;  %vm1499_vm5 = vmpackc.low %vm1451_vm3, %vm1451_vm3 }
 0x2ad   :  { %v1483_v12 = vpack.c.bf16 %v1467_v9, %v1467_v9  ;;  %v1384_v13 = vadd.f32 %v3620_v62, %v1383_v10 }
 0x2af   :  { %v1515_v19 = vsel %vm1499_vm5, %v1419_v5, %v1483_v12  ;;  %v1420_v20 = vpack.c.bf16 %v1384_v13, %v1384_v13  ;;  %v2798_v5 = vld [vmem:[#allocation14 + $0x58] sm:$0xf0] }
 0x2b0   :  { %v1567_v23 = vunpack.c.l.b16 %v1515_v19  ;;  %v2801_v7 = vor.u32 %v2892_v3, %v2798_v5 }
 0x2b1   :  { %v1436_v24 = vunpack.c.l.bf16 %v1420_v20 }
 0x2b2   :  { %v1582_v25 = vpack.c.b16 %v1567_v23, %v1566_v22  ;;  %2008 = vmatpush.bf16.msrb.mxu3 %v2801_v7  ;;  %v2887_v7 = vld [vmem:[#allocation14 + $0x24] sm:$0xf0] }
 0x2b3   :  { %v1468_v27 = vmul.f32 0.20019531, %v1436_v24  ;;  %vm1452_vm6 = vcmp.gt.f32.partialorder %v1436_v24, 0.0  ;;  %v2788_v24 = vld [vmem:[#allocation14 + $0x40] sm:$0xf] }
 0x2b4   :  { %v1385_v26 = vpop.f32.mrf.mxu0  ;;  %1654 = vmatmul.bf16.vlgmr.msrb.gmra.mxu1 %v1582_v25  ;;  %vm1500_vm8 = vmpackc.low %vm1452_vm6, %vm1452_vm6  ;;  %v2891_v25 = vld [vmem:[#allocation14 + $0x44] sm:$0xf0] }
 0x2b5   :  { %v1386_v28 = vadd.f32 %v3620_v62, %v1385_v26  ;;  %v1484_v30 = vpack.c.bf16 %v1468_v27, %v1468_v27  ;;  %v2890_v26 = vld [vmem:[#allocation14 + $0x44] sm:$0xf] }
 0x2b7   :  { %v1421_v29 = vpack.c.bf16 %v1386_v28, %v1386_v28  ;;  %v1516_v36 = vsel %vm1500_vm8, %v1420_v20, %v1484_v30  ;;  %v2789_v28 = vor.u32 %v2891_v25, %v2788_v24 }
 0x2b8   :  { %v1568_v44 = vunpack.c.l.b16 %v1516_v36 }
 0x2b9   :  { %v1437_v31 = vunpack.c.l.bf16 %v1421_v29  ;;  %1960 = vmatpush.bf16.msrb.mxu2 %v2789_v28 }
 0x2bb   :  { %vm1453_vm7 = vcmp.gt.f32.partialorder %v1437_v31, 0.0  ;;  %v1469_v32 = vmul.f32 0.20019531, %v1437_v31 }
 0x2bc   :  { %v1388_v33 = vpop.f32.mrf.mxu0  ;;  %vm1501_vm9 = vmpackc.low %vm1453_vm7, %vm1453_vm7 }
 0x2bd   :  { %v1485_v34 = vpack.c.bf16 %v1469_v32, %v1469_v32  ;;  %v1389_v35 = vadd.f32 %v3620_v62, %v1388_v33 }
 0x2bf   :  { %v1422_v42 = vpack.c.bf16 %v1389_v35, %v1389_v35  ;;  %v1517_v43 = vsel %vm1501_vm9, %v1421_v29, %v1485_v34  ;;  %v2790_v29 = vld [vmem:[#allocation14 + $0x48] sm:$0xf0] }
 0x2c0   :  { %v1569_v46 = vunpack.c.l.b16 %v1517_v43  ;;  %v2793_v31 = vor.u32 %v2890_v26, %v2790_v29 }
 0x2c1   :  { %v1438_v47 = vunpack.c.l.bf16 %v1422_v42 }
 0x2c2   :  { %v1583_v48 = vpack.c.b16 %v1569_v46, %v1568_v44  ;;  %2009 = vmatpush.bf16.msrb.mxu3 %v2793_v31 }
 0x2c3   :  { %v1470_v50 = vmul.f32 0.20019531, %v1438_v47  ;;  %vm1454_vm10 = vcmp.gt.f32.partialorder %v1438_v47, 0.0  ;;  %v2780_v47 = vld [vmem:[#allocation14 + $0x30] sm:$0xf] }
 0x2c4   :  { %v1390_v49 = vpop.f32.mrf.mxu0  ;;  %1659 = vmatmul.bf16.gmra.mxu1 %v1583_v48  ;;  %vm1502_vm12 = vmpackc.low %vm1454_vm10, %vm1454_vm10  ;;  %v2889_v48 = vld [vmem:[#allocation14 + $0x34] sm:$0xf0] }
 0x2c5   :  { %v1391_v51 = vadd.f32 %v3620_v62, %v1390_v49  ;;  %v1486_v52 = vpack.c.bf16 %v1470_v50, %v1470_v50  ;;  %v2888_v49 = vld [vmem:[#allocation14 + $0x34] sm:$0xf] }
 0x2c7   :  { %v1423_v8 = vpack.c.bf16 %v1391_v51, %v1391_v51  ;;  %v1518_v59 = vsel %vm1502_vm12, %v1422_v42, %v1486_v52  ;;  %v2781_v51 = vor.u32 %v2889_v48, %v2780_v47 }
 0x2c8   :  { %v1570_v63 = vunpack.c.l.b16 %v1518_v59 }
 0x2c9   :  { %v1439_v53 = vunpack.c.l.bf16 %v1423_v8  ;;  %1961 = vmatpush.bf16.msrb.mxu2 %v2781_v51  ;;  %v2756_v51 = vld [vmem:[#allocation14] sm:$0xf] }
 0x2cb   :  { %vm1455_vm11 = vcmp.gt.f32.partialorder %v1439_v53, 0.0  ;;  %v1471_v54 = vmul.f32 0.20019531, %v1439_v53 }
 0x2cc   :  { %v1393_v55 = vpop.f32.mrf.mxu0  ;;  %vm1503_vm13 = vmpackc.low %vm1455_vm11, %vm1455_vm11 }
 0x2cd   :  { %v1487_v56 = vpack.c.bf16 %v1471_v54, %v1471_v54  ;;  %v1394_v57 = vadd.f32 %v3620_v62, %v1393_v55 }
 0x2cf   :  { %v1424_v60 = vpack.c.bf16 %v1394_v57, %v1394_v57  ;;  %v1519_v61 = vsel %vm1503_vm13, %v1423_v8, %v1487_v56  ;;  %v2782_v8 = vld [vmem:[#allocation14 + $0x38] sm:$0xf0] }
 0x2d0   :  { %v1571_v0 = vunpack.c.l.b16 %v1519_v61  ;;  %v2785_v53 = vor.u32 %v2888_v49, %v2782_v8  ;;  %v2883_v8 = vld [vmem:[#allocation14 + $0x4] sm:$0xf0] }
 0x2d1   :  { %v1440_v4 = vunpack.c.l.bf16 %v1424_v60 }
 0x2d2   :  { %v1584_v6 = vpack.c.b16 %v1571_v0, %v1570_v63  ;;  %2010 = vmatpush.bf16.msrb.mxu3 %v2785_v53  ;;  %v2757_v53 = vor.u32 %v2883_v8, %v2756_v51 }
 0x2d3   :  { %v1472_v10 = vmul.f32 0.20019531, %v1440_v4  ;;  %vm1456_vm14 = vcmp.gt.f32.partialorder %v1440_v4, 0.0 }
 0x2d4   :  { %v1395_v9 = vpop.f32.mrf.mxu0  ;;  %1664 = vmatmul.bf16.gmra.mxu1 %v1584_v6  ;;  %vm1504_vm0 = vmpackc.low %vm1456_vm14, %vm1456_vm14  ;;  %v2772_v6 = vld [vmem:[#allocation14 + $0x20] sm:$0xf] }
 0x2d5   :  { %v1396_v11 = vadd.f32 %v3620_v62, %v1395_v9  ;;  %v1488_v13 = vpack.c.bf16 %v1472_v10, %v1472_v10  ;;  %v2886_v9 = vld [vmem:[#allocation14 + $0x24] sm:$0xf] }
 0x2d7   :  { %v1425_v12 = vpack.c.bf16 %v1396_v11, %v1396_v11  ;;  %v1520_v19 = vsel %vm1504_vm0, %v1424_v60, %v1488_v13  ;;  %v2773_v11 = vor.u32 %v2887_v7, %v2772_v6 }
 0x2d8   :  { %v1572_v22 = vunpack.c.l.b16 %v1520_v19 }
 0x2d9   :  { %v1441_v14 = vunpack.c.l.bf16 %v1425_v12  ;;  %1962 = vmatpush.bf16.msrb.mxu2 %v2773_v11 }
 0x2db   :  { %vm1457_vm15 = vcmp.gt.f32.partialorder %v1441_v14, 0.0  ;;  %v1473_v15 = vmul.f32 0.20019531, %v1441_v14 }
 0x2dc   :  { %v1398_v16 = vpop.f32.mrf.mxu0  ;;  %vm1505_vm1 = vmpackc.low %vm1457_vm15, %vm1457_vm15 }
 0x2dd   :  { %v1489_v17 = vpack.c.bf16 %v1473_v15, %v1473_v15  ;;  %v1399_v18 = vadd.f32 %v3620_v62, %v1398_v16  ;;  %v2764_v16 = vld [vmem:[#allocation14 + $0x10] sm:$0xf] }
 0x2df   :  { %v1426_v20 = vpack.c.bf16 %v1399_v18, %v1399_v18  ;;  %v1521_v21 = vsel %vm1505_vm1, %v1425_v12, %v1489_v17  ;;  %v2774_v12 = vld [vmem:[#allocation14 + $0x28] sm:$0xf0]  ;;  %v2885_v17 = vld [vmem:[#allocation14 + $0x14] sm:$0xf0] }
 0x2e0   :  { %v1573_v23 = vunpack.c.l.b16 %v1521_v21  ;;  %v2777_v14 = vor.u32 %v2886_v9, %v2774_v12  ;;  %v2884_v21 = vld [vmem:[#allocation14 + $0x14] sm:$0xf] }
 0x2e1   :  { %v1442_v27 = vunpack.c.l.bf16 %v1426_v20 }
 0x2e2   :  { %v1585_v30 = vpack.c.b16 %v1573_v23, %v1572_v22  ;;  %2011 = vmatpush.bf16.msrb.mxu3 %v2777_v14  ;;  %v2766_v22 = vld [vmem:[#allocation14 + $0x18] sm:$0xf0] }
 0x2e3   :  { %v1474_v33 = vmul.f32 0.20019531, %v1442_v27  ;;  %vm1458_vm2 = vcmp.gt.f32.partialorder %v1442_v27, 0.0  ;;  %v2769_v23 = vor.u32 %v2884_v21, %v2766_v22 }
 0x2e4   :  { %v1400_v32 = vpop.f32.mrf.mxu0  ;;  %1669 = vmatmul.bf16.gmra.mxu1 %v1585_v30  ;;  %vm1506_vm4 = vmpackc.low %vm1458_vm2, %vm1458_vm2 }
 0x2e5   :  { %v1401_v34 = vadd.f32 %v3620_v62, %v1400_v32  ;;  %v1490_v36 = vpack.c.bf16 %v1474_v33, %v1474_v33 }
 0x2e6   :  { %2012 = vmatpush.bf16.msrb.mxu3 %v2769_v23 }
 0x2e7   :  { %v1427_v35 = vpack.c.bf16 %v1401_v34, %v1401_v34  ;;  %v1522_v40 = vsel %vm1506_vm4, %v1426_v20, %v1490_v36  ;;  %v2765_v20 = vor.u32 %v2885_v17, %v2764_v16 }
 0x2e8   :  { %v1574_v44 = vunpack.c.l.b16 %v1522_v40 }
 0x2e9   :  { %v1443_v37 = vunpack.c.l.bf16 %v1427_v35  ;;  %1963 = vmatpush.bf16.msrb.mxu2 %v2765_v20 }
 0x2eb   :  { %vm1459_vm3 = vcmp.gt.f32.partialorder %v1443_v37, 0.0  ;;  %v1475_v38 = vmul.f32 0.20019531, %v1443_v37 }
 0x2ec   :  { %v1403_v39 = vpop.f32.mrf.mxu0  ;;  %vm1507_vm5 = vmpackc.low %vm1459_vm3, %vm1459_vm3 }
 0x2ed   :  { %v1491_v41 = vpack.c.bf16 %v1475_v38, %v1475_v38  ;;  %v1404_v42 = vadd.f32 %v3620_v62, %v1403_v39  ;;  %1964 = vmatpush.bf16.msrb.mxu2 %v2757_v53 }
 0x2ef   :  { %v1523_v43 = vsel %vm1507_vm5, %v1427_v35, %v1491_v41  ;;  %v1428_v58 = vpack.c.bf16 %v1404_v42, %v1404_v42 }
 0x2f0   :  { %v1575_v46 = vunpack.c.l.b16 %v1523_v43 }
 0x2f1   :  { %v1444_v50 = vunpack.c.l.bf16 %v1428_v58 }
 0x2f2   :  { %v1586_v52 = vpack.c.b16 %v1575_v46, %v1574_v44 }
 0x2f3   :  { %v1476_v55 = vmul.f32 0.20019531, %v1444_v50  ;;  %vm1460_vm6 = vcmp.gt.f32.partialorder %v1444_v50, 0.0 }
 0x2f4   :  { %v1405_v54 = vpop.f32.mrf.mxu0  ;;  %1674 = vmatmul.bf16.gmra.mxu1 %v1586_v52  ;;  %vm1508_vm8 = vmpackc.low %vm1460_vm6, %vm1460_vm6  ;;  %v2882_v52 = vld [vmem:[#allocation14 + $0x4] sm:$0xf] }
 0x2f5   :  { %v1406_v56 = vadd.f32 %v3620_v62, %v1405_v54  ;;  %v1492_v59 = vpack.c.bf16 %v1476_v55, %v1476_v55  ;;  %v3641_v55 = vld [vmem:[%s3754_s11] ss:$0 sm:$0xff] }
 0x2f7   :  { %v1429_v57 = vpack.c.bf16 %v1406_v56, %v1406_v56  ;;  %v1524_v0 = vsel %vm1508_vm8, %v1428_v58, %v1492_v59 }
 0x2f8   :  { %v1576_v45 = vunpack.c.l.b16 %v1524_v0 }
 0x2f9   :  { %v1445_v60 = vunpack.c.l.bf16 %v1429_v57 }
 0x2fb   :  { %vm1461_vm7 = vcmp.gt.f32.partialorder %v1445_v60, 0.0  ;;  %v1477_v61 = vmul.f32 0.20019531, %v1445_v60 }
 0x2fc   :  { %v1408_v63 = vpop.f32.mrf.mxu0  ;;  %vm1509_vm9 = vmpackc.low %vm1461_vm7, %vm1461_vm7 }
 0x2fd   :  { %v1493_v1 = vpack.c.bf16 %v1477_v61, %v1477_v61  ;;  %v1409_v2 = vadd.f32 %v3620_v62, %v1408_v63 }
 0x2ff   :  { %v1525_v3 = vsel %vm1509_vm9, %v1429_v57, %v1493_v1  ;;  %v1430_v4 = vpack.c.bf16 %v1409_v2, %v1409_v2 }
 0x300   :  { %v1577_v5 = vunpack.c.l.b16 %v1525_v3 }
 0x301   :  { %v1446_v10 = vunpack.c.l.bf16 %v1430_v4 }
 0x302   :  { %v1587_v13 = vpack.c.b16 %v1577_v5, %v1576_v45 }
 0x303   :  { %v1478_v18 = vmul.f32 0.20019531, %v1446_v10  ;;  %vm1462_vm10 = vcmp.gt.f32.partialorder %v1446_v10, 0.0 }
 0x304   :  { %v1410_v15 = vpop.f32.mrf.mxu0  ;;  %1679 = vmatmul.bf16.gmra.mxu1 %v1587_v13  ;;  %vm1510_vm12 = vmpackc.low %vm1462_vm10, %vm1462_vm10 }
 0x305   :  { %v1411_v19 = vadd.f32 %v3620_v62, %v1410_v15  ;;  %v1494_v25 = vpack.c.bf16 %v1478_v18, %v1478_v18 }
 0x307   :  { %v1431_v24 = vpack.c.bf16 %v1411_v19, %v1411_v19  ;;  %v1526_v29 = vsel %vm1510_vm12, %v1430_v4, %v1494_v25 }
 0x308   :  { %v1578_v34 = vunpack.c.l.b16 %v1526_v29 }
 0x309   :  { %v1447_v26 = vunpack.c.l.bf16 %v1431_v24 }
 0x30b   :  { %vm1463_vm11 = vcmp.gt.f32.partialorder %v1447_v26, 0.0  ;;  %v1479_v27 = vmul.f32 0.20019531, %v1447_v26 }
 0x30c   :  { %v1413_v28 = vpop.f32.mrf.mxu0  ;;  %vm1511_vm13 = vmpackc.low %vm1463_vm11, %vm1463_vm11 }
 0x30d   :  { %v1495_v30 = vpack.c.bf16 %v1479_v27, %v1479_v27  ;;  %v1414_v31 = vadd.f32 %v3620_v62, %v1413_v28 }
 0x30f   :  { %v1527_v32 = vsel %vm1511_vm13, %v1431_v24, %v1495_v30  ;;  %v1432_v33 = vpack.c.bf16 %v1414_v31, %v1414_v31 }
 0x310   :  { %v1579_v35 = vunpack.c.l.b16 %v1527_v32 }
 0x311   :  { %v1448_v36 = vunpack.c.l.bf16 %v1432_v33 }
 0x312   :  { %v1588_v37 = vpack.c.b16 %v1579_v35, %v1578_v34 }
 0x313   :  { %v1480_v39 = vmul.f32 0.20019531, %v1448_v36  ;;  %vm1464_vm14 = vcmp.gt.f32.partialorder %v1448_v36, 0.0 }
 0x314   :  { %v1415_v38 = vpop.f32.mrf.mxu0  ;;  %1684 = vmatmul.bf16.gmra.mxu1 %v1588_v37  ;;  %vm1512_vm0 = vmpackc.low %vm1464_vm14, %vm1464_vm14 }
 0x315   :  { %v1416_v40 = vadd.f32 %v3620_v62, %v1415_v38  ;;  %v1496_v42 = vpack.c.bf16 %v1480_v39, %v1480_v39  ;;  %v2758_v62 = vld [vmem:[#allocation14 + $0x8] sm:$0xf0] }
 0x316   :  { %v2761_v54 = vor.u32 %v2882_v52, %v2758_v62 }
 0x317   :  { %v1433_v41 = vpack.c.bf16 %v1416_v40, %v1416_v40  ;;  %v1528_v44 = vsel %vm1512_vm0, %v1432_v33, %v1496_v42 }
 0x318   :  { %v1580_v48 = vunpack.c.l.b16 %v1528_v44  ;;  %2013 = vmatpush.bf16.msrb.mxu3 %v2761_v54 }
 0x319   :  { %v1449_v43 = vunpack.c.l.bf16 %v1433_v41 }
 0x31b   :  { %vm1465_vm15 = vcmp.gt.f32.partialorder %v1449_v43, 0.0  ;;  %v1481_v58 = vmul.f32 0.20019531, %v1449_v43 }
 0x31c   :  { %vm1513_vm1 = vmpackc.low %vm1465_vm15, %vm1465_vm15 }
 0x31d   :  { %v1497_v46 = vpack.c.bf16 %v1481_v58, %v1481_v58 }
 0x31f   :  { %v1529_v47 = vsel %vm1513_vm1, %v1433_v41, %v1497_v46 }
 0x320   :  { %v1581_v49 = vunpack.c.l.b16 %v1529_v47 }
 0x322   :  { %v1589_v50 = vpack.c.b16 %v1581_v49, %v1580_v48 }
 0x324   :  { %1689 = vmatmul.bf16.gmra.mxu1 %v1589_v50 }
 0x331   :  { %v1655_v56 = vpop.f32.mrf.mxu1 }
 0x332   :  { %v1656_v57 = vadd.f32 %v3641_v55, %v1655_v56 }
 0x334   :  { %v1695_v59 = vpack.c.bf16 %v1656_v57, %v1656_v57 }
 0x336   :  { %v1711_v60 = vunpack.c.l.bf16 %v1695_v59 }
 0x338   :  { %v1743_v63 = vmul.f32 0.20019531, %v1711_v60  ;;  %vm1727_vm2 = vcmp.gt.f32.partialorder %v1711_v60, 0.0 }
 0x339   :  { %v1657_v61 = vpop.f32.mrf.mxu1  ;;  %vm1775_vm4 = vmpackc.low %vm1727_vm2, %vm1727_vm2 }
 0x33a   :  { %v1658_v0 = vadd.f32 %v3641_v55, %v1657_v61  ;;  %v1759_v2 = vpack.c.bf16 %v1743_v63, %v1743_v63 }
 0x33c   :  { %v1696_v1 = vpack.c.bf16 %v1658_v0, %v1658_v0  ;;  %v1791_v5 = vsel %vm1775_vm4, %v1695_v59, %v1759_v2 }
 0x33d   :  { %v1845_v11 = vunpack.c.l.b16 %v1791_v5 }
 0x33e   :  { %v1712_v3 = vunpack.c.l.bf16 %v1696_v1 }
 0x340   :  { %vm1728_vm3 = vcmp.gt.f32.partialorder %v1712_v3, 0.0  ;;  %v1744_v4 = vmul.f32 0.20019531, %v1712_v3 }
 0x341   :  { %v1660_v45 = vpop.f32.mrf.mxu1  ;;  %vm1776_vm5 = vmpackc.low %vm1728_vm3, %vm1728_vm3 }
 0x342   :  { %v1760_v6 = vpack.c.bf16 %v1744_v4, %v1744_v4  ;;  %v1661_v7 = vadd.f32 %v3641_v55, %v1660_v45 }
 0x344   :  { %v1792_v9 = vsel %vm1776_vm5, %v1696_v1, %v1760_v6  ;;  %v1697_v10 = vpack.c.bf16 %v1661_v7, %v1661_v7 }
 0x345   :  { %v1846_v12 = vunpack.c.l.b16 %v1792_v9 }
 0x346   :  { %v1713_v13 = vunpack.c.l.bf16 %v1697_v10 }
 0x347   :  { %v1861_v14 = vpack.c.b16 %v1846_v12, %v1845_v11 }
 0x348   :  { %v1745_v16 = vmul.f32 0.20019531, %v1713_v13  ;;  %vm1729_vm6 = vcmp.gt.f32.partialorder %v1713_v13, 0.0 }
 0x349   :  { %v1662_v15 = vpop.f32.mrf.mxu1  ;;  %1965 = vmatmul.bf16.vlgmr.msrb.gmra.mxu2 %v1861_v14  ;;  %2014 = vmatmul.bf16.vlgmr.msrb.gmra.mxu3 %v1861_v14  ;;  %vm1777_vm8 = vmpackc.low %vm1729_vm6, %vm1729_vm6 }
 0x34a   :  { %v1663_v17 = vadd.f32 %v3641_v55, %v1662_v15  ;;  %v1761_v19 = vpack.c.bf16 %v1745_v16, %v1745_v16 }
 0x34c   :  { %v1698_v18 = vpack.c.bf16 %v1663_v17, %v1663_v17  ;;  %v1793_v25 = vsel %vm1777_vm8, %v1697_v10, %v1761_v19 }
 0x34d   :  { %v1847_v28 = vunpack.c.l.b16 %v1793_v25 }
 0x34e   :  { %v1714_v20 = vunpack.c.l.bf16 %v1698_v18 }
 0x350   :  { %vm1730_vm7 = vcmp.gt.f32.partialorder %v1714_v20, 0.0  ;;  %v1746_v21 = vmul.f32 0.20019531, %v1714_v20 }
 0x351   :  { %v1665_v22 = vpop.f32.mrf.mxu1  ;;  %vm1778_vm9 = vmpackc.low %vm1730_vm7, %vm1730_vm7 }
 0x352   :  { %v1762_v23 = vpack.c.bf16 %v1746_v21, %v1746_v21  ;;  %v1666_v24 = vadd.f32 %v3641_v55, %v1665_v22 }
 0x354   :  { %v1699_v26 = vpack.c.bf16 %v1666_v24, %v1666_v24  ;;  %v1794_v27 = vsel %vm1778_vm9, %v1698_v18, %v1762_v23 }
 0x355   :  { %v1848_v29 = vunpack.c.l.b16 %v1794_v27 }
 0x356   :  { %v1715_v30 = vunpack.c.l.bf16 %v1699_v26 }
 0x357   :  { %v1862_v31 = vpack.c.b16 %v1848_v29, %v1847_v28 }
 0x358   :  { %v1747_v33 = vmul.f32 0.20019531, %v1715_v30  ;;  %vm1731_vm10 = vcmp.gt.f32.partialorder %v1715_v30, 0.0 }
 0x359   :  { %v1667_v32 = vpop.f32.mrf.mxu1  ;;  %1970 = vmatmul.bf16.gmra.mxu2 %v1862_v31  ;;  %2019 = vmatmul.bf16.gmra.mxu3 %v1862_v31  ;;  %vm1779_vm12 = vmpackc.low %vm1731_vm10, %vm1731_vm10 }
 0x35a   :  { %v1668_v34 = vadd.f32 %v3641_v55, %v1667_v32  ;;  %v1763_v36 = vpack.c.bf16 %v1747_v33, %v1747_v33 }
 0x35c   :  { %v1700_v35 = vpack.c.bf16 %v1668_v34, %v1668_v34  ;;  %v1795_v42 = vsel %vm1779_vm12, %v1699_v26, %v1763_v36 }
 0x35d   :  { %v1849_v44 = vunpack.c.l.b16 %v1795_v42 }
 0x35e   :  { %v1716_v37 = vunpack.c.l.bf16 %v1700_v35 }
 0x360   :  { %vm1732_vm11 = vcmp.gt.f32.partialorder %v1716_v37, 0.0  ;;  %v1748_v38 = vmul.f32 0.20019531, %v1716_v37 }
 0x361   :  { %v1670_v39 = vpop.f32.mrf.mxu1  ;;  %vm1780_vm13 = vmpackc.low %vm1732_vm11, %vm1732_vm11 }
 0x362   :  { %v1764_v40 = vpack.c.bf16 %v1748_v38, %v1748_v38  ;;  %v1671_v41 = vadd.f32 %v3641_v55, %v1670_v39 }
 0x364   :  { %v1701_v43 = vpack.c.bf16 %v1671_v41, %v1671_v41  ;;  %v1796_v58 = vsel %vm1780_vm13, %v1700_v35, %v1764_v40 }
 0x365   :  { %v1850_v46 = vunpack.c.l.b16 %v1796_v58 }
 0x366   :  { %v1717_v47 = vunpack.c.l.bf16 %v1701_v43 }
 0x367   :  { %v1863_v48 = vpack.c.b16 %v1850_v46, %v1849_v44 }
 0x368   :  { %v1749_v50 = vmul.f32 0.20019531, %v1717_v47  ;;  %vm1733_vm14 = vcmp.gt.f32.partialorder %v1717_v47, 0.0 }
 0x369   :  { %v1672_v49 = vpop.f32.mrf.mxu1  ;;  %1975 = vmatmul.bf16.gmra.mxu2 %v1863_v48  ;;  %2024 = vmatmul.bf16.gmra.mxu3 %v1863_v48  ;;  %vm1781_vm0 = vmpackc.low %vm1733_vm14, %vm1733_vm14 }
 0x36a   :  { %v1673_v51 = vadd.f32 %v3641_v55, %v1672_v49  ;;  %v1765_v52 = vpack.c.bf16 %v1749_v50, %v1749_v50 }
 0x36c   :  { %v1702_v8 = vpack.c.bf16 %v1673_v51, %v1673_v51  ;;  %v1797_v59 = vsel %vm1781_vm0, %v1701_v43, %v1765_v52 }
 0x36d   :  { %v1851_v63 = vunpack.c.l.b16 %v1797_v59 }
 0x36e   :  { %v1718_v53 = vunpack.c.l.bf16 %v1702_v8 }
 0x370   :  { %vm1734_vm15 = vcmp.gt.f32.partialorder %v1718_v53, 0.0  ;;  %v1750_v62 = vmul.f32 0.20019531, %v1718_v53 }
 0x371   :  { %v1675_v54 = vpop.f32.mrf.mxu1  ;;  %vm1782_vm1 = vmpackc.low %vm1734_vm15, %vm1734_vm15 }
 0x372   :  { %v1766_v56 = vpack.c.bf16 %v1750_v62, %v1750_v62  ;;  %v1676_v57 = vadd.f32 %v3641_v55, %v1675_v54 }
 0x374   :  { %v1703_v60 = vpack.c.bf16 %v1676_v57, %v1676_v57  ;;  %v1798_v61 = vsel %vm1782_vm1, %v1702_v8, %v1766_v56 }
 0x375   :  { %v1852_v0 = vunpack.c.l.b16 %v1798_v61 }
 0x376   :  { %v1719_v1 = vunpack.c.l.bf16 %v1703_v60 }
 0x377   :  { %v1864_v2 = vpack.c.b16 %v1852_v0, %v1851_v63 }
 0x378   :  { %v1751_v4 = vmul.f32 0.20019531, %v1719_v1  ;;  %vm1735_vm2 = vcmp.gt.f32.partialorder %v1719_v1, 0.0 }
 0x379   :  { %v1677_v3 = vpop.f32.mrf.mxu1  ;;  %1980 = vmatmul.bf16.gmra.mxu2 %v1864_v2  ;;  %2029 = vmatmul.bf16.gmra.mxu3 %v1864_v2  ;;  %vm1783_vm4 = vmpackc.low %vm1735_vm2, %vm1735_vm2 }
 0x37a   :  { %v1678_v45 = vadd.f32 %v3641_v55, %v1677_v3  ;;  %v1767_v6 = vpack.c.bf16 %v1751_v4, %v1751_v4 }
 0x37c   :  { %v1704_v5 = vpack.c.bf16 %v1678_v45, %v1678_v45  ;;  %v1799_v11 = vsel %vm1783_vm4, %v1703_v60, %v1767_v6 }
 0x37d   :  { %v1853_v16 = vunpack.c.l.b16 %v1799_v11 }
 0x37e   :  { %v1720_v7 = vunpack.c.l.bf16 %v1704_v5 }
 0x380   :  { %vm1736_vm3 = vcmp.gt.f32.partialorder %v1720_v7, 0.0  ;;  %v1752_v9 = vmul.f32 0.20019531, %v1720_v7 }
 0x381   :  { %v1680_v10 = vpop.f32.mrf.mxu1  ;;  %vm1784_vm5 = vmpackc.low %vm1736_vm3, %vm1736_vm3 }
 0x382   :  { %v1768_v12 = vpack.c.bf16 %v1752_v9, %v1752_v9  ;;  %v1681_v13 = vadd.f32 %v3641_v55, %v1680_v10 }
 0x384   :  { %v1800_v14 = vsel %vm1784_vm5, %v1704_v5, %v1768_v12  ;;  %v1705_v15 = vpack.c.bf16 %v1681_v13, %v1681_v13 }
 0x385   :  { %v1854_v17 = vunpack.c.l.b16 %v1800_v14 }
 0x386   :  { %v1721_v18 = vunpack.c.l.bf16 %v1705_v15 }
 0x387   :  { %v1865_v19 = vpack.c.b16 %v1854_v17, %v1853_v16 }
 0x388   :  { %v1753_v21 = vmul.f32 0.20019531, %v1721_v18  ;;  %vm1737_vm6 = vcmp.gt.f32.partialorder %v1721_v18, 0.0 }
 0x389   :  { %v1682_v20 = vpop.f32.mrf.mxu1  ;;  %1985 = vmatmul.bf16.gmra.mxu2 %v1865_v19  ;;  %2034 = vmatmul.bf16.gmra.mxu3 %v1865_v19  ;;  %vm1785_vm8 = vmpackc.low %vm1737_vm6, %vm1737_vm6 }
 0x38a   :  { %v1683_v22 = vadd.f32 %v3641_v55, %v1682_v20  ;;  %v1769_v24 = vpack.c.bf16 %v1753_v21, %v1753_v21 }
 0x38c   :  { %v1706_v23 = vpack.c.bf16 %v1683_v22, %v1683_v22  ;;  %v1801_v28 = vsel %vm1785_vm8, %v1705_v15, %v1769_v24 }
 0x38d   :  { %v1855_v33 = vunpack.c.l.b16 %v1801_v28 }
 0x38e   :  { %v1722_v25 = vunpack.c.l.bf16 %v1706_v23 }
 0x390   :  { %vm1738_vm7 = vcmp.gt.f32.partialorder %v1722_v25, 0.0  ;;  %v1754_v26 = vmul.f32 0.20019531, %v1722_v25 }
 0x391   :  { %v1685_v27 = vpop.f32.mrf.mxu1  ;;  %vm1786_vm9 = vmpackc.low %vm1738_vm7, %vm1738_vm7 }
 0x392   :  { %v1770_v29 = vpack.c.bf16 %v1754_v26, %v1754_v26  ;;  %v1686_v30 = vadd.f32 %v3641_v55, %v1685_v27 }
 0x394   :  { %v1802_v31 = vsel %vm1786_vm9, %v1706_v23, %v1770_v29  ;;  %v1707_v32 = vpack.c.bf16 %v1686_v30, %v1686_v30 }
 0x395   :  { %v1856_v34 = vunpack.c.l.b16 %v1802_v31 }
 0x396   :  { %v1723_v35 = vunpack.c.l.bf16 %v1707_v32 }
 0x397   :  { %v1866_v36 = vpack.c.b16 %v1856_v34, %v1855_v33 }
 0x398   :  { %v1755_v38 = vmul.f32 0.20019531, %v1723_v35  ;;  %vm1739_vm10 = vcmp.gt.f32.partialorder %v1723_v35, 0.0 }
 0x399   :  { %v1687_v37 = vpop.f32.mrf.mxu1  ;;  %1990 = vmatmul.bf16.gmra.mxu2 %v1866_v36  ;;  %2039 = vmatmul.bf16.gmra.mxu3 %v1866_v36  ;;  %vm1787_vm12 = vmpackc.low %vm1739_vm10, %vm1739_vm10 }
 0x39a   :  { %v1688_v39 = vadd.f32 %v3641_v55, %v1687_v37  ;;  %v1771_v41 = vpack.c.bf16 %v1755_v38, %v1755_v38 }
 0x39c   :  { %v1708_v40 = vpack.c.bf16 %v1688_v39, %v1688_v39  ;;  %v1803_v44 = vsel %vm1787_vm12, %v1707_v32, %v1771_v41 }
 0x39d   :  { %v1857_v50 = vunpack.c.l.b16 %v1803_v44 }
 0x39e   :  { %v1724_v42 = vunpack.c.l.bf16 %v1708_v40 }
 0x3a0   :  { %vm1740_vm11 = vcmp.gt.f32.partialorder %v1724_v42, 0.0  ;;  %v1756_v43 = vmul.f32 0.20019531, %v1724_v42 }
 0x3a1   :  { %v1690_v58 = vpop.f32.mrf.mxu1  ;;  %vm1788_vm13 = vmpackc.low %vm1740_vm11, %vm1740_vm11 }
 0x3a2   :  { %v1772_v46 = vpack.c.bf16 %v1756_v43, %v1756_v43  ;;  %v1691_v47 = vadd.f32 %v3641_v55, %v1690_v58 }
 0x3a4   :  { %v1804_v48 = vsel %vm1788_vm13, %v1708_v40, %v1772_v46  ;;  %v1709_v49 = vpack.c.bf16 %v1691_v47, %v1691_v47 }
 0x3a5   :  { %v1858_v51 = vunpack.c.l.b16 %v1804_v48 }
 0x3a6   :  { %v1725_v8 = vunpack.c.l.bf16 %v1709_v49 }
 0x3a7   :  { %v1867_v52 = vpack.c.b16 %v1858_v51, %v1857_v50 }
 0x3a8   :  { %v1757_v62 = vmul.f32 0.20019531, %v1725_v8  ;;  %vm1741_vm14 = vcmp.gt.f32.partialorder %v1725_v8, 0.0 }
 0x3a9   :  { %v1692_v53 = vpop.f32.mrf.mxu1  ;;  %1995 = vmatmul.bf16.gmra.mxu2 %v1867_v52  ;;  %2044 = vmatmul.bf16.gmra.mxu3 %v1867_v52  ;;  %vm1789_vm0 = vmpackc.low %vm1741_vm14, %vm1741_vm14 }
 0x3aa   :  { %v1693_v54 = vadd.f32 %v3641_v55, %v1692_v53  ;;  %v1773_v57 = vpack.c.bf16 %v1757_v62, %v1757_v62  ;;  %v1823_v55 = vld [vmem:[%s3756_s13] sm:$0x3]  ;;  %s3386_s13 = smov [#allocation17]  }
 0x3ab   :  { %v3662_v4 = vperm.slane %v1823_v55, 0  ;;  %v3664_v45 = vperm.slane %v1823_v55, 1  ;;  %s2474_s1 = sshll.u32 %s3386_s13, 4  ;;  %s2475_s1 = int_to_ptr.vmem [resolvable:$true] %s2474_s1 }
 0x3ac   :  { %v1710_v56 = vpack.c.bf16 %v1693_v54, %v1693_v54  ;;  %v1805_v61 = vsel %vm1789_vm0, %v1709_v49, %v1773_v57  ;;  %2482 = dma.vmem_to_hbm [thread:$0]  %s2475_s1, 2048, %s2477_s17, [#allocation18], %s3379_s22, %s3379_s22, %s3380_s23  }
 0x3ad   :  { %v1859_v1 = vunpack.c.l.b16 %v1805_v61  ;;  %s2461_s22 = sshll.u32 %s3387_s15, 4  ;;  %s2462_s22 = int_to_ptr.vmem [resolvable:$true] %s2461_s22 }
 0x3ae   :  { %v1726_v59 = vunpack.c.l.bf16 %v1710_v56 }
 0x3b0   :  { %vm1742_vm15 = vcmp.gt.f32.partialorder %v1726_v59, 0.0  ;;  %v1758_v60 = vmul.f32 0.20019531, %v1726_v59  ;;  %v3385_v59 = vmov 1065369472  }
 0x3b1   :  { %vm1790_vm1 = vmpackc.low %vm1742_vm15, %vm1742_vm15 }
 0x3b2   :  { %v1774_v63 = vpack.c.bf16 %v1758_v60, %v1758_v60  ;;  %v3674_v60 = vunpack.c.h.bf16 %v3385_v59 }
 0x3b4   :  { %v1806_v0 = vsel %vm1790_vm1, %v1710_v56, %v1774_v63 }
 0x3b5   :  { %v1860_v2 = vunpack.c.l.b16 %v1806_v0 }
 0x3b7   :  { %v1868_v3 = vpack.c.b16 %v1860_v2, %v1859_v1 }
 0x3b9   :  { %2000 = vmatmul.bf16.gmra.mxu2 %v1868_v3  ;;  %2049 = vmatmul.bf16.gmra.mxu3 %v1868_v3  ;;  %v3676_v3 = vunpack.c.l.bf16 %v3385_v59 }
 0x3cc   :  { %v1966_v5 = vpop.f32.mrf.mxu2  ;;  %v2015_v6 = vpop.f32.mrf.mxu3 }
 0x3cd   :  { %v1967_v7 = vadd.f32 %v1966_v5, %v3662_v4  ;;  %v2016_v9 = vadd.f32 %v2015_v6, %v3664_v45 }
 0x3cf   :  { %v2055_v10 = vpack.c.bf16 %v2016_v9, %v1967_v7 }
 0x3d1   :  { %v2071_v11 = vxor.u32 2147516416, %v2055_v10 }
 0x3d3   :  { %v2087_v12 = vunpack.c.l.bf16 %v2071_v11  ;;  %v2088_v13 = vunpack.c.h.bf16 %v2071_v11 }
 0x3d4   :  { %v1968_v14 = vpop.f32.mrf.mxu2  ;;  %v2017_v15 = vpop.f32.mrf.mxu3 }
 0x3d5   :  { %v2119_v16 = vmul.f32 1.442695, %v2087_v12  ;;  %v2121_v17 = vmul.f32 1.442695, %v2088_v13  ;;  %v1969_v18 = vadd.f32 %v1968_v14, %v3662_v4  ;;  %v2018_v19 = vadd.f32 %v2017_v15, %v3664_v45 }
 0x3d7   :  { %2991 = vpow2.f32 %v2119_v16  ;;  %v2056_v20 = vpack.c.bf16 %v2018_v19, %v1969_v18 }
 0x3d8   :  { %2993 = vpow2.f32 %v2121_v17 }
 0x3d9   :  { %v2072_v21 = vxor.u32 2147516416, %v2056_v20 }
 0x3db   :  { %v2089_v22 = vunpack.c.l.bf16 %v2072_v21  ;;  %v2090_v23 = vunpack.c.h.bf16 %v2072_v21 }
 0x3dc   :  { %v1971_v24 = vpop.f32.mrf.mxu2  ;;  %v2020_v25 = vpop.f32.mrf.mxu3 }
 0x3dd   :  { %v2992_v26 = vpop.eup %2991  ;;  %v2123_v27 = vmul.f32 1.442695, %v2089_v22  ;;  %v2125_v28 = vmul.f32 1.442695, %v2090_v23  ;;  %v1972_v29 = vadd.f32 %v1971_v24, %v3662_v4  ;;  %v2021_v30 = vadd.f32 %v2020_v25, %v3664_v45 }
 0x3de   :  { %v2994_v31 = vpop.eup %2993 }
 0x3df   :  { %v2183_v32 = vpack.c.bf16 %v2994_v31, %v2992_v26  ;;  %2995 = vpow2.f32 %v2123_v27  ;;  %v2057_v33 = vpack.c.bf16 %v2021_v30, %v1972_v29 }
 0x3e0   :  { %2997 = vpow2.f32 %v2125_v28 }
 0x3e1   :  { %v2199_v34 = vunpack.c.l.bf16 %v2183_v32  ;;  %v2200_v35 = vunpack.c.h.bf16 %v2183_v32  ;;  %v2073_v36 = vxor.u32 2147516416, %v2057_v33 }
 0x3e3   :  { %v2231_v37 = vadd.f32 1.0, %v2199_v34  ;;  %v2232_v38 = vadd.f32 1.0, %v2200_v35  ;;  %v2091_v39 = vunpack.c.l.bf16 %v2073_v36  ;;  %v2092_v40 = vunpack.c.h.bf16 %v2073_v36 }
 0x3e4   :  { %v1973_v41 = vpop.f32.mrf.mxu2  ;;  %v2022_v42 = vpop.f32.mrf.mxu3 }
 0x3e5   :  { %v2996_v43 = vpop.eup %2995  ;;  %v2263_v58 = vpack.c.bf16 %v2232_v38, %v2231_v37  ;;  %v2127_v44 = vmul.f32 1.442695, %v2091_v39  ;;  %v2129_v46 = vmul.f32 1.442695, %v2092_v40  ;;  %v1974_v47 = vadd.f32 %v1973_v41, %v3662_v4 }
 0x3e6   :  { %v2998_v48 = vpop.eup %2997  ;;  %v2023_v49 = vadd.f32 %v2022_v42, %v3664_v45 }
 0x3e7   :  { %v2281_v50 = vunpack.c.h.bf16 %v2263_v58  ;;  %v2282_v51 = vunpack.c.l.bf16 %v2263_v58  ;;  %v2184_v8 = vpack.c.bf16 %v2998_v48, %v2996_v43  ;;  %2999 = vpow2.f32 %v2127_v44 }
 0x3e8   :  { %3001 = vpow2.f32 %v2129_v46  ;;  %v2058_v52 = vpack.c.bf16 %v2023_v49, %v1974_v47 }
 0x3e9   :  { %3003 = vrcp.f32 %v2281_v50  ;;  %v2201_v53 = vunpack.c.l.bf16 %v2184_v8  ;;  %v2202_v62 = vunpack.c.h.bf16 %v2184_v8 }
 0x3ea   :  { %3005 = vrcp.f32 %v2282_v51  ;;  %v2074_v54 = vxor.u32 2147516416, %v2058_v52 }
 0x3eb   :  { %v2233_v56 = vadd.f32 1.0, %v2201_v53  ;;  %v2234_v57 = vadd.f32 1.0, %v2202_v62 }
 0x3ec   :  { %v2093_v61 = vunpack.c.l.bf16 %v2074_v54  ;;  %v2094_v63 = vunpack.c.h.bf16 %v2074_v54  ;;  %v1976_v0 = vpop.f32.mrf.mxu2  ;;  %v2025_v1 = vpop.f32.mrf.mxu3 }
 0x3ed   :  { %v3000_v2 = vpop.eup %2999  ;;  %v2264_v55 = vpack.c.bf16 %v2234_v57, %v2233_v56  ;;  %v1977_v5 = vadd.f32 %v1976_v0, %v3662_v4  ;;  %v2026_v6 = vadd.f32 %v2025_v1, %v3664_v45 }
 0x3ee   :  { %v3002_v7 = vpop.eup %3001  ;;  %v2131_v9 = vmul.f32 1.442695, %v2093_v61  ;;  %v2133_v10 = vmul.f32 1.442695, %v2094_v63 }
 0x3ef   :  { %v3004_v11 = vpop.eup %3003  ;;  %v2288_v12 = vunpack.c.h.bf16 %v2264_v55  ;;  %v2289_v13 = vunpack.c.l.bf16 %v2264_v55  ;;  %v2185_v14 = vpack.c.bf16 %v3002_v7, %v3000_v2  ;;  %v2059_v15 = vpack.c.bf16 %v2026_v6, %v1977_v5 }
 0x3f0   :  { %v3006_v16 = vpop.eup %3005  ;;  %v2284_v17 = vmul.f32 %v3004_v11, %v3674_v60  ;;  %3007 = vpow2.f32 %v2131_v9 }
 0x3f1   :  { %v2286_v18 = vmul.f32 %v3006_v16, %v3676_v3  ;;  %3009 = vrcp.f32 %v2288_v12  ;;  %v2203_v19 = vunpack.c.l.bf16 %v2185_v14  ;;  %v2204_v20 = vunpack.c.h.bf16 %v2185_v14 }
 0x3f2   :  { %3011 = vrcp.f32 %v2289_v13  ;;  %v2075_v21 = vxor.u32 2147516416, %v2059_v15 }
 0x3f3   :  { %v2287_v22 = vpack.c.bf16 %v2284_v17, %v2286_v18  ;;  %v2235_v23 = vadd.f32 1.0, %v2203_v19  ;;  %v2236_v24 = vadd.f32 1.0, %v2204_v20  ;;  %3013 = vpow2.f32 %v2133_v10 }
 0x3f4   :  { %v2095_v25 = vunpack.c.l.bf16 %v2075_v21  ;;  %v2096_v26 = vunpack.c.h.bf16 %v2075_v21  ;;  %v1978_v27 = vpop.f32.mrf.mxu2  ;;  %v2027_v28 = vpop.f32.mrf.mxu3 }
 0x3f5   :  { %v2393_v29 = vunpack.c.l.bf16 %v2287_v22  ;;  %v2394_v30 = vunpack.c.h.bf16 %v2287_v22  ;;  %v2265_v31 = vpack.c.bf16 %v2236_v24, %v2235_v23  ;;  %v1979_v32 = vadd.f32 %v1978_v27, %v3662_v4 }
 0x3f6   :  { %v3008_v33 = vpop.eup %3007  ;;  %v2135_v34 = vmul.f32 1.442695, %v2095_v25  ;;  %v2028_v35 = vadd.f32 %v2027_v28, %v3664_v45  ;;  %v2137_v39 = vmul.f32 1.442695, %v2096_v26 }
 0x3f7   :  { %v3010_v36 = vpop.eup %3009  ;;  %2425 = vst [vmem:[#allocation16] sm:$0xff] %v2393_v29  ;;  %v2295_v37 = vunpack.c.h.bf16 %v2265_v31  ;;  %v2296_v38 = vunpack.c.l.bf16 %v2265_v31 }
 0x3f8   :  { %v3012_v40 = vpop.eup %3011  ;;  %2426 = vst [vmem:[#allocation16 + $0x8] sm:$0xff] %v2394_v30  ;;  %v2291_v41 = vmul.f32 %v3010_v36, %v3674_v60  ;;  %3015 = vpow2.f32 %v2135_v34  ;;  %v2060_v42 = vpack.c.bf16 %v2028_v35, %v1979_v32 }
 0x3f9   :  { %v3014_v43 = vpop.eup %3013  ;;  %v2293_v58 = vmul.f32 %v3012_v40, %v3676_v3  ;;  %3017 = vrcp.f32 %v2295_v37 }
 0x3fa   :  { %3019 = vrcp.f32 %v2296_v38  ;;  %v2186_v44 = vpack.c.bf16 %v3014_v43, %v3008_v33  ;;  %v2076_v46 = vxor.u32 2147516416, %v2060_v42 }
 0x3fb   :  { %v2294_v47 = vpack.c.bf16 %v2291_v41, %v2293_v58  ;;  %3021 = vpow2.f32 %v2137_v39 }
 0x3fc   :  { %v2205_v48 = vunpack.c.l.bf16 %v2186_v44  ;;  %v2206_v49 = vunpack.c.h.bf16 %v2186_v44  ;;  %v2097_v50 = vunpack.c.l.bf16 %v2076_v46  ;;  %v2098_v51 = vunpack.c.h.bf16 %v2076_v46  ;;  %v1981_v8 = vpop.f32.mrf.mxu2  ;;  %v2030_v52 = vpop.f32.mrf.mxu3 }
 0x3fd   :  { %v2395_v53 = vunpack.c.l.bf16 %v2294_v47  ;;  %v2396_v62 = vunpack.c.h.bf16 %v2294_v47  ;;  %v1982_v54 = vadd.f32 %v1981_v8, %v3662_v4  ;;  %v2031_v56 = vadd.f32 %v2030_v52, %v3664_v45 }
 0x3fe   :  { %v3016_v57 = vpop.eup %3015  ;;  %v2237_v59 = vadd.f32 1.0, %v2205_v48  ;;  %v2238_v61 = vadd.f32 1.0, %v2206_v49  ;;  %v2139_v63 = vmul.f32 1.442695, %v2097_v50  ;;  %v2141_v0 = vmul.f32 1.442695, %v2098_v51 }
 0x3ff   :  { %v3018_v1 = vpop.eup %3017  ;;  %2427 = vst [vmem:[#allocation16 + $0x10] sm:$0xff] %v2395_v53  ;;  %v2061_v2 = vpack.c.bf16 %v2031_v56, %v1982_v54 }
 0x400   :  { %v3020_v55 = vpop.eup %3019  ;;  %2428 = vst [vmem:[#allocation16 + $0x18] sm:$0xff] %v2396_v62  ;;  %v2298_v5 = vmul.f32 %v3018_v1, %v3674_v60  ;;  %v2266_v6 = vpack.c.bf16 %v2238_v61, %v2237_v59  ;;  %3023 = vpow2.f32 %v2139_v63 }
 0x401   :  { %v3022_v7 = vpop.eup %3021  ;;  %v2300_v9 = vmul.f32 %v3020_v55, %v3676_v3  ;;  %3025 = vpow2.f32 %v2141_v0  ;;  %v2077_v10 = vxor.u32 2147516416, %v2061_v2 }
 0x402   :  { %v2302_v11 = vunpack.c.h.bf16 %v2266_v6  ;;  %v2303_v12 = vunpack.c.l.bf16 %v2266_v6  ;;  %v2187_v13 = vpack.c.bf16 %v3022_v7, %v3016_v57 }
 0x403   :  { %v2301_v14 = vpack.c.bf16 %v2298_v5, %v2300_v9  ;;  %v2099_v15 = vunpack.c.l.bf16 %v2077_v10  ;;  %v2100_v16 = vunpack.c.h.bf16 %v2077_v10 }
 0x404   :  { %3027 = vrcp.f32 %v2302_v11  ;;  %v2207_v17 = vunpack.c.l.bf16 %v2187_v13  ;;  %v2208_v18 = vunpack.c.h.bf16 %v2187_v13  ;;  %v1983_v19 = vpop.f32.mrf.mxu2  ;;  %v2032_v20 = vpop.f32.mrf.mxu3 }
 0x405   :  { %v2397_v21 = vunpack.c.l.bf16 %v2301_v14  ;;  %v2398_v22 = vunpack.c.h.bf16 %v2301_v14  ;;  %3029 = vrcp.f32 %v2303_v12  ;;  %v2143_v23 = vmul.f32 1.442695, %v2099_v15 }
 0x406   :  { %v3024_v24 = vpop.eup %3023  ;;  %v2239_v25 = vadd.f32 1.0, %v2207_v17  ;;  %v2240_v26 = vadd.f32 1.0, %v2208_v18  ;;  %v2145_v27 = vmul.f32 1.442695, %v2100_v16  ;;  %v1984_v28 = vadd.f32 %v1983_v19, %v3662_v4 }
 0x407   :  { %v3026_v29 = vpop.eup %3025  ;;  %2429 = vst [vmem:[#allocation16 + $0x20] sm:$0xff] %v2397_v21  ;;  %3031 = vpow2.f32 %v2143_v23  ;;  %v2033_v30 = vadd.f32 %v2032_v20, %v3664_v45 }
 0x408   :  { %2430 = vst [vmem:[#allocation16 + $0x28] sm:$0xff] %v2398_v22  ;;  %v2267_v31 = vpack.c.bf16 %v2240_v26, %v2239_v25  ;;  %v2188_v32 = vpack.c.bf16 %v3026_v29, %v3024_v24  ;;  %3033 = vpow2.f32 %v2145_v27 }
 0x409   :  { %v2062_v33 = vpack.c.bf16 %v2033_v30, %v1984_v28 }
 0x40a   :  { %v3028_v34 = vpop.eup %3027  ;;  %v2309_v35 = vunpack.c.h.bf16 %v2267_v31  ;;  %v2310_v36 = vunpack.c.l.bf16 %v2267_v31  ;;  %v2209_v37 = vunpack.c.l.bf16 %v2188_v32  ;;  %v2210_v38 = vunpack.c.h.bf16 %v2188_v32 }
 0x40b   :  { %v3030_v39 = vpop.eup %3029  ;;  %v2305_v40 = vmul.f32 %v3028_v34, %v3674_v60  ;;  %v2078_v41 = vxor.u32 2147516416, %v2062_v33 }
 0x40c   :  { %v2307_v42 = vmul.f32 %v3030_v39, %v3676_v3  ;;  %3035 = vrcp.f32 %v2309_v35  ;;  %v2241_v43 = vadd.f32 1.0, %v2209_v37  ;;  %v2242_v58 = vadd.f32 1.0, %v2210_v38  ;;  %v1986_v44 = vpop.f32.mrf.mxu2  ;;  %v2035_v46 = vpop.f32.mrf.mxu3 }
 0x40d   :  { %v3032_v47 = vpop.eup %3031  ;;  %3037 = vrcp.f32 %v2310_v36  ;;  %v2101_v48 = vunpack.c.l.bf16 %v2078_v41  ;;  %v2102_v49 = vunpack.c.h.bf16 %v2078_v41  ;;  %v1987_v50 = vadd.f32 %v1986_v44, %v3662_v4 }
 0x40e   :  { %v3034_v51 = vpop.eup %3033  ;;  %v2308_v8 = vpack.c.bf16 %v2305_v40, %v2307_v42  ;;  %v2268_v52 = vpack.c.bf16 %v2242_v58, %v2241_v43  ;;  %v2036_v53 = vadd.f32 %v2035_v46, %v3664_v45 }
 0x40f   :  { %v2189_v62 = vpack.c.bf16 %v3034_v51, %v3032_v47  ;;  %v2147_v54 = vmul.f32 1.442695, %v2101_v48  ;;  %v2149_v56 = vmul.f32 1.442695, %v2102_v49 }
 0x410   :  { %v2399_v57 = vunpack.c.l.bf16 %v2308_v8  ;;  %v2400_v59 = vunpack.c.h.bf16 %v2308_v8  ;;  %v2316_v61 = vunpack.c.h.bf16 %v2268_v52  ;;  %v2317_v63 = vunpack.c.l.bf16 %v2268_v52 }
 0x411   :  { %v2211_v0 = vunpack.c.l.bf16 %v2189_v62  ;;  %v2212_v1 = vunpack.c.h.bf16 %v2189_v62  ;;  %3039 = vpow2.f32 %v2147_v54  ;;  %v2063_v2 = vpack.c.bf16 %v2036_v53, %v1987_v50 }
 0x412   :  { %v3036_v55 = vpop.eup %3035  ;;  %2431 = vst [vmem:[#allocation16 + $0x30] sm:$0xff] %v2399_v57  ;;  %3041 = vrcp.f32 %v2316_v61 }
 0x413   :  { %v3038_v5 = vpop.eup %3037  ;;  %2432 = vst [vmem:[#allocation16 + $0x38] sm:$0xff] %v2400_v59  ;;  %v2312_v6 = vmul.f32 %v3036_v55, %v3674_v60  ;;  %3043 = vrcp.f32 %v2317_v63  ;;  %v2243_v7 = vadd.f32 1.0, %v2211_v0  ;;  %v2244_v9 = vadd.f32 1.0, %v2212_v1 }
 0x414   :  { %v2314_v10 = vmul.f32 %v3038_v5, %v3676_v3  ;;  %3045 = vpow2.f32 %v2149_v56  ;;  %v2079_v11 = vxor.u32 2147516416, %v2063_v2  ;;  %v1988_v12 = vpop.f32.mrf.mxu2  ;;  %v2037_v13 = vpop.f32.mrf.mxu3 }
 0x415   :  { %v2269_v14 = vpack.c.bf16 %v2244_v9, %v2243_v7  ;;  %v1989_v15 = vadd.f32 %v1988_v12, %v3662_v4  ;;  %v2038_v16 = vadd.f32 %v2037_v13, %v3664_v45 }
 0x416   :  { %v2315_v17 = vpack.c.bf16 %v2312_v6, %v2314_v10  ;;  %v2103_v18 = vunpack.c.l.bf16 %v2079_v11  ;;  %v2104_v19 = vunpack.c.h.bf16 %v2079_v11 }
 0x417   :  { %v3040_v20 = vpop.eup %3039  ;;  %v2323_v21 = vunpack.c.h.bf16 %v2269_v14  ;;  %v2324_v22 = vunpack.c.l.bf16 %v2269_v14  ;;  %v2064_v23 = vpack.c.bf16 %v2038_v16, %v1989_v15 }
 0x418   :  { %v3042_v24 = vpop.eup %3041  ;;  %v2401_v25 = vunpack.c.l.bf16 %v2315_v17  ;;  %v2402_v26 = vunpack.c.h.bf16 %v2315_v17  ;;  %v2151_v27 = vmul.f32 1.442695, %v2103_v18  ;;  %v2153_v28 = vmul.f32 1.442695, %v2104_v19 }
 0x419   :  { %v3044_v29 = vpop.eup %3043  ;;  %v2319_v30 = vmul.f32 %v3042_v24, %v3674_v60  ;;  %3047 = vrcp.f32 %v2323_v21  ;;  %v2080_v31 = vxor.u32 2147516416, %v2064_v23 }
 0x41a   :  { %v3046_v32 = vpop.eup %3045  ;;  %2433 = vst [vmem:[#allocation16 + $0x40] sm:$0xff] %v2401_v25  ;;  %v2321_v33 = vmul.f32 %v3044_v29, %v3676_v3  ;;  %3049 = vrcp.f32 %v2324_v22 }
 0x41b   :  { %2434 = vst [vmem:[#allocation16 + $0x48] sm:$0xff] %v2402_v26  ;;  %v2190_v34 = vpack.c.bf16 %v3046_v32, %v3040_v20  ;;  %3051 = vpow2.f32 %v2151_v27  ;;  %v2105_v35 = vunpack.c.l.bf16 %v2080_v31  ;;  %v2106_v36 = vunpack.c.h.bf16 %v2080_v31 }
 0x41c   :  { %v2322_v37 = vpack.c.bf16 %v2319_v30, %v2321_v33  ;;  %3053 = vpow2.f32 %v2153_v28  ;;  %v1991_v38 = vpop.f32.mrf.mxu2  ;;  %v2040_v39 = vpop.f32.mrf.mxu3 }
 0x41d   :  { %v2213_v40 = vunpack.c.l.bf16 %v2190_v34  ;;  %v2214_v41 = vunpack.c.h.bf16 %v2190_v34  ;;  %v2155_v42 = vmul.f32 1.442695, %v2105_v35  ;;  %v2157_v43 = vmul.f32 1.442695, %v2106_v36 }
 0x41e   :  { %v2403_v58 = vunpack.c.l.bf16 %v2322_v37  ;;  %v2404_v44 = vunpack.c.h.bf16 %v2322_v37  ;;  %v1992_v46 = vadd.f32 %v1991_v38, %v3662_v4  ;;  %v2041_v47 = vadd.f32 %v2040_v39, %v3664_v45 }
 0x41f   :  { %v3048_v48 = vpop.eup %3047  ;;  %v2245_v49 = vadd.f32 1.0, %v2213_v40  ;;  %v2246_v50 = vadd.f32 1.0, %v2214_v41  ;;  %3055 = vpow2.f32 %v2155_v42 }
 0x420   :  { %v3050_v51 = vpop.eup %3049  ;;  %2435 = vst [vmem:[#allocation16 + $0x50] sm:$0xff] %v2403_v58  ;;  %v2326_v8 = vmul.f32 %v3048_v48, %v3674_v60  ;;  %3057 = vpow2.f32 %v2157_v43  ;;  %v2065_v52 = vpack.c.bf16 %v2041_v47, %v1992_v46 }
 0x421   :  { %v3052_v53 = vpop.eup %3051  ;;  %2436 = vst [vmem:[#allocation16 + $0x58] sm:$0xff] %v2404_v44  ;;  %v2328_v62 = vmul.f32 %v3050_v51, %v3676_v3  ;;  %v2270_v54 = vpack.c.bf16 %v2246_v50, %v2245_v49 }
 0x422   :  { %v3054_v56 = vpop.eup %3053  ;;  %v2081_v57 = vxor.u32 2147516416, %v2065_v52 }
 0x423   :  { %v2329_v59 = vpack.c.bf16 %v2326_v8, %v2328_v62  ;;  %v2330_v61 = vunpack.c.h.bf16 %v2270_v54  ;;  %v2331_v63 = vunpack.c.l.bf16 %v2270_v54  ;;  %v2191_v0 = vpack.c.bf16 %v3054_v56, %v3052_v53 }
 0x424   :  { %v2107_v1 = vunpack.c.l.bf16 %v2081_v57  ;;  %v2108_v2 = vunpack.c.h.bf16 %v2081_v57  ;;  %v1993_v55 = vpop.f32.mrf.mxu2  ;;  %v2042_v5 = vpop.f32.mrf.mxu3 }
 0x425   :  { %v3056_v6 = vpop.eup %3055  ;;  %v2405_v7 = vunpack.c.l.bf16 %v2329_v59  ;;  %v2406_v9 = vunpack.c.h.bf16 %v2329_v59  ;;  %3059 = vrcp.f32 %v2330_v61  ;;  %v2215_v10 = vunpack.c.l.bf16 %v2191_v0 }
 0x426   :  { %v3058_v11 = vpop.eup %3057  ;;  %3061 = vrcp.f32 %v2331_v63  ;;  %v2216_v12 = vunpack.c.h.bf16 %v2191_v0  ;;  %v2159_v13 = vmul.f32 1.442695, %v2107_v1  ;;  %v2161_v14 = vmul.f32 1.442695, %v2108_v2 }
 0x427   :  { %2437 = vst [vmem:[#allocation16 + $0x60] sm:$0xff] %v2405_v7  ;;  %v2247_v15 = vadd.f32 1.0, %v2215_v10  ;;  %v2192_v16 = vpack.c.bf16 %v3058_v11, %v3056_v6  ;;  %v1994_v17 = vadd.f32 %v1993_v55, %v3662_v4  ;;  %v2043_v18 = vadd.f32 %v2042_v5, %v3664_v45 }
 0x428   :  { %2438 = vst [vmem:[#allocation16 + $0x68] sm:$0xff] %v2406_v9  ;;  %v2248_v19 = vadd.f32 1.0, %v2216_v12  ;;  %3063 = vpow2.f32 %v2159_v13 }
 0x429   :  { %v2217_v20 = vunpack.c.l.bf16 %v2192_v16  ;;  %v2218_v21 = vunpack.c.h.bf16 %v2192_v16  ;;  %3065 = vpow2.f32 %v2161_v14  ;;  %v2066_v22 = vpack.c.bf16 %v2043_v18, %v1994_v17 }
 0x42a   :  { %v2271_v23 = vpack.c.bf16 %v2248_v19, %v2247_v15 }
 0x42b   :  { %v3060_v24 = vpop.eup %3059  ;;  %v2249_v25 = vadd.f32 1.0, %v2217_v20  ;;  %v2250_v26 = vadd.f32 1.0, %v2218_v21  ;;  %v2082_v27 = vxor.u32 2147516416, %v2066_v22 }
 0x42c   :  { %v3062_v28 = vpop.eup %3061  ;;  %v2333_v29 = vmul.f32 %v3060_v24, %v3674_v60  ;;  %v2337_v30 = vunpack.c.h.bf16 %v2271_v23  ;;  %v2338_v31 = vunpack.c.l.bf16 %v2271_v23  ;;  %v1996_v32 = vpop.f32.mrf.mxu2 }
 0x42d   :  { %v2045_v33 = vpop.f32.mrf.mxu3  ;;  %v2335_v34 = vmul.f32 %v3062_v28, %v3676_v3  ;;  %v2272_v35 = vpack.c.bf16 %v2250_v26, %v2249_v25  ;;  %v2109_v36 = vunpack.c.l.bf16 %v2082_v27  ;;  %v2110_v37 = vunpack.c.h.bf16 %v2082_v27 }
 0x42e   :  { %v3064_v38 = vpop.eup %3063  ;;  %3067 = vrcp.f32 %v2337_v30  ;;  %v1997_v39 = vadd.f32 %v1996_v32, %v3662_v4  ;;  %v2046_v40 = vadd.f32 %v2045_v33, %v3664_v45 }
 0x42f   :  { %v3066_v41 = vpop.eup %3065  ;;  %v2336_v42 = vpack.c.bf16 %v2333_v29, %v2335_v34  ;;  %3069 = vrcp.f32 %v2338_v31  ;;  %v2344_v43 = vunpack.c.h.bf16 %v2272_v35  ;;  %v2345_v58 = vunpack.c.l.bf16 %v2272_v35 }
 0x430   :  { %v2193_v44 = vpack.c.bf16 %v3066_v41, %v3064_v38  ;;  %v2163_v46 = vmul.f32 1.442695, %v2109_v36  ;;  %v2165_v47 = vmul.f32 1.442695, %v2110_v37  ;;  %v2067_v48 = vpack.c.bf16 %v2046_v40, %v1997_v39 }
 0x431   :  { %v2407_v49 = vunpack.c.l.bf16 %v2336_v42  ;;  %v2408_v50 = vunpack.c.h.bf16 %v2336_v42  ;;  %3071 = vrcp.f32 %v2344_v43 }
 0x432   :  { %3073 = vrcp.f32 %v2345_v58  ;;  %v2219_v51 = vunpack.c.l.bf16 %v2193_v44  ;;  %v2220_v8 = vunpack.c.h.bf16 %v2193_v44  ;;  %v2083_v52 = vxor.u32 2147516416, %v2067_v48 }
 0x433   :  { %2439 = vst [vmem:[#allocation16 + $0x70] sm:$0xff] %v2407_v49  ;;  %3075 = vpow2.f32 %v2163_v46 }
 0x434   :  { %v3068_v53 = vpop.eup %3067  ;;  %2440 = vst [vmem:[#allocation16 + $0x78] sm:$0xff] %v2408_v50  ;;  %v2251_v62 = vadd.f32 1.0, %v2219_v51  ;;  %v2252_v54 = vadd.f32 1.0, %v2220_v8  ;;  %3077 = vpow2.f32 %v2165_v47  ;;  %v2111_v56 = vunpack.c.l.bf16 %v2083_v52  ;;  %v1998_v57 = vpop.f32.mrf.mxu2 }
 0x435   :  { %v2047_v59 = vpop.f32.mrf.mxu3  ;;  %v3070_v61 = vpop.eup %3069  ;;  %v2340_v63 = vmul.f32 %v3068_v53, %v3674_v60  ;;  %v2112_v0 = vunpack.c.h.bf16 %v2083_v52  ;;  %v1999_v1 = vadd.f32 %v1998_v57, %v3662_v4 }
 0x436   :  { %v2048_v2 = vadd.f32 %v2047_v59, %v3664_v45  ;;  %v2342_v55 = vmul.f32 %v3070_v61, %v3676_v3  ;;  %v2273_v5 = vpack.c.bf16 %v2252_v54, %v2251_v62  ;;  %v2167_v6 = vmul.f32 1.442695, %v2111_v56 }
 0x437   :  { %v3072_v7 = vpop.eup %3071  ;;  %v2169_v9 = vmul.f32 1.442695, %v2112_v0 }
 0x438   :  { %v2068_v10 = vpack.c.bf16 %v2048_v2, %v1999_v1  ;;  %v3074_v11 = vpop.eup %3073  ;;  %v2343_v12 = vpack.c.bf16 %v2340_v63, %v2342_v55  ;;  %v2347_v13 = vmul.f32 %v3072_v7, %v3674_v60  ;;  %v2351_v14 = vunpack.c.h.bf16 %v2273_v5 }
 0x439   :  { %v2352_v15 = vunpack.c.l.bf16 %v2273_v5  ;;  %v3076_v16 = vpop.eup %3075  ;;  %v2349_v17 = vmul.f32 %v3074_v11, %v3676_v3  ;;  %3079 = vpow2.f32 %v2167_v6 }
 0x43a   :  { %v2084_v18 = vxor.u32 2147516416, %v2068_v10  ;;  %v3078_v19 = vpop.eup %3077  ;;  %v2409_v20 = vunpack.c.l.bf16 %v2343_v12  ;;  %v2410_v21 = vunpack.c.h.bf16 %v2343_v12  ;;  %3081 = vrcp.f32 %v2351_v14 }
 0x43b   :  { %v2350_v22 = vpack.c.bf16 %v2347_v13, %v2349_v17  ;;  %3083 = vrcp.f32 %v2352_v15  ;;  %v2194_v23 = vpack.c.bf16 %v3078_v19, %v3076_v16 }
 0x43c   :  { %v2113_v24 = vunpack.c.l.bf16 %v2084_v18  ;;  %2441 = vst [vmem:[#allocation16 + $0x80] sm:$0xff] %v2409_v20  ;;  %3085 = vpow2.f32 %v2169_v9  ;;  %v2114_v25 = vunpack.c.h.bf16 %v2084_v18  ;;  %v2001_v26 = vpop.f32.mrf.mxu2 }
 0x43d   :  { %v2050_v27 = vpop.f32.mrf.mxu3  ;;  %2442 = vst [vmem:[#allocation16 + $0x88] sm:$0xff] %v2410_v21  ;;  %v2411_v28 = vunpack.c.l.bf16 %v2350_v22  ;;  %v2412_v29 = vunpack.c.h.bf16 %v2350_v22  ;;  %v2221_v30 = vunpack.c.l.bf16 %v2194_v23  ;;  %v2222_v31 = vunpack.c.h.bf16 %v2194_v23 }
 0x43e   :  { %v2171_v32 = vmul.f32 1.442695, %v2113_v24  ;;  %v2173_v33 = vmul.f32 1.442695, %v2114_v25  ;;  %v2002_v34 = vadd.f32 %v2001_v26, %v3662_v4  ;;  %v2051_v35 = vadd.f32 %v2050_v27, %v3664_v45 }
 0x43f   :  { %v3080_v36 = vpop.eup %3079  ;;  %2443 = vst [vmem:[#allocation16 + $0x90] sm:$0xff] %v2411_v28  ;;  %v2253_v37 = vadd.f32 1.0, %v2221_v30  ;;  %v2254_v38 = vadd.f32 1.0, %v2222_v31 }
 0x440   :  { %v3082_v39 = vpop.eup %3081  ;;  %2444 = vst [vmem:[#allocation16 + $0x98] sm:$0xff] %v2412_v29  ;;  %3087 = vpow2.f32 %v2171_v32  ;;  %v2069_v40 = vpack.c.bf16 %v2051_v35, %v2002_v34 }
 0x441   :  { %v3084_v41 = vpop.eup %3083  ;;  %v2354_v42 = vmul.f32 %v3082_v39, %v3674_v60  ;;  %v2274_v43 = vpack.c.bf16 %v2254_v38, %v2253_v37  ;;  %3089 = vpow2.f32 %v2173_v33 }
 0x442   :  { %v3086_v58 = vpop.eup %3085  ;;  %v2356_v44 = vmul.f32 %v3084_v41, %v3676_v3  ;;  %v2085_v46 = vxor.u32 2147516416, %v2069_v40 }
 0x443   :  { %v2358_v47 = vunpack.c.h.bf16 %v2274_v43  ;;  %v2359_v48 = vunpack.c.l.bf16 %v2274_v43  ;;  %v2195_v49 = vpack.c.bf16 %v3086_v58, %v3080_v36 }
 0x444   :  { %v2357_v50 = vpack.c.bf16 %v2354_v42, %v2356_v44  ;;  %v2115_v51 = vunpack.c.l.bf16 %v2085_v46  ;;  %v2116_v8 = vunpack.c.h.bf16 %v2085_v46  ;;  %v2003_v52 = vpop.f32.mrf.mxu2 }
 0x445   :  { %v2052_v53 = vpop.f32.mrf.mxu3  ;;  %3091 = vrcp.f32 %v2358_v47  ;;  %v2223_v62 = vunpack.c.l.bf16 %v2195_v49  ;;  %v2224_v54 = vunpack.c.h.bf16 %v2195_v49  ;;  %v2004_v56 = vadd.f32 %v2003_v52, %v3662_v4 }
 0x446   :  { %v3088_v57 = vpop.eup %3087  ;;  %v2413_v59 = vunpack.c.l.bf16 %v2357_v50  ;;  %v2414_v61 = vunpack.c.h.bf16 %v2357_v50  ;;  %3093 = vrcp.f32 %v2359_v48  ;;  %v2175_v63 = vmul.f32 1.442695, %v2115_v51 }
 0x447   :  { %v3090_v0 = vpop.eup %3089  ;;  %v2255_v1 = vadd.f32 1.0, %v2223_v62  ;;  %v2256_v2 = vadd.f32 1.0, %v2224_v54  ;;  %v2177_v55 = vmul.f32 1.442695, %v2116_v8  ;;  %v2053_v5 = vadd.f32 %v2052_v53, %v3664_v45 }
 0x448   :  { %2445 = vst [vmem:[#allocation16 + $0xa0] sm:$0xff] %v2413_v59  ;;  %v2196_v6 = vpack.c.bf16 %v3090_v0, %v3088_v57  ;;  %3095 = vpow2.f32 %v2175_v63 }
 0x449   :  { %2446 = vst [vmem:[#allocation16 + $0xa8] sm:$0xff] %v2414_v61  ;;  %v2275_v7 = vpack.c.bf16 %v2256_v2, %v2255_v1  ;;  %3097 = vpow2.f32 %v2177_v55  ;;  %v2070_v9 = vpack.c.bf16 %v2053_v5, %v2004_v56 }
 0x44a   :  { %v2225_v10 = vunpack.c.l.bf16 %v2196_v6  ;;  %v2226_v4 = vunpack.c.h.bf16 %v2196_v6 }
 0x44b   :  { %v3092_v11 = vpop.eup %3091  ;;  %v2365_v12 = vunpack.c.h.bf16 %v2275_v7  ;;  %v2366_v13 = vunpack.c.l.bf16 %v2275_v7  ;;  %v2086_v14 = vxor.u32 2147516416, %v2070_v9 }
 0x44c   :  { %v3094_v15 = vpop.eup %3093  ;;  %v2361_v16 = vmul.f32 %v3092_v11, %v3674_v60  ;;  %v2257_v17 = vadd.f32 1.0, %v2225_v10  ;;  %v2258_v18 = vadd.f32 1.0, %v2226_v4 }
 0x44d   :  { %v2363_v45 = vmul.f32 %v3094_v15, %v3676_v3  ;;  %3099 = vrcp.f32 %v2365_v12  ;;  %v2117_v19 = vunpack.c.l.bf16 %v2086_v14  ;;  %v2118_v20 = vunpack.c.h.bf16 %v2086_v14 }
 0x44e   :  { %v3096_v21 = vpop.eup %3095  ;;  %3101 = vrcp.f32 %v2366_v13  ;;  %v2276_v22 = vpack.c.bf16 %v2258_v18, %v2257_v17 }
 0x44f   :  { %v3098_v23 = vpop.eup %3097  ;;  %v2364_v24 = vpack.c.bf16 %v2361_v16, %v2363_v45  ;;  %v2179_v25 = vmul.f32 1.442695, %v2117_v19  ;;  %v2181_v29 = vmul.f32 1.442695, %v2118_v20 }
 0x450   :  { %v2372_v26 = vunpack.c.h.bf16 %v2276_v22  ;;  %v2373_v27 = vunpack.c.l.bf16 %v2276_v22  ;;  %v2197_v28 = vpack.c.bf16 %v3098_v23, %v3096_v21 }
 0x451   :  { %v2415_v30 = vunpack.c.l.bf16 %v2364_v24  ;;  %v2416_v31 = vunpack.c.h.bf16 %v2364_v24  ;;  %3103 = vpow2.f32 %v2179_v25 }
 0x452   :  { %3105 = vrcp.f32 %v2372_v26  ;;  %v2227_v32 = vunpack.c.l.bf16 %v2197_v28  ;;  %v2228_v33 = vunpack.c.h.bf16 %v2197_v28 }
 0x453   :  { %v3100_v34 = vpop.eup %3099  ;;  %2447 = vst [vmem:[#allocation16 + $0xb0] sm:$0xff] %v2415_v30  ;;  %3107 = vrcp.f32 %v2373_v27 }
 0x454   :  { %v3102_v35 = vpop.eup %3101  ;;  %2448 = vst [vmem:[#allocation16 + $0xb8] sm:$0xff] %v2416_v31  ;;  %v2368_v36 = vmul.f32 %v3100_v34, %v3674_v60  ;;  %v2259_v37 = vadd.f32 1.0, %v2227_v32  ;;  %v2260_v38 = vadd.f32 1.0, %v2228_v33  ;;  %3109 = vpow2.f32 %v2181_v29 }
 0x455   :  { %v2370_v39 = vmul.f32 %v3102_v35, %v3676_v3 }
 0x456   :  { %v2277_v40 = vpack.c.bf16 %v2260_v38, %v2259_v37 }
 0x457   :  { %v3104_v41 = vpop.eup %3103  ;;  %v2371_v42 = vpack.c.bf16 %v2368_v36, %v2370_v39 }
 0x458   :  { %v3106_v43 = vpop.eup %3105  ;;  %v2379_v58 = vunpack.c.h.bf16 %v2277_v40  ;;  %v2380_v44 = vunpack.c.l.bf16 %v2277_v40 }
 0x459   :  { %v3108_v46 = vpop.eup %3107  ;;  %v2417_v47 = vunpack.c.l.bf16 %v2371_v42  ;;  %v2418_v48 = vunpack.c.h.bf16 %v2371_v42  ;;  %v2375_v49 = vmul.f32 %v3106_v43, %v3674_v60 }
 0x45a   :  { %v3110_v50 = vpop.eup %3109  ;;  %v2377_v51 = vmul.f32 %v3108_v46, %v3676_v3  ;;  %3111 = vrcp.f32 %v2379_v58 }
 0x45b   :  { %2449 = vst [vmem:[#allocation16 + $0xc0] sm:$0xff] %v2417_v47  ;;  %3113 = vrcp.f32 %v2380_v44  ;;  %v2198_v8 = vpack.c.bf16 %v3110_v50, %v3104_v41 }
 0x45c   :  { %2450 = vst [vmem:[#allocation16 + $0xc8] sm:$0xff] %v2418_v48  ;;  %v2378_v52 = vpack.c.bf16 %v2375_v49, %v2377_v51 }
 0x45d   :  { %v2229_v53 = vunpack.c.l.bf16 %v2198_v8  ;;  %v2230_v62 = vunpack.c.h.bf16 %v2198_v8 }
 0x45e   :  { %v2419_v54 = vunpack.c.l.bf16 %v2378_v52  ;;  %v2420_v56 = vunpack.c.h.bf16 %v2378_v52 }
 0x45f   :  { %v2261_v57 = vadd.f32 1.0, %v2229_v53  ;;  %v2262_v59 = vadd.f32 1.0, %v2230_v62 }
 0x460   :  { %v3112_v61 = vpop.eup %3111  ;;  %2451 = vst [vmem:[#allocation16 + $0xd0] sm:$0xff] %v2419_v54 }
 0x461   :  { %v3114_v63 = vpop.eup %3113  ;;  %2452 = vst [vmem:[#allocation16 + $0xd8] sm:$0xff] %v2420_v56  ;;  %v2382_v0 = vmul.f32 %v3112_v61, %v3674_v60  ;;  %v2278_v1 = vpack.c.bf16 %v2262_v59, %v2261_v57 }
 0x462   :  { %v2384_v2 = vmul.f32 %v3114_v63, %v3676_v3 }
 0x463   :  { %v2386_v55 = vunpack.c.h.bf16 %v2278_v1  ;;  %v2387_v5 = vunpack.c.l.bf16 %v2278_v1 }
 0x464   :  { %v2385_v6 = vpack.c.bf16 %v2382_v0, %v2384_v2 }
 0x465   :  { %3115 = vrcp.f32 %v2386_v55 }
 0x466   :  { %v2421_v7 = vunpack.c.l.bf16 %v2385_v6  ;;  %v2422_v9 = vunpack.c.h.bf16 %v2385_v6  ;;  %3117 = vrcp.f32 %v2387_v5 }
 0x468   :  { %2453 = vst [vmem:[#allocation16 + $0xe0] sm:$0xff] %v2421_v7 }
 0x469   :  { %2454 = vst [vmem:[#allocation16 + $0xe8] sm:$0xff] %v2422_v9 }
 0x46b   :  { %v3116_v10 = vpop.eup %3115 }
 0x46c   :  { %v3118_v4 = vpop.eup %3117  ;;  %v2389_v11 = vmul.f32 %v3116_v10, %v3674_v60 }
 0x46d   :  { %v2391_v12 = vmul.f32 %v3118_v4, %v3676_v3 }
 0x46f   :  { %v2392_v13 = vpack.c.bf16 %v2389_v11, %v2391_v12 }
 0x471   :  { %v2423_v14 = vunpack.c.l.bf16 %v2392_v13  ;;  %v2424_v15 = vunpack.c.h.bf16 %v2392_v13 }
 0x473   :  { %2455 = vst [vmem:[#allocation16 + $0xf0] sm:$0xff] %v2423_v14 }
 0x474   :  { %2456 = vst [vmem:[#allocation16 + $0xf8] sm:$0xff] %v2424_v15 }
 0x475   :  { %2469 = dma.vmem_to_hbm [thread:$0]  %s2462_s22, 4096, %s2464_s19, [#allocation4], %s3388_s21, %s3388_s21, %s3389_s2  }
 0x476   :  { %3369 = dma.done.wait [#allocation4], 4096  }
 0x477   :  { %3370 = vsyncadd [#allocation4], 4294963200 }
 0x478   :  { %3371 = dma.done.wait [#allocation18], 2048  }
 0x479   :  { %3372 = vsyncadd [#allocation18], 4294965248 }
 0x47a   :  { %2491 = vsyncpa [#allocation3], 1 }
 0x47b   :  { %2492 = vsyncpa [#allocation6], 1 }
 0x47c   :  { %2493 = vsyncpa [#allocation9], 1 }
 0x47d   :  { %2494 = vsyncpa [#allocation12], 1 }
 0x47e   :  { %2495 = vsyncpa [#allocation15], 1 }
 0x47f   :  { %2496 = vsyncpa [#allocation4], 1 }
 0x480   :  { %2497 = vsyncpa [#allocation18], 1 }

</bundles_post_ra>
